<compile_context>
chip_gen: v7x
topology: tpu7x:2x2x1
jax: 0.10.0
libtpu: 0.0.40
codegen_flags: <defaults>
</compile_context>

<pallas_src>
import functools
import math

import jax
import jax.numpy as jnp
import numpy as np
from jax import lax
from jax.experimental import pallas as pl
from jax.experimental.pallas import tpu as pltpu

_EPS = 1e-5


# ----------------------------- Pallas kernels ------------------------------ #

def _conv_bn_relu_pool_kernel(p_ref, w_ref, sel_ref, o_ref, *, ow, eps=_EPS):
    """Conv (im2col matmul) -> 2x2/s2 max-pool -> BN(affine=False, batch stats) -> ReLU.

    p_ref:   (M, K)    bf16 im2col patches, rows in (batch, row, col) order.
    w_ref:   (K, C)    bf16 conv weight.
    sel_ref: (M/4, M)  bf16 one-hot rows selecting each pool window's origin row.
    o_ref:   (M/4, C)  bf16 pooled activations.
    """
    conv = jnp.dot(p_ref[...], w_ref[...], preferred_element_type=jnp.float32)
    m = conv.shape[0]
    # One-pass batch-norm statistics on the full (pre-pool) conv output.
    s1 = jnp.sum(conv, axis=0, keepdims=True)
    s2 = jnp.sum(conv * conv, axis=0, keepdims=True)
    mean = s1 * (1.0 / m)
    var = s2 * (1.0 / m) - mean * mean
    # Max-pool the RAW conv output (max commutes with the monotone BN affine map and
    # with ReLU).  Corner combine = two cyclic rolls (XLU) + elementwise max; positive
    # shifts m-1 / m-ow are the cyclic equivalents of -1 / -ow (bring row i+1 / i+ow
    # to row i).  Wrap-around rows are never selected by sel.
    z = jnp.maximum(conv, pltpu.roll(conv, m - 1, axis=0))     # cols x, x+1
    z = jnp.maximum(z, pltpu.roll(z, m - ow, axis=0))          # rows y, y+1
    # Gather the window-origin rows (even row / even col) with one MXU matmul.
    pooled = jnp.dot(sel_ref[...], z.astype(jnp.bfloat16),
                     preferred_element_type=jnp.float32)
    o_ref[...] = jnp.maximum((pooled - mean) * lax.rsqrt(var + eps),
                             0.0).astype(o_ref.dtype)


def _conv3_head_kernel(p_ref, w3_ref, w1_ref, b1_ref, w2_ref, b2_ref, *rest,
                       n, pos, eps=_EPS, predict):
    """Fused conv3 + BN + ReLU -> flatten(NHWC) -> fc1+ReLU -> Dropout(identity)
    -> fc2+ReLU [-> output layer].

    p_ref:  (pos*n, K3)     bf16 conv3 patches, rows in (spatial-pos, batch) order.
    w3_ref: (K3, C3)        bf16.
    w1_ref: (pos, C3, 128)  bf16 fc1 weight grouped by spatial position.
    """
    if predict:
        wo_ref, bo_ref, o_ref = rest
    else:
        (o_ref,) = rest

    conv = jnp.dot(p_ref[...], w3_ref[...], preferred_element_type=jnp.float32)
    m = conv.shape[0]
    s1 = jnp.sum(conv, axis=0, keepdims=True)
    s2 = jnp.sum(conv * conv, axis=0, keepdims=True)
    mean = s1 * (1.0 / m)
    var = s2 * (1.0 / m) - mean * mean
    act = jnp.maximum((conv - mean) * lax.rsqrt(var + eps), 0.0)
    act = act.astype(jnp.bfloat16)                       # (pos*n, C3)

    # fc1 over the NHWC flatten, expressed as a sum of per-spatial-position matmuls
    # (contiguous static row slices; avoids any in-kernel sublane->lane reshape).
    h = jnp.dot(act[0:n, :], w1_ref[0], preferred_element_type=jnp.float32)
    for p in range(1, pos):                              # pos is static (16), unrolled
        h = h + jnp.dot(act[p * n:(p + 1) * n, :], w1_ref[p],
                        preferred_element_type=jnp.float32)
    h = jnp.maximum(h + b1_ref[...], 0.0)                # (n, 128)
    # TODO(synk): nn.Dropout(0.1) is identity here (eval-mode semantics).
    h = jnp.dot(h.astype(jnp.bfloat16), w2_ref[...],
                preferred_element_type=jnp.float32) + b2_ref[...]
    h = jnp.maximum(h, 0.0)                              # (n, 64)
    if predict:
        h = jnp.dot(h.astype(jnp.bfloat16), wo_ref[...],
                    preferred_element_type=jnp.float32) + bo_ref[...]
    o_ref[...] = h


# ------------------------------- wrappers ----------------------------------- #

def _full_spec(shape):
    nd = len(shape)
    return pl.BlockSpec(shape, lambda i, _nd=nd: (0,) * _nd)


# Single-step grid: nothing to shard across cores at batch=2.
_PARAMS_1STEP = pltpu.CompilerParams(dimension_semantics=("arbitrary",))


def _im2col(x_nhwc, kh, kw, pad):
    # TODO(synk): patch extraction stays in XLA glue (one fused pad+stack per layer,
    # <0.5 MiB); an in-kernel shifted-tap conv was not worth the lowering risk here.
    x = x_nhwc.astype(jnp.bfloat16)
    n, h, w, c = x.shape
    xp = jnp.pad(x, ((0, 0), (pad, pad), (pad, pad), (0, 0)))
    oh = h + 2 * pad - kh + 1
    ow = w + 2 * pad - kw + 1
    cols = [xp[:, i:i + oh, j:j + ow, :] for i in range(kh) for j in range(kw)]
    patches = jnp.stack(cols, axis=3)                    # (n, oh, ow, kh*kw, c)
    return patches.reshape(n, oh, ow, kh * kw * c), oh, ow


def _pool_origin_onehot(n, oh, ow):
    """(n*oh*ow/4, n*oh*ow) one-hot rows selecting each 2x2 window's origin row."""
    ho, wo = oh // 2, ow // 2
    q = np.arange(n * ho * wo)
    b, rem = q // (ho * wo), q % (ho * wo)
    base = b * (oh * ow) + 2 * (rem // wo) * ow + 2 * (rem % wo)
    sel = base[:, None] == np.arange(n * oh * ow)[None, :]
    return jnp.asarray(sel, dtype=jnp.bfloat16)


def conv_bn_relu_pool(x_nhwc, weight, *, kh, kw, pad):
    """Fused Conv2d (im2col matmul) -> MaxPool 2x2/s2 -> BN(affine=False) -> ReLU."""
    n = x_nhwc.shape[0]
    patches4, oh, ow = _im2col(x_nhwc, kh, kw, pad)
    assert oh % 2 == 0 and ow % 2 == 0, "2x2/s2 MaxPool here requires even spatial dims"
    patches = patches4.reshape(n * oh * ow, -1)          # rows: (batch, row, col)
    M, K = patches.shape
    cout = weight.shape[1]
    m4 = M // 4
    sel = _pool_origin_onehot(n, oh, ow)                 # static constant (trace time)
    kern = functools.partial(_conv_bn_relu_pool_kernel, ow=ow)
    out = pl.pallas_call(
        kern,
        out_shape=jax.ShapeDtypeStruct((m4, cout), jnp.bfloat16),
        grid=(1,),
        in_specs=[_full_spec((M, K)), _full_spec((K, cout)), _full_spec((m4, M))],
        out_specs=_full_spec((m4, cout)),
        compiler_params=_PARAMS_1STEP,
    )(patches, weight, sel)
    return out.reshape(n, oh // 2, ow // 2, cout)


def conv3_and_head(x_nhwc, params, predict):
    """Fused conv3+BN+ReLU + flatten + fc1+ReLU + Dropout(id) + fc2+ReLU [+ output]."""
    n = x_nhwc.shape[0]
    patches4, oh, ow = _im2col(x_nhwc, 3, 3, 1)
    pos = oh * ow
    # spatial-position-major rows so the fused fc1 uses contiguous per-p slices.
    patches = jnp.transpose(patches4, (1, 2, 0, 3)).reshape(pos * n, -1)
    c3 = params["w3"].shape[1]
    w1r = params["fc1_w"].reshape(pos, c3, 128)          # free XLA reshape
    out_dim = 2 if predict else 64
    args = [patches, params["w3"], w1r,
            params["fc1_b"], params["fc2_w"], params["fc2_b"]]
    if predict:
        args += [params["out_w"], params["out_b"]]       # only DMA'd when needed
    kern = functools.partial(_conv3_head_kernel, n=n, pos=pos, predict=predict)
    return pl.pallas_call(
        kern,
        out_shape=jax.ShapeDtypeStruct((n, out_dim), jnp.float32),
        grid=(1,),
        in_specs=[_full_spec(a.shape) for a in args],
        out_specs=_full_spec((n, out_dim)),
        compiler_params=_PARAMS_1STEP,
    )(*args)


def cnn_forward(x_nchw, params, predict=False):
    x = jnp.transpose(x_nchw, (0, 2, 3, 1))              # NCHW -> NHWC (input only)
    x = conv_bn_relu_pool(x, params["w1"], kh=7, kw=7, pad=1)
    x = conv_bn_relu_pool(x, params["w2"], kh=5, kw=5, pad=2)
    return conv3_and_head(x, params, predict)


# ---------------------------- parameter init -------------------------------- #

def _xavier_uniform(key, shape, fan_in, fan_out):
    bound = math.sqrt(6.0 / (fan_in + fan_out))
    return jax.random.uniform(key, shape, jnp.float32, -bound, bound)


def init_params(key, input_dim):
    ks = jax.random.split(key, 6)
    # Conv weights stored as (kh*kw*cin, cout), rows in im2col (tap, channel) order.
    # Conv biases are omitted: BatchNorm2d(affine=False) cancels them exactly (and
    # PyTorch's _initialize_weights zero-inits them anyway).
    w1 = _xavier_uniform(ks[0], (7 * 7 * 3, 32), 3 * 7 * 7, 32 * 7 * 7)
    w2 = _xavier_uniform(ks[1], (5 * 5 * 32, 64), 32 * 5 * 5, 64 * 5 * 5)
    w3 = _xavier_uniform(ks[2], (3 * 3 * 64, 128), 64 * 3 * 3, 128 * 3 * 3)

    s = input_dim + 2 - 7 + 1     # conv1 (k=7, p=1)
    s = s // 2                    # maxpool
    s = s // 2                    # conv2 same-padded; second maxpool
    flatten = 128 * s * s         # conv3 same-padded

    # fc1 generated in PyTorch's NCHW-flatten row order, then permuted ONCE to the
    # NHWC-flatten order used at runtime (removes the per-forward transpose).
    fc1_pt = _xavier_uniform(ks[3], (flatten, 128), flatten, 128)
    fc1_w = (fc1_pt.reshape(128, s, s, 128)     # rows: (C, H, W)
             .transpose(1, 2, 0, 3)             # rows: (H, W, C)
             .reshape(flatten, 128))
    fc2_w = _xavier_uniform(ks[4], (128, 64), 128, 64)
    out_w = _xavier_uniform(ks[5], (64, 2), 64, 2)
    bf16 = lambda a: a.astype(jnp.bfloat16)     # bf16 matmul inputs, f32 accumulate
    zeros = lambda m: jnp.zeros((1, m), jnp.float32)
    return {
        "w1": bf16(w1), "w2": bf16(w2), "w3": bf16(w3),
        "fc1_w": bf16(fc1_w), "fc1_b": zeros(128),
        "fc2_w": bf16(fc2_w), "fc2_b": zeros(64),
        "out_w": bf16(out_w), "out_b": zeros(2),
    }


# ---------------------------- pure-JAX reference ---------------------------- #

def reference_forward(x_nchw, params, predict=False):
    """f32 reference of the same forward pass (verification only)."""
    f32 = lambda a: a.astype(jnp.float32)
    x = jnp.transpose(x_nchw, (0, 2, 3, 1)).astype(jnp.float32)

    def conv_bn_relu(x, w_mat, kh, kw, pad):
        cin, cout = x.shape[-1], w_mat.shape[-1]
        w4 = f32(w_mat).reshape(kh, kw, cin, cout)
        y = lax.conv_general_dilated(x, w4, (1, 1), [(pad, pad), (pad, pad)],
                                     dimension_numbers=("NHWC", "HWIO", "NHWC"))
        mean = jnp.mean(y, axis=(0, 1, 2), keepdims=True)
        var = jnp.mean((y - mean) ** 2, axis=(0, 1, 2), keepdims=True)
        return jnp.maximum((y - mean) * lax.rsqrt(var + _EPS), 0.0)

    def maxpool2(x):
        return lax.reduce_window(x, -jnp.inf, lax.max,
                                 (1, 2, 2, 1), (1, 2, 2, 1), "VALID")

    x = maxpool2(conv_bn_relu(x, params["w1"], 7, 7, 1))
    x = maxpool2(conv_bn_relu(x, params["w2"], 5, 5, 2))
    x = conv_bn_relu(x, params["w3"], 3, 3, 1)
    x = x.reshape(x.shape[0], -1)                        # NHWC flatten
    h = jnp.maximum(x @ f32(params["fc1_w"]) + params["fc1_b"], 0.0)
    h = jnp.maximum(h @ f32(params["fc2_w"]) + params["fc2_b"], 0.0)
    if predict:
        h = h @ f32(params["out_w"]) + params["out_b"]
    return h


if __name__ == "__main__":
    input_dim = 20    # -> 16 after conv1 (k7,p1); pool->8; conv2 same; pool->4; conv3 same
    batch = 2
    key = jax.random.PRNGKey(0)
    kp, kx = jax.random.split(key)
    params = init_params(kp, input_dim)
    x = jax.random.normal(kx, (batch, 3, input_dim, input_dim), jnp.float32)  # NCHW

    fwd = jax.jit(cnn_forward, static_argnames=("predict",))
    feats = fwd(x, params, predict=False)    # (2, 64) — default forward
    logits = fwd(x, params, predict=True)    # (2, 2)  — predict=True path
    jax.block_until_ready((feats, logits))

    assert feats.shape == (batch, 64) and logits.shape == (batch, 2)
    assert bool(jnp.all(jnp.isfinite(feats))) and bool(jnp.all(jnp.isfinite(logits)))

    # Verify against the pure-JAX f32 reference (bf16 matmul inputs in the kernels
    # => loose tolerance).
    feats_ref = reference_forward(x, params, predict=False)
    logits_ref = reference_forward(x, params, predict=True)
    assert bool(jnp.allclose(feats, feats_ref, rtol=1e-1, atol=1e-1)), (
        "feats max|diff|=%f" % float(jnp.max(jnp.abs(feats - feats_ref))))
    assert bool(jnp.allclose(logits, logits_ref, rtol=1e-1, atol=1e-1)), (
        "logits max|diff|=%f" % float(jnp.max(jnp.abs(logits - logits_ref))))
    print("KERNEL_OK")
</pallas_src>

<mosaic_0001>
module attributes {stable_mosaic.version = 11 : i64} {
  func.func @_conv_bn_relu_pool_kernel(%arg0: i32, %arg1: memref<512x147xbf16, #tpu.memory_space<vmem>>, %arg2: memref<147x32xbf16, #tpu.memory_space<vmem>>, %arg3: memref<128x512xbf16, #tpu.memory_space<vmem>>, %arg4: memref<128x32xbf16, #tpu.memory_space<vmem>>) attributes {dimension_semantics = [#tpu.dimension_semantics<arbitrary>], iteration_bounds = array<i64: 1>, scalar_prefetch = 0 : i64, scratch_operands = 0 : i64, tpu.core_type = #tpu.core_type<tc>, window_params = [{pipeline_mode = #tpu.pipeline_mode<synchronous>, transform_indices = @transform_0, window_bounds = array<i64: 512, 147>}, {pipeline_mode = #tpu.pipeline_mode<synchronous>, transform_indices = @transform_1, window_bounds = array<i64: 147, 32>}, {pipeline_mode = #tpu.pipeline_mode<synchronous>, transform_indices = @transform_2, window_bounds = array<i64: 128, 512>}, {pipeline_mode = #tpu.pipeline_mode<synchronous>, transform_indices = @transform_3, window_bounds = array<i64: 128, 32>}]} {
    %c0 = arith.constant 0 : index
    %c0_0 = arith.constant 0 : index
    %0 = vector.load %arg1[%c0, %c0_0] : memref<512x147xbf16, #tpu.memory_space<vmem>>, vector<512x147xbf16>
    %c0_1 = arith.constant 0 : index
    %c0_2 = arith.constant 0 : index
    %1 = vector.load %arg2[%c0_1, %c0_2] : memref<147x32xbf16, #tpu.memory_space<vmem>>, vector<147x32xbf16>
    %cst = arith.constant dense<0.000000e+00> : vector<512x32xf32>
    %2 = tpu.matmul %0, %1, %cst {dimension_numbers = #tpu.dot_dimension_numbers<[1], [0], [0], [1], [0, 0, 1, 1], [], []>} : vector<512x147xbf16>, vector<147x32xbf16>, vector<512x32xf32> -> vector<512x32xf32>
    %cst_3 = arith.constant dense<0.000000e+00> : vector<32xf32>
    %3 = vector.multi_reduction <add>, %2, %cst_3 [0] : vector<512x32xf32> to vector<32xf32>
    %4 = vector.shape_cast %3 : vector<32xf32> to vector<1x32xf32>
    %5 = arith.mulf %2, %2 : vector<512x32xf32>
    %cst_4 = arith.constant dense<0.000000e+00> : vector<32xf32>
    %6 = vector.multi_reduction <add>, %5, %cst_4 [0] : vector<512x32xf32> to vector<32xf32>
    %7 = vector.shape_cast %6 : vector<32xf32> to vector<1x32xf32>
    %cst_5 = arith.constant 0.001953125 : f32
    %8 = vector.broadcast %cst_5 : f32 to vector<1x32xf32>
    %9 = arith.mulf %4, %8 : vector<1x32xf32>
    %cst_6 = arith.constant 0.001953125 : f32
    %10 = vector.broadcast %cst_6 : f32 to vector<1x32xf32>
    %11 = arith.mulf %7, %10 : vector<1x32xf32>
    %12 = arith.mulf %9, %9 : vector<1x32xf32>
    %13 = arith.subf %11, %12 : vector<1x32xf32>
    %c511_i32 = arith.constant 511 : i32
    %14 = tpu.dynamic_rotate %2 by %c511_i32 dim 0 : vector<512x32xf32>, i32 -> vector<512x32xf32>
    %15 = arith.maximumf %2, %14 : vector<512x32xf32>
    %c496_i32 = arith.constant 496 : i32
    %16 = tpu.dynamic_rotate %15 by %c496_i32 dim 0 : vector<512x32xf32>, i32 -> vector<512x32xf32>
    %17 = arith.maximumf %15, %16 : vector<512x32xf32>
    %c0_7 = arith.constant 0 : index
    %c0_8 = arith.constant 0 : index
    %18 = vector.load %arg3[%c0_7, %c0_8] : memref<128x512xbf16, #tpu.memory_space<vmem>>, vector<128x512xbf16>
    %19 = arith.truncf %17 : vector<512x32xf32> to vector<512x32xbf16>
    %cst_9 = arith.constant dense<0.000000e+00> : vector<128x32xf32>
    %20 = tpu.matmul %18, %19, %cst_9 {dimension_numbers = #tpu.dot_dimension_numbers<[1], [0], [0], [1], [0, 0, 1, 1], [], []>} : vector<128x512xbf16>, vector<512x32xbf16>, vector<128x32xf32> -> vector<128x32xf32>
    %21 = vector.broadcast %9 : vector<1x32xf32> to vector<128x32xf32>
    %22 = arith.subf %20, %21 : vector<128x32xf32>
    %cst_10 = arith.constant 9.99999974E-6 : f32
    %23 = vector.broadcast %cst_10 : f32 to vector<1x32xf32>
    %24 = arith.addf %13, %23 : vector<1x32xf32>
    %25 = math.rsqrt %24 : vector<1x32xf32>
    %26 = vector.broadcast %25 : vector<1x32xf32> to vector<128x32xf32>
    %27 = arith.mulf %22, %26 : vector<128x32xf32>
    %cst_11 = arith.constant 0.000000e+00 : f32
    %28 = vector.broadcast %cst_11 : f32 to vector<128x32xf32>
    %29 = arith.maximumf %27, %28 : vector<128x32xf32>
    %30 = arith.truncf %29 : vector<128x32xf32> to vector<128x32xbf16>
    %c0_12 = arith.constant 0 : index
    %c0_13 = arith.constant 0 : index
    %31 = vector.load %arg4[%c0_12, %c0_13] : memref<128x32xbf16, #tpu.memory_space<vmem>>, vector<128x32xbf16>
    tpu.vector_store %arg4[%c0_12, %c0_13], %30 {strides = array<i32>} : memref<128x32xbf16, #tpu.memory_space<vmem>>, vector<128x32xbf16>,
    return
  }
  func.func @transform_0(%arg0: i32) -> (i32, i32) {
    %c0_i32 = arith.constant 0 : i32
    %c0_i32_0 = arith.constant 0 : i32
    %c0_i32_1 = arith.constant 0 : i32
    return %c0_i32, %c0_i32_0 : i32, i32
  }
  func.func @transform_1(%arg0: i32) -> (i32, i32) {
    %c0_i32 = arith.constant 0 : i32
    %c0_i32_0 = arith.constant 0 : i32
    %c0_i32_1 = arith.constant 0 : i32
    return %c0_i32, %c0_i32_0 : i32, i32
  }
  func.func @transform_2(%arg0: i32) -> (i32, i32) {
    %c0_i32 = arith.constant 0 : i32
    %c0_i32_0 = arith.constant 0 : i32
    %c0_i32_1 = arith.constant 0 : i32
    return %c0_i32, %c0_i32_0 : i32, i32
  }
  func.func @transform_3(%arg0: i32) -> (i32, i32) {
    %c0_i32 = arith.constant 0 : i32
    %c0_i32_0 = arith.constant 0 : i32
    %c0_i32_1 = arith.constant 0 : i32
    return %c0_i32, %c0_i32_0 : i32, i32
  }
}

module attributes {stable_mosaic.version = 11 : i64} {
  func.func @_conv_bn_relu_pool_kernel(%arg0: i32, %arg1: memref<128x800xbf16, #tpu.memory_space<vmem>>, %arg2: memref<800x64xbf16, #tpu.memory_space<vmem>>, %arg3: memref<32x128xbf16, #tpu.memory_space<vmem>>, %arg4: memref<32x64xbf16, #tpu.memory_space<vmem>>) attributes {dimension_semantics = [#tpu.dimension_semantics<arbitrary>], iteration_bounds = array<i64: 1>, scalar_prefetch = 0 : i64, scratch_operands = 0 : i64, tpu.core_type = #tpu.core_type<tc>, window_params = [{pipeline_mode = #tpu.pipeline_mode<synchronous>, transform_indices = @transform_0, window_bounds = array<i64: 128, 800>}, {pipeline_mode = #tpu.pipeline_mode<synchronous>, transform_indices = @transform_1, window_bounds = array<i64: 800, 64>}, {pipeline_mode = #tpu.pipeline_mode<synchronous>, transform_indices = @transform_2, window_bounds = array<i64: 32, 128>}, {pipeline_mode = #tpu.pipeline_mode<synchronous>, transform_indices = @transform_3, window_bounds = array<i64: 32, 64>}]} {
    %c0 = arith.constant 0 : index
    %c0_0 = arith.constant 0 : index
    %0 = vector.load %arg1[%c0, %c0_0] : memref<128x800xbf16, #tpu.memory_space<vmem>>, vector<128x800xbf16>
    %c0_1 = arith.constant 0 : index
    %c0_2 = arith.constant 0 : index
    %1 = vector.load %arg2[%c0_1, %c0_2] : memref<800x64xbf16, #tpu.memory_space<vmem>>, vector<800x64xbf16>
    %cst = arith.constant dense<0.000000e+00> : vector<128x64xf32>
    %2 = tpu.matmul %0, %1, %cst {dimension_numbers = #tpu.dot_dimension_numbers<[1], [0], [0], [1], [0, 0, 1, 1], [], []>} : vector<128x800xbf16>, vector<800x64xbf16>, vector<128x64xf32> -> vector<128x64xf32>
    %cst_3 = arith.constant dense<0.000000e+00> : vector<64xf32>
    %3 = vector.multi_reduction <add>, %2, %cst_3 [0] : vector<128x64xf32> to vector<64xf32>
    %4 = vector.shape_cast %3 : vector<64xf32> to vector<1x64xf32>
    %5 = arith.mulf %2, %2 : vector<128x64xf32>
    %cst_4 = arith.constant dense<0.000000e+00> : vector<64xf32>
    %6 = vector.multi_reduction <add>, %5, %cst_4 [0] : vector<128x64xf32> to vector<64xf32>
    %7 = vector.shape_cast %6 : vector<64xf32> to vector<1x64xf32>
    %cst_5 = arith.constant 7.812500e-03 : f32
    %8 = vector.broadcast %cst_5 : f32 to vector<1x64xf32>
    %9 = arith.mulf %4, %8 : vector<1x64xf32>
    %cst_6 = arith.constant 7.812500e-03 : f32
    %10 = vector.broadcast %cst_6 : f32 to vector<1x64xf32>
    %11 = arith.mulf %7, %10 : vector<1x64xf32>
    %12 = arith.mulf %9, %9 : vector<1x64xf32>
    %13 = arith.subf %11, %12 : vector<1x64xf32>
    %c127_i32 = arith.constant 127 : i32
    %14 = tpu.dynamic_rotate %2 by %c127_i32 dim 0 : vector<128x64xf32>, i32 -> vector<128x64xf32>
    %15 = arith.maximumf %2, %14 : vector<128x64xf32>
    %c120_i32 = arith.constant 120 : i32
    %16 = tpu.dynamic_rotate %15 by %c120_i32 dim 0 : vector<128x64xf32>, i32 -> vector<128x64xf32>
    %17 = arith.maximumf %15, %16 : vector<128x64xf32>
    %c0_7 = arith.constant 0 : index
    %c0_8 = arith.constant 0 : index
    %18 = vector.load %arg3[%c0_7, %c0_8] : memref<32x128xbf16, #tpu.memory_space<vmem>>, vector<32x128xbf16>
    %19 = arith.truncf %17 : vector<128x64xf32> to vector<128x64xbf16>
    %cst_9 = arith.constant dense<0.000000e+00> : vector<32x64xf32>
    %20 = tpu.matmul %18, %19, %cst_9 {dimension_numbers = #tpu.dot_dimension_numbers<[1], [0], [0], [1], [0, 0, 1, 1], [], []>} : vector<32x128xbf16>, vector<128x64xbf16>, vector<32x64xf32> -> vector<32x64xf32>
    %21 = vector.broadcast %9 : vector<1x64xf32> to vector<32x64xf32>
    %22 = arith.subf %20, %21 : vector<32x64xf32>
    %cst_10 = arith.constant 9.99999974E-6 : f32
    %23 = vector.broadcast %cst_10 : f32 to vector<1x64xf32>
    %24 = arith.addf %13, %23 : vector<1x64xf32>
    %25 = math.rsqrt %24 : vector<1x64xf32>
    %26 = vector.broadcast %25 : vector<1x64xf32> to vector<32x64xf32>
    %27 = arith.mulf %22, %26 : vector<32x64xf32>
    %cst_11 = arith.constant 0.000000e+00 : f32
    %28 = vector.broadcast %cst_11 : f32 to vector<32x64xf32>
    %29 = arith.maximumf %27, %28 : vector<32x64xf32>
    %30 = arith.truncf %29 : vector<32x64xf32> to vector<32x64xbf16>
    %c0_12 = arith.constant 0 : index
    %c0_13 = arith.constant 0 : index
    %31 = vector.load %arg4[%c0_12, %c0_13] : memref<32x64xbf16, #tpu.memory_space<vmem>>, vector<32x64xbf16>
    tpu.vector_store %arg4[%c0_12, %c0_13], %30 {strides = array<i32>} : memref<32x64xbf16, #tpu.memory_space<vmem>>, vector<32x64xbf16>,
    return
  }
  func.func @transform_0(%arg0: i32) -> (i32, i32) {
    %c0_i32 = arith.constant 0 : i32
    %c0_i32_0 = arith.constant 0 : i32
    %c0_i32_1 = arith.constant 0 : i32
    return %c0_i32, %c0_i32_0 : i32, i32
  }
  func.func @transform_1(%arg0: i32) -> (i32, i32) {
    %c0_i32 = arith.constant 0 : i32
    %c0_i32_0 = arith.constant 0 : i32
    %c0_i32_1 = arith.constant 0 : i32
    return %c0_i32, %c0_i32_0 : i32, i32
  }
  func.func @transform_2(%arg0: i32) -> (i32, i32) {
    %c0_i32 = arith.constant 0 : i32
    %c0_i32_0 = arith.constant 0 : i32
    %c0_i32_1 = arith.constant 0 : i32
    return %c0_i32, %c0_i32_0 : i32, i32
  }
  func.func @transform_3(%arg0: i32) -> (i32, i32) {
    %c0_i32 = arith.constant 0 : i32
    %c0_i32_0 = arith.constant 0 : i32
    %c0_i32_1 = arith.constant 0 : i32
    return %c0_i32, %c0_i32_0 : i32, i32
  }
}

module attributes {stable_mosaic.version = 11 : i64} {
  func.func @_conv3_head_kernel(%arg0: i32, %arg1: memref<32x576xbf16, #tpu.memory_space<vmem>>, %arg2: memref<576x128xbf16, #tpu.memory_space<vmem>>, %arg3: memref<16x128x128xbf16, #tpu.memory_space<vmem>>, %arg4: memref<1x128xf32, #tpu.memory_space<vmem>>, %arg5: memref<128x64xbf16, #tpu.memory_space<vmem>>, %arg6: memref<1x64xf32, #tpu.memory_space<vmem>>, %arg7: memref<2x64xf32, #tpu.memory_space<vmem>>) attributes {dimension_semantics = [#tpu.dimension_semantics<arbitrary>], iteration_bounds = array<i64: 1>, scalar_prefetch = 0 : i64, scratch_operands = 0 : i64, tpu.core_type = #tpu.core_type<tc>, window_params = [{pipeline_mode = #tpu.pipeline_mode<synchronous>, transform_indices = @transform_0, window_bounds = array<i64: 32, 576>}, {pipeline_mode = #tpu.pipeline_mode<synchronous>, transform_indices = @transform_1, window_bounds = array<i64: 576, 128>}, {pipeline_mode = #tpu.pipeline_mode<synchronous>, transform_indices = @transform_2, window_bounds = array<i64: 16, 128, 128>}, {pipeline_mode = #tpu.pipeline_mode<synchronous>, transform_indices = @transform_3, window_bounds = array<i64: 1, 128>}, {pipeline_mode = #tpu.pipeline_mode<synchronous>, transform_indices = @transform_4, window_bounds = array<i64: 128, 64>}, {pipeline_mode = #tpu.pipeline_mode<synchronous>, transform_indices = @transform_5, window_bounds = array<i64: 1, 64>}, {pipeline_mode = #tpu.pipeline_mode<synchronous>, transform_indices = @transform_6, window_bounds = array<i64: 2, 64>}]} {
    %c0 = arith.constant 0 : index
    %c0_0 = arith.constant 0 : index
    %0 = vector.load %arg1[%c0, %c0_0] : memref<32x576xbf16, #tpu.memory_space<vmem>>, vector<32x576xbf16>
    %c0_1 = arith.constant 0 : index
    %c0_2 = arith.constant 0 : index
    %1 = vector.load %arg2[%c0_1, %c0_2] : memref<576x128xbf16, #tpu.memory_space<vmem>>, vector<576x128xbf16>
    %cst = arith.constant dense<0.000000e+00> : vector<32x128xf32>
    %2 = tpu.matmul %0, %1, %cst {dimension_numbers = #tpu.dot_dimension_numbers<[1], [0], [0], [1], [0, 0, 1, 1], [], []>} : vector<32x576xbf16>, vector<576x128xbf16>, vector<32x128xf32> -> vector<32x128xf32>
    %cst_3 = arith.constant dense<0.000000e+00> : vector<128xf32>
    %3 = vector.multi_reduction <add>, %2, %cst_3 [0] : vector<32x128xf32> to vector<128xf32>
    %4 = vector.shape_cast %3 : vector<128xf32> to vector<1x128xf32>
    %5 = arith.mulf %2, %2 : vector<32x128xf32>
    %cst_4 = arith.constant dense<0.000000e+00> : vector<128xf32>
    %6 = vector.multi_reduction <add>, %5, %cst_4 [0] : vector<32x128xf32> to vector<128xf32>
    %7 = vector.shape_cast %6 : vector<128xf32> to vector<1x128xf32>
    %cst_5 = arith.constant 3.125000e-02 : f32
    %8 = vector.broadcast %cst_5 : f32 to vector<1x128xf32>
    %9 = arith.mulf %4, %8 : vector<1x128xf32>
    %cst_6 = arith.constant 3.125000e-02 : f32
    %10 = vector.broadcast %cst_6 : f32 to vector<1x128xf32>
    %11 = arith.mulf %7, %10 : vector<1x128xf32>
    %12 = arith.mulf %9, %9 : vector<1x128xf32>
    %13 = arith.subf %11, %12 : vector<1x128xf32>
    %14 = vector.broadcast %9 : vector<1x128xf32> to vector<32x128xf32>
    %15 = arith.subf %2, %14 : vector<32x128xf32>
    %cst_7 = arith.constant 9.99999974E-6 : f32
    %16 = vector.broadcast %cst_7 : f32 to vector<1x128xf32>
    %17 = arith.addf %13, %16 : vector<1x128xf32>
    %18 = math.rsqrt %17 : vector<1x128xf32>
    %19 = vector.broadcast %18 : vector<1x128xf32> to vector<32x128xf32>
    %20 = arith.mulf %15, %19 : vector<32x128xf32>
    %cst_8 = arith.constant 0.000000e+00 : f32
    %21 = vector.broadcast %cst_8 : f32 to vector<32x128xf32>
    %22 = arith.maximumf %20, %21 : vector<32x128xf32>
    %23 = arith.truncf %22 : vector<32x128xf32> to vector<32x128xbf16>
    %24 = vector.extract_strided_slice %23 {offsets = [0, 0], sizes = [2, 128], strides = [1, 1]} : vector<32x128xbf16> to vector<2x128xbf16>
    %c0_9 = arith.constant 0 : index
    %c0_10 = arith.constant 0 : index
    %c0_11 = arith.constant 0 : index
    %25 = vector.load %arg3[%c0_9, %c0_10, %c0_11] : memref<16x128x128xbf16, #tpu.memory_space<vmem>>, vector<1x128x128xbf16>
    %26 = vector.shape_cast %25 : vector<1x128x128xbf16> to vector<128x128xbf16>
    %cst_12 = arith.constant dense<0.000000e+00> : vector<2x128xf32>
    %27 = tpu.matmul %24, %26, %cst_12 {dimension_numbers = #tpu.dot_dimension_numbers<[1], [0], [0], [1], [0, 0, 1, 1], [], []>} : vector<2x128xbf16>, vector<128x128xbf16>, vector<2x128xf32> -> vector<2x128xf32>
    %28 = vector.extract_strided_slice %23 {offsets = [2, 0], sizes = [2, 128], strides = [1, 1]} : vector<32x128xbf16> to vector<2x128xbf16>
    %c1 = arith.constant 1 : index
    %c0_13 = arith.constant 0 : index
    %c0_14 = arith.constant 0 : index
    %29 = vector.load %arg3[%c1, %c0_13, %c0_14] : memref<16x128x128xbf16, #tpu.memory_space<vmem>>, vector<1x128x128xbf16>
    %30 = vector.shape_cast %29 : vector<1x128x128xbf16> to vector<128x128xbf16>
    %cst_15 = arith.constant dense<0.000000e+00> : vector<2x128xf32>
    %31 = tpu.matmul %28, %30, %cst_15 {dimension_numbers = #tpu.dot_dimension_numbers<[1], [0], [0], [1], [0, 0, 1, 1], [], []>} : vector<2x128xbf16>, vector<128x128xbf16>, vector<2x128xf32> -> vector<2x128xf32>
    %32 = arith.addf %27, %31 : vector<2x128xf32>
    %33 = vector.extract_strided_slice %23 {offsets = [4, 0], sizes = [2, 128], strides = [1, 1]} : vector<32x128xbf16> to vector<2x128xbf16>
    %c2 = arith.constant 2 : index
    %c0_16 = arith.constant 0 : index
    %c0_17 = arith.constant 0 : index
    %34 = vector.load %arg3[%c2, %c0_16, %c0_17] : memref<16x128x128xbf16, #tpu.memory_space<vmem>>, vector<1x128x128xbf16>
    %35 = vector.shape_cast %34 : vector<1x128x128xbf16> to vector<128x128xbf16>
    %cst_18 = arith.constant dense<0.000000e+00> : vector<2x128xf32>
    %36 = tpu.matmul %33, %35, %cst_18 {dimension_numbers = #tpu.dot_dimension_numbers<[1], [0], [0], [1], [0, 0, 1, 1], [], []>} : vector<2x128xbf16>, vector<128x128xbf16>, vector<2x128xf32> -> vector<2x128xf32>
    %37 = arith.addf %32, %36 : vector<2x128xf32>
    %38 = vector.extract_strided_slice %23 {offsets = [6, 0], sizes = [2, 128], strides = [1, 1]} : vector<32x128xbf16> to vector<2x128xbf16>
    %c3 = arith.constant 3 : index
    %c0_19 = arith.constant 0 : index
    %c0_20 = arith.constant 0 : index
    %39 = vector.load %arg3[%c3, %c0_19, %c0_20] : memref<16x128x128xbf16, #tpu.memory_space<vmem>>, vector<1x128x128xbf16>
    %40 = vector.shape_cast %39 : vector<1x128x128xbf16> to vector<128x128xbf16>
    %cst_21 = arith.constant dense<0.000000e+00> : vector<2x128xf32>
    %41 = tpu.matmul %38, %40, %cst_21 {dimension_numbers = #tpu.dot_dimension_numbers<[1], [0], [0], [1], [0, 0, 1, 1], [], []>} : vector<2x128xbf16>, vector<128x128xbf16>, vector<2x128xf32> -> vector<2x128xf32>
    %42 = arith.addf %37, %41 : vector<2x128xf32>
    %43 = vector.extract_strided_slice %23 {offsets = [8, 0], sizes = [2, 128], strides = [1, 1]} : vector<32x128xbf16> to vector<2x128xbf16>
    %c4 = arith.constant 4 : index
    %c0_22 = arith.constant 0 : index
    %c0_23 = arith.constant 0 : index
    %44 = vector.load %arg3[%c4, %c0_22, %c0_23] : memref<16x128x128xbf16, #tpu.memory_space<vmem>>, vector<1x128x128xbf16>
    %45 = vector.shape_cast %44 : vector<1x128x128xbf16> to vector<128x128xbf16>
    %cst_24 = arith.constant dense<0.000000e+00> : vector<2x128xf32>
    %46 = tpu.matmul %43, %45, %cst_24 {dimension_numbers = #tpu.dot_dimension_numbers<[1], [0], [0], [1], [0, 0, 1, 1], [], []>} : vector<2x128xbf16>, vector<128x128xbf16>, vector<2x128xf32> -> vector<2x128xf32>
    %47 = arith.addf %42, %46 : vector<2x128xf32>
    %48 = vector.extract_strided_slice %23 {offsets = [10, 0], sizes = [2, 128], strides = [1, 1]} : vector<32x128xbf16> to vector<2x128xbf16>
    %c5 = arith.constant 5 : index
    %c0_25 = arith.constant 0 : index
    %c0_26 = arith.constant 0 : index
    %49 = vector.load %arg3[%c5, %c0_25, %c0_26] : memref<16x128x128xbf16, #tpu.memory_space<vmem>>, vector<1x128x128xbf16>
    %50 = vector.shape_cast %49 : vector<1x128x128xbf16> to vector<128x128xbf16>
    %cst_27 = arith.constant dense<0.000000e+00> : vector<2x128xf32>
    %51 = tpu.matmul %48, %50, %cst_27 {dimension_numbers = #tpu.dot_dimension_numbers<[1], [0], [0], [1], [0, 0, 1, 1], [], []>} : vector<2x128xbf16>, vector<128x128xbf16>, vector<2x128xf32> -> vector<2x128xf32>
    %52 = arith.addf %47, %51 : vector<2x128xf32>
    %53 = vector.extract_strided_slice %23 {offsets = [12, 0], sizes = [2, 128], strides = [1, 1]} : vector<32x128xbf16> to vector<2x128xbf16>
    %c6 = arith.constant 6 : index
    %c0_28 = arith.constant 0 : index
    %c0_29 = arith.constant 0 : index
    %54 = vector.load %arg3[%c6, %c0_28, %c0_29] : memref<16x128x128xbf16, #tpu.memory_space<vmem>>, vector<1x128x128xbf16>
    %55 = vector.shape_cast %54 : vector<1x128x128xbf16> to vector<128x128xbf16>
    %cst_30 = arith.constant dense<0.000000e+00> : vector<2x128xf32>
    %56 = tpu.matmul %53, %55, %cst_30 {dimension_numbers = #tpu.dot_dimension_numbers<[1], [0], [0], [1], [0, 0, 1, 1], [], []>} : vector<2x128xbf16>, vector<128x128xbf16>, vector<2x128xf32> -> vector<2x128xf32>
    %57 = arith.addf %52, %56 : vector<2x128xf32>
    %58 = vector.extract_strided_slice %23 {offsets = [14, 0], sizes = [2, 128], strides = [1, 1]} : vector<32x128xbf16> to vector<2x128xbf16>
    %c7 = arith.constant 7 : index
    %c0_31 = arith.constant 0 : index
    %c0_32 = arith.constant 0 : index
    %59 = vector.load %arg3[%c7, %c0_31, %c0_32] : memref<16x128x128xbf16, #tpu.memory_space<vmem>>, vector<1x128x128xbf16>
    %60 = vector.shape_cast %59 : vector<1x128x128xbf16> to vector<128x128xbf16>
    %cst_33 = arith.constant dense<0.000000e+00> : vector<2x128xf32>
    %61 = tpu.matmul %58, %60, %cst_33 {dimension_numbers = #tpu.dot_dimension_numbers<[1], [0], [0], [1], [0, 0, 1, 1], [], []>} : vector<2x128xbf16>, vector<128x128xbf16>, vector<2x128xf32> -> vector<2x128xf32>
    %62 = arith.addf %57, %61 : vector<2x128xf32>
    %63 = vector.extract_strided_slice %23 {offsets = [16, 0], sizes = [2, 128], strides = [1, 1]} : vector<32x128xbf16> to vector<2x128xbf16>
    %c8 = arith.constant 8 : index
    %c0_34 = arith.constant 0 : index
    %c0_35 = arith.constant 0 : index
    %64 = vector.load %arg3[%c8, %c0_34, %c0_35] : memref<16x128x128xbf16, #tpu.memory_space<vmem>>, vector<1x128x128xbf16>
    %65 = vector.shape_cast %64 : vector<1x128x128xbf16> to vector<128x128xbf16>
    %cst_36 = arith.constant dense<0.000000e+00> : vector<2x128xf32>
    %66 = tpu.matmul %63, %65, %cst_36 {dimension_numbers = #tpu.dot_dimension_numbers<[1], [0], [0], [1], [0, 0, 1, 1], [], []>} : vector<2x128xbf16>, vector<128x128xbf16>, vector<2x128xf32> -> vector<2x128xf32>
    %67 = arith.addf %62, %66 : vector<2x128xf32>
    %68 = vector.extract_strided_slice %23 {offsets = [18, 0], sizes = [2, 128], strides = [1, 1]} : vector<32x128xbf16> to vector<2x128xbf16>
    %c9 = arith.constant 9 : index
    %c0_37 = arith.constant 0 : index
    %c0_38 = arith.constant 0 : index
    %69 = vector.load %arg3[%c9, %c0_37, %c0_38] : memref<16x128x128xbf16, #tpu.memory_space<vmem>>, vector<1x128x128xbf16>
    %70 = vector.shape_cast %69 : vector<1x128x128xbf16> to vector<128x128xbf16>
    %cst_39 = arith.constant dense<0.000000e+00> : vector<2x128xf32>
    %71 = tpu.matmul %68, %70, %cst_39 {dimension_numbers = #tpu.dot_dimension_numbers<[1], [0], [0], [1], [0, 0, 1, 1], [], []>} : vector<2x128xbf16>, vector<128x128xbf16>, vector<2x128xf32> -> vector<2x128xf32>
    %72 = arith.addf %67, %71 : vector<2x128xf32>
    %73 = vector.extract_strided_slice %23 {offsets = [20, 0], sizes = [2, 128], strides = [1, 1]} : vector<32x128xbf16> to vector<2x128xbf16>
    %c10 = arith.constant 10 : index
    %c0_40 = arith.constant 0 : index
    %c0_41 = arith.constant 0 : index
    %74 = vector.load %arg3[%c10, %c0_40, %c0_41] : memref<16x128x128xbf16, #tpu.memory_space<vmem>>, vector<1x128x128xbf16>
    %75 = vector.shape_cast %74 : vector<1x128x128xbf16> to vector<128x128xbf16>
    %cst_42 = arith.constant dense<0.000000e+00> : vector<2x128xf32>
    %76 = tpu.matmul %73, %75, %cst_42 {dimension_numbers = #tpu.dot_dimension_numbers<[1], [0], [0], [1], [0, 0, 1, 1], [], []>} : vector<2x128xbf16>, vector<128x128xbf16>, vector<2x128xf32> -> vector<2x128xf32>
    %77 = arith.addf %72, %76 : vector<2x128xf32>
    %78 = vector.extract_strided_slice %23 {offsets = [22, 0], sizes = [2, 128], strides = [1, 1]} : vector<32x128xbf16> to vector<2x128xbf16>
    %c11 = arith.constant 11 : index
    %c0_43 = arith.constant 0 : index
    %c0_44 = arith.constant 0 : index
    %79 = vector.load %arg3[%c11, %c0_43, %c0_44] : memref<16x128x128xbf16, #tpu.memory_space<vmem>>, vector<1x128x128xbf16>
    %80 = vector.shape_cast %79 : vector<1x128x128xbf16> to vector<128x128xbf16>
    %cst_45 = arith.constant dense<0.000000e+00> : vector<2x128xf32>
    %81 = tpu.matmul %78, %80, %cst_45 {dimension_numbers = #tpu.dot_dimension_numbers<[1], [0], [0], [1], [0, 0, 1, 1], [], []>} : vector<2x128xbf16>, vector<128x128xbf16>, vector<2x128xf32> -> vector<2x128xf32>
    %82 = arith.addf %77, %81 : vector<2x128xf32>
    %83 = vector.extract_strided_slice %23 {offsets = [24, 0], sizes = [2, 128], strides = [1, 1]} : vector<32x128xbf16> to vector<2x128xbf16>
    %c12 = arith.constant 12 : index
    %c0_46 = arith.constant 0 : index
    %c0_47 = arith.constant 0 : index
    %84 = vector.load %arg3[%c12, %c0_46, %c0_47] : memref<16x128x128xbf16, #tpu.memory_space<vmem>>, vector<1x128x128xbf16>
    %85 = vector.shape_cast %84 : vector<1x128x128xbf16> to vector<128x128xbf16>
    %cst_48 = arith.constant dense<0.000000e+00> : vector<2x128xf32>
    %86 = tpu.matmul %83, %85, %cst_48 {dimension_numbers = #tpu.dot_dimension_numbers<[1], [0], [0], [1], [0, 0, 1, 1], [], []>} : vector<2x128xbf16>, vector<128x128xbf16>, vector<2x128xf32> -> vector<2x128xf32>
    %87 = arith.addf %82, %86 : vector<2x128xf32>
    %88 = vector.extract_strided_slice %23 {offsets = [26, 0], sizes = [2, 128], strides = [1, 1]} : vector<32x128xbf16> to vector<2x128xbf16>
    %c13 = arith.constant 13 : index
    %c0_49 = arith.constant 0 : index
    %c0_50 = arith.constant 0 : index
    %89 = vector.load %arg3[%c13, %c0_49, %c0_50] : memref<16x128x128xbf16, #tpu.memory_space<vmem>>, vector<1x128x128xbf16>
    %90 = vector.shape_cast %89 : vector<1x128x128xbf16> to vector<128x128xbf16>
    %cst_51 = arith.constant dense<0.000000e+00> : vector<2x128xf32>
    %91 = tpu.matmul %88, %90, %cst_51 {dimension_numbers = #tpu.dot_dimension_numbers<[1], [0], [0], [1], [0, 0, 1, 1], [], []>} : vector<2x128xbf16>, vector<128x128xbf16>, vector<2x128xf32> -> vector<2x128xf32>
    %92 = arith.addf %87, %91 : vector<2x128xf32>
    %93 = vector.extract_strided_slice %23 {offsets = [28, 0], sizes = [2, 128], strides = [1, 1]} : vector<32x128xbf16> to vector<2x128xbf16>
    %c14 = arith.constant 14 : index
    %c0_52 = arith.constant 0 : index
    %c0_53 = arith.constant 0 : index
    %94 = vector.load %arg3[%c14, %c0_52, %c0_53] : memref<16x128x128xbf16, #tpu.memory_space<vmem>>, vector<1x128x128xbf16>
    %95 = vector.shape_cast %94 : vector<1x128x128xbf16> to vector<128x128xbf16>
    %cst_54 = arith.constant dense<0.000000e+00> : vector<2x128xf32>
    %96 = tpu.matmul %93, %95, %cst_54 {dimension_numbers = #tpu.dot_dimension_numbers<[1], [0], [0], [1], [0, 0, 1, 1], [], []>} : vector<2x128xbf16>, vector<128x128xbf16>, vector<2x128xf32> -> vector<2x128xf32>
    %97 = arith.addf %92, %96 : vector<2x128xf32>
    %98 = vector.extract_strided_slice %23 {offsets = [30, 0], sizes = [2, 128], strides = [1, 1]} : vector<32x128xbf16> to vector<2x128xbf16>
    %c15 = arith.constant 15 : index
    %c0_55 = arith.constant 0 : index
    %c0_56 = arith.constant 0 : index
    %99 = vector.load %arg3[%c15, %c0_55, %c0_56] : memref<16x128x128xbf16, #tpu.memory_space<vmem>>, vector<1x128x128xbf16>
    %100 = vector.shape_cast %99 : vector<1x128x128xbf16> to vector<128x128xbf16>
    %cst_57 = arith.constant dense<0.000000e+00> : vector<2x128xf32>
    %101 = tpu.matmul %98, %100, %cst_57 {dimension_numbers = #tpu.dot_dimension_numbers<[1], [0], [0], [1], [0, 0, 1, 1], [], []>} : vector<2x128xbf16>, vector<128x128xbf16>, vector<2x128xf32> -> vector<2x128xf32>
    %102 = arith.addf %97, %101 : vector<2x128xf32>
    %c0_58 = arith.constant 0 : index
    %c0_59 = arith.constant 0 : index
    %103 = vector.load %arg4[%c0_58, %c0_59] : memref<1x128xf32, #tpu.memory_space<vmem>>, vector<1x128xf32>
    %104 = vector.broadcast %103 : vector<1x128xf32> to vector<2x128xf32>
    %105 = arith.addf %102, %104 : vector<2x128xf32>
    %cst_60 = arith.constant 0.000000e+00 : f32
    %106 = vector.broadcast %cst_60 : f32 to vector<2x128xf32>
    %107 = arith.maximumf %105, %106 : vector<2x128xf32>
    %108 = arith.truncf %107 : vector<2x128xf32> to vector<2x128xbf16>
    %c0_61 = arith.constant 0 : index
    %c0_62 = arith.constant 0 : index
    %109 = vector.load %arg5[%c0_61, %c0_62] : memref<128x64xbf16, #tpu.memory_space<vmem>>, vector<128x64xbf16>
    %cst_63 = arith.constant dense<0.000000e+00> : vector<2x64xf32>
    %110 = tpu.matmul %108, %109, %cst_63 {dimension_numbers = #tpu.dot_dimension_numbers<[1], [0], [0], [1], [0, 0, 1, 1], [], []>} : vector<2x128xbf16>, vector<128x64xbf16>, vector<2x64xf32> -> vector<2x64xf32>
    %c0_64 = arith.constant 0 : index
    %c0_65 = arith.constant 0 : index
    %111 = vector.load %arg6[%c0_64, %c0_65] : memref<1x64xf32, #tpu.memory_space<vmem>>, vector<1x64xf32>
    %112 = vector.broadcast %111 : vector<1x64xf32> to vector<2x64xf32>
    %113 = arith.addf %110, %112 : vector<2x64xf32>
    %cst_66 = arith.constant 0.000000e+00 : f32
    %114 = vector.broadcast %cst_66 : f32 to vector<2x64xf32>
    %115 = arith.maximumf %113, %114 : vector<2x64xf32>
    %c0_67 = arith.constant 0 : index
    %c0_68 = arith.constant 0 : index
    %116 = vector.load %arg7[%c0_67, %c0_68] : memref<2x64xf32, #tpu.memory_space<vmem>>, vector<2x64xf32>
    tpu.vector_store %arg7[%c0_67, %c0_68], %115 {strides = array<i32>} : memref<2x64xf32, #tpu.memory_space<vmem>>, vector<2x64xf32>,
    return
  }
  func.func @transform_0(%arg0: i32) -> (i32, i32) {
    %c0_i32 = arith.constant 0 : i32
    %c0_i32_0 = arith.constant 0 : i32
    %c0_i32_1 = arith.constant 0 : i32
    return %c0_i32, %c0_i32_0 : i32, i32
  }
  func.func @transform_1(%arg0: i32) -> (i32, i32) {
    %c0_i32 = arith.constant 0 : i32
    %c0_i32_0 = arith.constant 0 : i32
    %c0_i32_1 = arith.constant 0 : i32
    return %c0_i32, %c0_i32_0 : i32, i32
  }
  func.func @transform_2(%arg0: i32) -> (i32, i32, i32) {
    %c0_i32 = arith.constant 0 : i32
    %c0_i32_0 = arith.constant 0 : i32
    %c0_i32_1 = arith.constant 0 : i32
    %c0_i32_2 = arith.constant 0 : i32
    return %c0_i32, %c0_i32_0, %c0_i32_1 : i32, i32, i32
  }
  func.func @transform_3(%arg0: i32) -> (i32, i32) {
    %c0_i32 = arith.constant 0 : i32
    %c0_i32_0 = arith.constant 0 : i32
    %c0_i32_1 = arith.constant 0 : i32
    return %c0_i32, %c0_i32_0 : i32, i32
  }
  func.func @transform_4(%arg0: i32) -> (i32, i32) {
    %c0_i32 = arith.constant 0 : i32
    %c0_i32_0 = arith.constant 0 : i32
    %c0_i32_1 = arith.constant 0 : i32
    return %c0_i32, %c0_i32_0 : i32, i32
  }
  func.func @transform_5(%arg0: i32) -> (i32, i32) {
    %c0_i32 = arith.constant 0 : i32
    %c0_i32_0 = arith.constant 0 : i32
    %c0_i32_1 = arith.constant 0 : i32
    return %c0_i32, %c0_i32_0 : i32, i32
  }
  func.func @transform_6(%arg0: i32) -> (i32, i32) {
    %c0_i32 = arith.constant 0 : i32
    %c0_i32_0 = arith.constant 0 : i32
    %c0_i32_1 = arith.constant 0 : i32
    return %c0_i32, %c0_i32_0 : i32, i32
  }
}

</mosaic_0001>

<bundles_post_ra>
// kernel: cnn_forward.3
= control target key start
LH: loop header
LB: loop body
LE: loop exit
PB: predicated region body
PF: predicated region fallthrough
CT: control target
= control target key end

     0   :  { %v2459_v0 = vmov 0   ;;  %vm443_vm0 = vcmask 154624   ;;  %vm540_vm1 = vcmask 1040384   ;;  %vm541_vm2 = vcmask 1041408   ;;  %s3518_s1 = inlined_call_operand.vmem [shape: bf16[147,32], index: 1, kind: input, shape index: {}]   ;;  %s3519_s0 = inlined_call_operand.vmem [shape: bf16[512,147], index: 0, kind: input, shape index: {}]   ;;  %s3520_s2 = inlined_call_operand.vmem [shape: bf16[128,512], index: 2, kind: input, shape index: {}]   ;;  %s3521_s3 = inlined_call_operand.vmem [shape: bf16[128,32], index: 3, kind: output, shape index: {}]  }
   0x1   :  { %547 = vmatprep.subr.bf16.mxu0 %v2459_v0  ;;  %2281 = vmatprep.subr.bf16.mxu1 %v2459_v0  ;;  %v2303_v1 = vld [vmem:[%s3518_s1] sm:$0xff]   ;;  %v2304_v2 = vld [vmem:[%s3518_s1 + $0x8] sm:$0xff]   ;;  %v2305_v3 = vld [vmem:[%s3518_s1 + $0x10] sm:$0xff]   ;;  %v2460_v11 = vmov 65535   ;;  %vm836_vm3 = vcmask 261120   ;;  %vm1962_vm5 = vcmask 257024  }
   0x2   :  { %548 = vmatpush1.bf16.msra.mxu0 %v2303_v1  ;;  %2291 = vmatpush1.bf16.msra.mxu1 %v2303_v1  ;;  %v2306_v4 = vld [vmem:[%s3518_s1 + $0x18] sm:$0xff]   ;;  %v2315_v5 = vld [vmem:[%s3519_s0 + $0x4] ss:$8 sps:$4 sm:$0xff]   ;;  %v2309_v9 = vld [vmem:[%s3518_s1 + $0x30] sm:$0xff]   ;;  %v542_v12 = vsel %vm540_vm1, 4294967295, %v2460_v11 }
   0x3   :  { %549 = vmatprep.subr.bf16.mxu0 %v2459_v0  ;;  %2282 = vmatprep.subr.bf16.mxu1 %v2459_v0  ;;  %v2318_v6 = vld [vmem:[%s3519_s0 + $0x184] ss:$8 sps:$4 sm:$0xff]   ;;  %v2310_v10 = vld [vmem:[%s3518_s1 + $0x38] sm:$0xff]   ;;  %v2312_v14 = vld [vmem:[%s3518_s1 + $0x48] ss:$0 sps:$4 sm:$0x33]  }
   0x4   :  { %2057 = vmatprep.mubr.msk.bf16.mxu0 %vm443_vm0, %v2315_v5  ;;  %v2307_v7 = vld [vmem:[%s3518_s1 + $0x20] sm:$0xff]   ;;  %2081 = vmatprep.mubr.msk.bf16.mxu1 %vm443_vm0, %v2318_v6  ;;  %v2308_v8 = vld [vmem:[%s3518_s1 + $0x28] sm:$0xff]   ;;  %v543_v15 = vsel %vm541_vm2, %v542_v12, 0  ;;  %v2319_v19 = vld [vmem:[%s3519_s0 + $0x14] ss:$8 sps:$4 sm:$0xff]  }
   0x5   :  { %v2311_v13 = vld [vmem:[%s3518_s1 + $0x40] sm:$0xff]   ;;  %v545_v16 = vand.u32 %v2312_v14, %v543_v15  ;;  %v2321_v20 = vld [vmem:[%s3519_s0 + $0x194] ss:$8 sps:$4 sm:$0xff]   ;;  %v2323_v21 = vld [vmem:[%s3519_s0 + $0x10] ss:$8 sps:$4 sm:$0xff]   ;;  %v1235_v15 = vlaneseq }
   0x6   :  { %550 = vmatpush1.bf16.msra.mxu0 %v2304_v2  ;;  %2292 = vmatpush1.bf16.msra.mxu1 %v2304_v2  ;;  %v2313_v17 = vld [vmem:[%s3519_s0] ss:$8 sps:$4 sm:$0xff]   ;;  %v2324_v22 = vld [vmem:[%s3519_s0 + $0x190] ss:$8 sps:$4 sm:$0xff]   ;;  %v2325_v23 = vld [vmem:[%s3519_s0 + $0x24] ss:$8 sps:$4 sm:$0xff]  }
   0x7   :  { %551 = vmatprep.subr.bf16.mxu0 %v2459_v0  ;;  %2283 = vmatprep.subr.bf16.mxu1 %v2459_v0  ;;  %v2316_v18 = vld [vmem:[%s3519_s0 + $0x180] ss:$8 sps:$4 sm:$0xff]   ;;  %v2327_v24 = vld [vmem:[%s3519_s0 + $0x1a4] ss:$8 sps:$4 sm:$0xff]   ;;  %v2331_v27 = vld [vmem:[%s3519_s0 + $0x34] ss:$8 sps:$4 sm:$0xff]  }
   0x8   :  { %v2329_v25 = vld [vmem:[%s3519_s0 + $0x20] ss:$8 sps:$4 sm:$0xff]   ;;  %v2333_v28 = vld [vmem:[%s3519_s0 + $0x1b4] ss:$8 sps:$4 sm:$0xff]   ;;  %v2335_v29 = vld [vmem:[%s3519_s0 + $0x30] ss:$8 sps:$4 sm:$0xff]  }
   0x9   :  { %v2330_v26 = vld [vmem:[%s3519_s0 + $0x1a0] ss:$8 sps:$4 sm:$0xff]   ;;  %v2336_v30 = vld [vmem:[%s3519_s0 + $0x1b0] ss:$8 sps:$4 sm:$0xff]   ;;  %v2337_v31 = vld [vmem:[%s3519_s0 + $0x44] ss:$8 sps:$4 sm:$0xff]  }
   0xa   :  { %552 = vmatpush1.bf16.msra.mxu0 %v2305_v3  ;;  %2293 = vmatpush1.bf16.msra.mxu1 %v2305_v3  ;;  %v2339_v32 = vld [vmem:[%s3519_s0 + $0x1c4] ss:$8 sps:$4 sm:$0xff]   ;;  %v2341_v33 = vld [vmem:[%s3519_s0 + $0x40] ss:$8 sps:$4 sm:$0xff]   ;;  %v2343_v35 = vld [vmem:[%s3519_s0 + $0x54] ss:$8 sps:$4 sm:$0xff]  }
   0xb   :  { %553 = vmatprep.subr.bf16.mxu0 %v2459_v0  ;;  %2284 = vmatprep.subr.bf16.mxu1 %v2459_v0  ;;  %v2342_v34 = vld [vmem:[%s3519_s0 + $0x1c0] ss:$8 sps:$4 sm:$0xff]   ;;  %v2345_v36 = vld [vmem:[%s3519_s0 + $0x1d4] ss:$8 sps:$4 sm:$0xff]   ;;  %v2347_v37 = vld [vmem:[%s3519_s0 + $0x50] ss:$8 sps:$4 sm:$0xff]  }
   0xc   :  { %v2348_v38 = vld [vmem:[%s3519_s0 + $0x1d0] ss:$8 sps:$4 sm:$0xff]   ;;  %v2349_v39 = vld [vmem:[%s3519_s0 + $0x64] ss:$8 sps:$4 sm:$0xff]   ;;  %v2353_v41 = vld [vmem:[%s3519_s0 + $0x60] ss:$8 sps:$4 sm:$0xff]  }
   0xd   :  { %v2351_v40 = vld [vmem:[%s3519_s0 + $0x1e4] ss:$8 sps:$4 sm:$0xff]   ;;  %v2354_v42 = vld [vmem:[%s3519_s0 + $0x1e0] ss:$8 sps:$4 sm:$0xff]   ;;  %v2355_v43 = vld [vmem:[%s3519_s0 + $0x74] ss:$8 sps:$4 sm:$0xff]  }
   0xe   :  { %554 = vmatpush1.bf16.msra.mxu0 %v2306_v4  ;;  %2294 = vmatpush1.bf16.msra.mxu1 %v2306_v4  ;;  %v2357_v44 = vld [vmem:[%s3519_s0 + $0x1f4] ss:$8 sps:$4 sm:$0xff]   ;;  %v2359_v45 = vld [vmem:[%s3519_s0 + $0x70] ss:$8 sps:$4 sm:$0xff]   ;;  %v2361_v47 = vld [vmem:[%s3519_s0 + $0x84] ss:$8 sps:$4 sm:$0xff]  }
   0xf   :  { %555 = vmatprep.subr.bf16.mxu0 %v2459_v0  ;;  %2285 = vmatprep.subr.bf16.mxu1 %v2459_v0  ;;  %v2360_v46 = vld [vmem:[%s3519_s0 + $0x1f0] ss:$8 sps:$4 sm:$0xff]   ;;  %v2363_v48 = vld [vmem:[%s3519_s0 + $0x80] ss:$8 sps:$4 sm:$0xff]   ;;  %v2364_v49 = vld [vmem:[%s3519_s0 + $0x94] ss:$8 sps:$4 sm:$0xff]  }
  0x10   :  { %v2366_v50 = vld [vmem:[%s3519_s0 + $0x90] ss:$8 sps:$4 sm:$0xff]   ;;  %v2367_v51 = vld [vmem:[%s3519_s0 + $0xa4] ss:$8 sps:$4 sm:$0xff]   ;;  %v2369_v52 = vld [vmem:[%s3519_s0 + $0xa0] ss:$8 sps:$4 sm:$0xff]  }
  0x11   :  { %v2370_v53 = vld [vmem:[%s3519_s0 + $0xb4] ss:$8 sps:$4 sm:$0xff]   ;;  %v2372_v54 = vld [vmem:[%s3519_s0 + $0xb0] ss:$8 sps:$4 sm:$0xff]   ;;  %v2373_v55 = vld [vmem:[%s3519_s0 + $0xc4] ss:$8 sps:$4 sm:$0xff]  }
  0x12   :  { %556 = vmatpush1.bf16.msra.mxu0 %v2307_v7  ;;  %2295 = vmatpush1.bf16.msra.mxu1 %v2307_v7  ;;  %v2375_v56 = vld [vmem:[%s3519_s0 + $0xc0] ss:$8 sps:$4 sm:$0xff]   ;;  %v2376_v57 = vld [vmem:[%s3519_s0 + $0xd4] ss:$8 sps:$4 sm:$0xff]   ;;  %v2378_v58 = vld [vmem:[%s3519_s0 + $0xd0] ss:$8 sps:$4 sm:$0xff]  }
  0x13   :  { %557 = vmatprep.subr.bf16.mxu0 %v2459_v0  ;;  %2286 = vmatprep.subr.bf16.mxu1 %v2459_v0  ;;  %v2379_v59 = vld [vmem:[%s3519_s0 + $0xe4] ss:$8 sps:$4 sm:$0xff]   ;;  %v2381_v60 = vld [vmem:[%s3519_s0 + $0xe0] ss:$8 sps:$4 sm:$0xff]   ;;  %v2382_v61 = vld [vmem:[%s3519_s0 + $0xf4] ss:$8 sps:$4 sm:$0xff]  }
  0x14   :  { %v2384_v62 = vld [vmem:[%s3519_s0 + $0xf0] ss:$8 sps:$4 sm:$0xff]   ;;  %v2385_v63 = vld [vmem:[%s3519_s0 + $0x104] ss:$8 sps:$4 sm:$0xff]   ;;  %v2388_v1 = vld [vmem:[%s3519_s0 + $0x114] ss:$8 sps:$4 sm:$0xff]  }
  0x15   :  { %v2390_v2 = vld [vmem:[%s3519_s0 + $0x110] ss:$8 sps:$4 sm:$0xff]   ;;  %v2391_v3 = vld [vmem:[%s3519_s0 + $0x124] ss:$8 sps:$4 sm:$0xff]   ;;  %v2393_v4 = vld [vmem:[%s3519_s0 + $0x120] ss:$8 sps:$4 sm:$0xff]  }
  0x16   :  { %558 = vmatpush1.bf16.msra.mxu0 %v2308_v8  ;;  %2296 = vmatpush1.bf16.msra.mxu1 %v2308_v8  ;;  %v2394_v5 = vld [vmem:[%s3519_s0 + $0x134] ss:$8 sps:$4 sm:$0xff]   ;;  %v2396_v6 = vld [vmem:[%s3519_s0 + $0x130] ss:$8 sps:$4 sm:$0xff]   ;;  %v2397_v7 = vld [vmem:[%s3519_s0 + $0x144] ss:$8 sps:$4 sm:$0xff]  }
  0x17   :  { %559 = vmatprep.subr.bf16.mxu0 %v2459_v0  ;;  %2287 = vmatprep.subr.bf16.mxu1 %v2459_v0  ;;  %v2399_v8 = vld [vmem:[%s3519_s0 + $0x140] ss:$8 sps:$4 sm:$0xff]   ;;  %v2403_v11 = vld [vmem:[%s3519_s0 + $0x164] ss:$8 sps:$4 sm:$0xff]   ;;  %v2408_v14 = vld [vmem:[%s3519_s0 + $0x170] ss:$8 sps:$4 sm:$0xff]  }
  0x18   :  { %v2405_v12 = vld [vmem:[%s3519_s0 + $0x160] ss:$8 sps:$4 sm:$0xff]  }
  0x1a   :  { %560 = vmatpush1.bf16.msra.mxu0 %v2309_v9  ;;  %2297 = vmatpush1.bf16.msra.mxu1 %v2309_v9  ;;  %v2400_v9 = vld [vmem:[%s3519_s0 + $0x154] ss:$8 sps:$4 sm:$0xff]  }
  0x1b   :  { %561 = vmatprep.subr.bf16.mxu0 %v2459_v0  ;;  %2288 = vmatprep.subr.bf16.mxu1 %v2459_v0 }
  0x1e   :  { %562 = vmatpush1.bf16.msra.mxu0 %v2310_v10  ;;  %2298 = vmatpush1.bf16.msra.mxu1 %v2310_v10  ;;  %v2402_v10 = vld [vmem:[%s3519_s0 + $0x150] ss:$8 sps:$4 sm:$0xff]  }
  0x1f   :  { %563 = vmatprep.subr.bf16.mxu0 %v2459_v0  ;;  %2289 = vmatprep.subr.bf16.mxu1 %v2459_v0 }
  0x22   :  { %564 = vmatpush1.bf16.msra.mxu0 %v2311_v13  ;;  %2299 = vmatpush1.bf16.msra.mxu1 %v2311_v13  ;;  %v2406_v13 = vld [vmem:[%s3519_s0 + $0x174] ss:$8 sps:$4 sm:$0xff]  }
  0x23   :  { %565 = vmatprep.subr.bf16.mxu0 %v2459_v0  ;;  %2290 = vmatprep.subr.bf16.mxu1 %v2459_v0  ;;  %v2387_v0 = vld [vmem:[%s3519_s0 + $0x100] ss:$8 sps:$4 sm:$0xff]  }
  0x26   :  { %566 = vmatpush1.bf16.msra.mxu0 %v545_v16  ;;  %2300 = vmatpush1.bf16.msra.mxu1 %v545_v16  ;;  %v2735_v16 = vshrl.u32 %v1235_v15, 7 }
  0x28   :  { %vm1237_vm4 = vcmp.lt.s32.totalorder %v2735_v16, 7 }
  0x29   :  { %580 = vmatmul.mubr.bf16.vlgmr.msra.gmra.mrb[0].mxu0 %v2313_v17  ;;  %772 = vmatmul.mubr.bf16.vlgmr.msra.gmra.mrb[0].mxu1 %v2316_v18 }
  0x2a   :  { %2058 = vmatprep.mubr.msk.bf16.mxu0 %vm443_vm0, %v2319_v19  ;;  %2082 = vmatprep.mubr.msk.bf16.mxu1 %vm443_vm0, %v2321_v20 }
  0x31   :  { %588 = vmatmul.mubr.bf16.gmra.mrb[4].mxu0 %v2323_v21  ;;  %780 = vmatmul.mubr.bf16.gmra.mrb[4].mxu1 %v2324_v22 }
  0x32   :  { %2059 = vmatprep.mubr.msk.bf16.mxu0 %vm443_vm0, %v2325_v23  ;;  %2083 = vmatprep.mubr.msk.bf16.mxu1 %vm443_vm0, %v2327_v24 }
  0x39   :  { %596 = vmatmul.mubr.bf16.gmra.mrb[8].mxu0 %v2329_v25  ;;  %788 = vmatmul.mubr.bf16.gmra.mrb[8].mxu1 %v2330_v26 }
  0x3a   :  { %2060 = vmatprep.mubr.msk.bf16.mxu0 %vm443_vm0, %v2331_v27  ;;  %2084 = vmatprep.mubr.msk.bf16.mxu1 %vm443_vm0, %v2333_v28 }
  0x41   :  { %604 = vmatmul.mubr.bf16.gmra.mrb[12].mxu0 %v2335_v29  ;;  %796 = vmatmul.mubr.bf16.gmra.mrb[12].mxu1 %v2336_v30 }
  0x42   :  { %2061 = vmatprep.mubr.msk.bf16.mxu0 %vm443_vm0, %v2337_v31  ;;  %2085 = vmatprep.mubr.msk.bf16.mxu1 %vm443_vm0, %v2339_v32 }
  0x49   :  { %612 = vmatmul.mubr.bf16.gmra.mrb[16].mxu0 %v2341_v33  ;;  %804 = vmatmul.mubr.bf16.gmra.mrb[16].mxu1 %v2342_v34 }
  0x4a   :  { %2062 = vmatprep.mubr.msk.bf16.mxu0 %vm443_vm0, %v2343_v35  ;;  %2086 = vmatprep.mubr.msk.bf16.mxu1 %vm443_vm0, %v2345_v36 }
  0x51   :  { %620 = vmatmul.mubr.bf16.gmra.mrb[20].mxu0 %v2347_v37  ;;  %812 = vmatmul.mubr.bf16.gmra.mrb[20].mxu1 %v2348_v38 }
  0x52   :  { %2063 = vmatprep.mubr.msk.bf16.mxu0 %vm443_vm0, %v2349_v39  ;;  %2087 = vmatprep.mubr.msk.bf16.mxu1 %vm443_vm0, %v2351_v40 }
  0x59   :  { %628 = vmatmul.mubr.bf16.gmra.mrb[24].mxu0 %v2353_v41  ;;  %820 = vmatmul.mubr.bf16.gmra.mrb[24].mxu1 %v2354_v42 }
  0x5a   :  { %2064 = vmatprep.mubr.msk.bf16.mxu0 %vm443_vm0, %v2355_v43  ;;  %2088 = vmatprep.mubr.msk.bf16.mxu1 %vm443_vm0, %v2357_v44 }
  0x61   :  { %636 = vmatmul.mubr.bf16.gmra.mrb[28].mxu0 %v2359_v45  ;;  %828 = vmatmul.mubr.bf16.gmra.mrb[28].mxu1 %v2360_v46 }
  0x62   :  { %2065 = vmatprep.mubr.msk.bf16.mxu0 %vm443_vm0, %v2361_v47 }
  0x69   :  { %644 = vmatmul.mubr.bf16.gmra.mrb[32].mxu0 %v2363_v48 }
  0x6a   :  { %2066 = vmatprep.mubr.msk.bf16.mxu0 %vm443_vm0, %v2364_v49 }
  0x71   :  { %652 = vmatmul.mubr.bf16.gmra.mrb[36].mxu0 %v2366_v50 }
  0x72   :  { %2067 = vmatprep.mubr.msk.bf16.mxu0 %vm443_vm0, %v2367_v51 }
  0x79   :  { %660 = vmatmul.mubr.bf16.gmra.mrb[40].mxu0 %v2369_v52 }
  0x7a   :  { %2068 = vmatprep.mubr.msk.bf16.mxu0 %vm443_vm0, %v2370_v53 }
  0x81   :  { %668 = vmatmul.mubr.bf16.gmra.mrb[44].mxu0 %v2372_v54 }
  0x82   :  { %2069 = vmatprep.mubr.msk.bf16.mxu0 %vm443_vm0, %v2373_v55 }
  0x89   :  { %676 = vmatmul.mubr.bf16.gmra.mrb[48].mxu0 %v2375_v56 }
  0x8a   :  { %2070 = vmatprep.mubr.msk.bf16.mxu0 %vm443_vm0, %v2376_v57 }
  0x91   :  { %684 = vmatmul.mubr.bf16.gmra.mrb[52].mxu0 %v2378_v58 }
  0x92   :  { %2071 = vmatprep.mubr.msk.bf16.mxu0 %vm443_vm0, %v2379_v59 }
  0x99   :  { %692 = vmatmul.mubr.bf16.gmra.mrb[56].mxu0 %v2381_v60 }
  0x9a   :  { %2072 = vmatprep.mubr.msk.bf16.mxu0 %vm443_vm0, %v2382_v61 }
  0xa1   :  { %700 = vmatmul.mubr.bf16.gmra.mrb[60].mxu0 %v2384_v62 }
  0xa2   :  { %2073 = vmatprep.mubr.msk.bf16.mxu0 %vm443_vm0, %v2385_v63 }
  0xa9   :  { %708 = vmatmul.mubr.bf16.gmra.mrb[64].mxu0 %v2387_v0 }
  0xaa   :  { %2074 = vmatprep.mubr.msk.bf16.mxu0 %vm443_vm0, %v2388_v1 }
  0xb1   :  { %716 = vmatmul.mubr.bf16.gmra.mrb[68].mxu0 %v2390_v2 }
  0xb2   :  { %2075 = vmatprep.mubr.msk.bf16.mxu0 %vm443_vm0, %v2391_v3 }
  0xb9   :  { %724 = vmatmul.mubr.bf16.gmra.mrb[72].mxu0 %v2393_v4 }
  0xba   :  { %2076 = vmatprep.mubr.msk.bf16.mxu0 %vm443_vm0, %v2394_v5 }
  0xc1   :  { %732 = vmatmul.mubr.bf16.gmra.mrb[76].mxu0 %v2396_v6 }
  0xc2   :  { %2077 = vmatprep.mubr.msk.bf16.mxu0 %vm443_vm0, %v2397_v7 }
  0xc9   :  { %740 = vmatmul.mubr.bf16.gmra.mrb[80].mxu0 %v2399_v8 }
  0xca   :  { %2078 = vmatprep.mubr.msk.bf16.mxu0 %vm443_vm0, %v2400_v9 }
  0xd1   :  { %748 = vmatmul.mubr.bf16.gmra.mrb[84].mxu0 %v2402_v10 }
  0xd2   :  { %2079 = vmatprep.mubr.msk.bf16.mxu0 %vm443_vm0, %v2403_v11 }
  0xd9   :  { %756 = vmatmul.mubr.bf16.gmra.mrb[88].mxu0 %v2405_v12 }
  0xda   :  { %2080 = vmatprep.mubr.msk.bf16.mxu0 %vm443_vm0, %v2406_v13 }
  0xe1   :  { %764 = vmatmul.mubr.bf16.gmra.mrb[92].mxu0 %v2408_v14 }
  0xfc   :  { %v2737_v17 = vpop.f32.mrb[0].mxu0  ;;  %v2739_v18 = vpop.f32.mrb[0].mxu1 }
  0xfd   :  { %v970_v19 = vmul.f32 %v2737_v17, %v2737_v17  ;;  %v583_v20 = vpop.f32.mrb[1].mxu0  ;;  %v775_v21 = vpop.f32.mrb[1].mxu1  ;;  %v837_v22 = vsel %vm836_vm3, %v2737_v17, 0.0  ;;  %v1171_v25 = vrot.slane %v2737_v17, 1  ;;  %v3522_v46 = vrot.slane %v2739_v18, 1 }
  0xfe   :  { %v584_v23 = vpop.f32.mrb[2].mxu0  ;;  %v2746_v24 = vpop.f32.mrb[2].mxu1 }
  0xff   :  { %v838_v26 = vsel %vm836_vm3, %v584_v23, 0.0  ;;  %v971_v27 = vmul.f32 %v584_v23, %v584_v23  ;;  %v1172_v28 = vrot.slane %v584_v23, 1  ;;  %v586_v29 = vpop.f32.mrb[3].mxu0  ;;  %v778_v30 = vpop.f32.mrb[3].mxu1  ;;  %v1034_v32 = vsel %vm836_vm3, %v970_v19, 0.0 }
 0x100   :  { %v839_v31 = vadd.f32 %v838_v26, %v837_v22  ;;  %v1220_v47 = vrot.slane %v2746_v24, 1 }
 0x101   :  { %v1035_v33 = vsel %vm836_vm3, %v971_v27, 0.0  ;;  %v1300_v34 = vsel %vm1237_vm4, %v1171_v25, %v1172_v28 }
 0x102   :  { %v1036_v35 = vadd.f32 %v1035_v33, %v1034_v32  ;;  %v2757_v36 = vmax.f32 %v2737_v17, %v1300_v34  ;;  %v1252_v2 = vsel %vm1237_vm4, %v3522_v46, %v1220_v47 }
 0x103   :  { %v2793_v7 = vmax.f32 %v2739_v18, %v1252_v2 }
 0x104   :  { %v589_v37 = vpop.f32.mrb[4].mxu0  ;;  %v2759_v38 = vpop.f32.mrb[4].mxu1 }
 0x105   :  { %v840_v39 = vsel %vm836_vm3, %v589_v37, 0.0  ;;  %v972_v40 = vmul.f32 %v589_v37, %v589_v37  ;;  %v1173_v41 = vrot.slane %v589_v37, 1  ;;  %v591_v42 = vpop.f32.mrb[5].mxu0  ;;  %v783_v43 = vpop.f32.mrb[5].mxu1  ;;  %v1221_v48 = vrot.slane %v2759_v38, 1 }
 0x106   :  { %v841_v44 = vadd.f32 %v840_v39, %v839_v31  ;;  %v592_v45 = vpop.f32.mrb[6].mxu0  ;;  %v2765_v49 = vpop.f32.mrb[6].mxu1 }
 0x107   :  { %v1037_v50 = vsel %vm836_vm3, %v972_v40, 0.0  ;;  %v1299_v51 = vsel %vm1237_vm4, %v1172_v28, %v1173_v41  ;;  %v842_v52 = vsel %vm836_vm3, %v592_v45, 0.0  ;;  %v973_v53 = vmul.f32 %v592_v45, %v592_v45  ;;  %v594_v54 = vpop.f32.mrb[7].mxu0  ;;  %v786_v55 = vpop.f32.mrb[7].mxu1  ;;  %v2411_v40 = vld [vmem:[%s3520_s2 + $0x4] ss:$16 sps:$4 sm:$0xff]  }
 0x108   :  { %v1038_v56 = vadd.f32 %v1037_v50, %v1036_v35  ;;  %v2771_v57 = vmax.f32 %v584_v23, %v1299_v51  ;;  %v843_v58 = vadd.f32 %v842_v52, %v841_v44  ;;  %v1174_v59 = vrot.slane %v592_v45, 1  ;;  %1686 = vmatprep.mubr.bf16.mxu1 %v2411_v40 }
 0x109   :  { %v1039_v60 = vsel %vm836_vm3, %v973_v53, 0.0  ;;  %v1222_v63 = vrot.slane %v2765_v49, 1  ;;  %v1251_v0 = vsel %vm1237_vm4, %v1220_v47, %v1221_v48 }
 0x10a   :  { %v1040_v61 = vadd.f32 %v1039_v60, %v1038_v56  ;;  %v1298_v62 = vsel %vm1237_vm4, %v1173_v41, %v1174_v59  ;;  %v2786_v3 = vmax.f32 %v2746_v24, %v1251_v0 }
 0x10b   :  { %v2779_v1 = vmax.f32 %v589_v37, %v1298_v62  ;;  %v1250_v6 = vsel %vm1237_vm4, %v1221_v48, %v1222_v63 }
 0x10c   :  { %v597_v4 = vpop.f32.mrb[8].mxu0  ;;  %v2788_v5 = vpop.f32.mrb[8].mxu1  ;;  %v2818_v43 = vmax.f32 %v2759_v38, %v1250_v6 }
 0x10d   :  { %v844_v8 = vsel %vm836_vm3, %v597_v4, 0.0  ;;  %v974_v9 = vmul.f32 %v597_v4, %v597_v4  ;;  %v1175_v10 = vrot.slane %v597_v4, 1  ;;  %v599_v11 = vpop.f32.mrb[9].mxu0  ;;  %v791_v12 = vpop.f32.mrb[9].mxu1  ;;  %v1223_v15 = vrot.slane %v2788_v5, 1 }
 0x10e   :  { %v845_v13 = vadd.f32 %v844_v8, %v843_v58  ;;  %v600_v14 = vpop.f32.mrb[10].mxu0  ;;  %v2797_v19 = vpop.f32.mrb[10].mxu1  ;;  %v1366_v20 = vmax.f32 %v2757_v36, %v2779_v1 }
 0x10f   :  { %v1041_v21 = vsel %vm836_vm3, %v974_v9, 0.0  ;;  %v1297_v22 = vsel %vm1237_vm4, %v1174_v59, %v1175_v10  ;;  %v846_v23 = vsel %vm836_vm3, %v600_v14, 0.0  ;;  %v975_v26 = vmul.f32 %v600_v14, %v600_v14  ;;  %v602_v27 = vpop.f32.mrb[11].mxu0  ;;  %v794_v28 = vpop.f32.mrb[11].mxu1 }
 0x110   :  { %v1042_v29 = vadd.f32 %v1041_v21, %v1040_v61  ;;  %v1305_v30 = vmax.f32 %v592_v45, %v1297_v22  ;;  %v847_v31 = vadd.f32 %v846_v23, %v845_v13  ;;  %v1176_v32 = vrot.slane %v600_v14, 1 }
 0x111   :  { %v1043_v33 = vsel %vm836_vm3, %v975_v26, 0.0  ;;  %v1224_v37 = vrot.slane %v2797_v19, 1  ;;  %v1249_v42 = vsel %vm1237_vm4, %v1222_v63, %v1223_v15  ;;  %v1414_v22 = vmax.f32 %v2793_v7, %v2818_v43 }
 0x112   :  { %v1044_v34 = vadd.f32 %v1043_v33, %v1042_v29  ;;  %v1296_v35 = vsel %vm1237_vm4, %v1175_v10, %v1176_v32  ;;  %v1367_v39 = vmax.f32 %v2771_v57, %v1305_v30  ;;  %v2825_v48 = vmax.f32 %v2765_v49, %v1249_v42 }
 0x113   :  { %v2813_v41 = vmax.f32 %v597_v4, %v1296_v35  ;;  %v1248_v50 = vsel %vm1237_vm4, %v1223_v15, %v1224_v37 }
 0x114   :  { %v605_v44 = vpop.f32.mrb[12].mxu0  ;;  %v2820_v45 = vpop.f32.mrb[12].mxu1  ;;  %v2822_v47 = vpack.c.bf16 %v1367_v39, %v1366_v20  ;;  %v1415_v23 = vmax.f32 %v2786_v3, %v2825_v48  ;;  %v2856_v29 = vmax.f32 %v2788_v5, %v1248_v50 }
 0x115   :  { %v848_v51 = vsel %vm836_vm3, %v605_v44, 0.0  ;;  %v976_v52 = vmul.f32 %v605_v44, %v605_v44  ;;  %v1177_v53 = vrot.slane %v605_v44, 1  ;;  %v607_v54 = vpop.f32.mrb[13].mxu0  ;;  %v799_v55 = vpop.f32.mrb[13].mxu1  ;;  %v1225_v59 = vrot.slane %v2820_v45, 1 }
 0x116   :  { %v849_v56 = vadd.f32 %v848_v51, %v847_v31  ;;  %v608_v58 = vpop.f32.mrb[14].mxu0  ;;  %v2831_v60 = vpop.f32.mrb[14].mxu1  ;;  %v1368_v61 = vmax.f32 %v2779_v1, %v2813_v41 }
 0x117   :  { %v1045_v62 = vsel %vm836_vm3, %v976_v52, 0.0  ;;  %v1295_v63 = vsel %vm1237_vm4, %v1176_v32, %v1177_v53  ;;  %v850_v0 = vsel %vm836_vm3, %v608_v58, 0.0  ;;  %v977_v2 = vmul.f32 %v608_v58, %v608_v58  ;;  %v610_v4 = vpop.f32.mrb[15].mxu0  ;;  %v802_v6 = vpop.f32.mrb[15].mxu1 }
 0x118   :  { %v1046_v8 = vadd.f32 %v1045_v62, %v1044_v34  ;;  %v1307_v9 = vmax.f32 %v600_v14, %v1295_v63  ;;  %v851_v10 = vadd.f32 %v850_v0, %v849_v56  ;;  %v1178_v11 = vrot.slane %v608_v58, 1 }
 0x119   :  { %v1047_v12 = vsel %vm836_vm3, %v977_v2, 0.0  ;;  %v1226_v15 = vrot.slane %v2831_v60, 1  ;;  %v1247_v28 = vsel %vm1237_vm4, %v1224_v37, %v1225_v59  ;;  %v2875_v6 = vpack.c.bf16 %v1415_v23, %v1414_v22 }
 0x11a   :  { %v1048_v13 = vadd.f32 %v1047_v12, %v1046_v8  ;;  %v1294_v1 = vsel %vm1237_vm4, %v1177_v53, %v1178_v11  ;;  %v1369_v20 = vmax.f32 %v1305_v30, %v1307_v9  ;;  %v2878_v8 = vmax.f32 %v2797_v19, %v1247_v28 }
 0x11b   :  { %v2843_v21 = vmax.f32 %v605_v44, %v1294_v1  ;;  %v1246_v30 = vsel %vm1237_vm4, %v1225_v59, %v1226_v15  ;;  %v1416_v12 = vmax.f32 %v2818_v43, %v2856_v29 }
 0x11c   :  { %v613_v14 = vpop.f32.mrb[16].mxu0  ;;  %v2849_v26 = vpop.f32.mrb[16].mxu1  ;;  %v2851_v27 = vpack.c.bf16 %v1369_v20, %v1368_v61 }
 0x11d   :  { %v852_v31 = vsel %vm836_vm3, %v613_v14, 0.0  ;;  %v978_v32 = vmul.f32 %v613_v14, %v613_v14  ;;  %v1179_v33 = vrot.slane %v613_v14, 1  ;;  %v615_v34 = vpop.f32.mrb[17].mxu0  ;;  %v807_v35 = vpop.f32.mrb[17].mxu1  ;;  %v1227_v42 = vrot.slane %v2849_v26, 1 }
 0x11e   :  { %v853_v39 = vadd.f32 %v852_v31, %v851_v10  ;;  %v616_v40 = vpop.f32.mrb[18].mxu0  ;;  %v2862_v44 = vpop.f32.mrb[18].mxu1  ;;  %v1370_v37 = vmax.f32 %v2813_v41, %v2843_v21 }
 0x11f   :  { %v1049_v50 = vsel %vm836_vm3, %v978_v32, 0.0  ;;  %v1293_v51 = vsel %vm1237_vm4, %v1178_v11, %v1179_v33  ;;  %v854_v52 = vsel %vm836_vm3, %v616_v40, 0.0  ;;  %v979_v53 = vmul.f32 %v616_v40, %v616_v40  ;;  %v618_v54 = vpop.f32.mrb[19].mxu0  ;;  %v810_v55 = vpop.f32.mrb[19].mxu1 }
 0x120   :  { %v1050_v56 = vadd.f32 %v1049_v50, %v1048_v13  ;;  %v1309_v59 = vmax.f32 %v608_v58, %v1293_v51  ;;  %v855_v61 = vadd.f32 %v854_v52, %v853_v39  ;;  %v1180_v62 = vrot.slane %v616_v40, 1 }
 0x121   :  { %v1051_v63 = vsel %vm836_vm3, %v979_v53, 0.0  ;;  %v1245_v13 = vsel %vm1237_vm4, %v1226_v15, %v1227_v42  ;;  %v1228_v32 = vrot.slane %v2862_v44, 1 }
 0x122   :  { %v1052_v0 = vadd.f32 %v1051_v63, %v1050_v56  ;;  %v1292_v41 = vsel %vm1237_vm4, %v1179_v33, %v1180_v62  ;;  %v1371_v2 = vmax.f32 %v1307_v9, %v1309_v59  ;;  %v2889_v9 = vmax.f32 %v2820_v45, %v1246_v30 }
 0x123   :  { %v2873_v4 = vmax.f32 %v613_v14, %v1292_v41 }
 0x124   :  { %v621_v10 = vpop.f32.mrb[20].mxu0  ;;  %v2880_v11 = vpop.f32.mrb[20].mxu1  ;;  %v2882_v58 = vpack.c.bf16 %v1371_v2, %v1370_v37  ;;  %v2910_v2 = vmax.f32 %v2831_v60, %v1245_v13 }
 0x125   :  { %v856_v1 = vsel %vm836_vm3, %v621_v10, 0.0  ;;  %v980_v20 = vmul.f32 %v621_v10, %v621_v10  ;;  %v1181_v22 = vrot.slane %v621_v10, 1  ;;  %v623_v23 = vpop.f32.mrb[21].mxu0  ;;  %v815_v14 = vpop.f32.mrb[21].mxu1  ;;  %v3524_v33 = vrot.slane %v2880_v11, 1 }
 0x126   :  { %v857_v28 = vadd.f32 %v856_v1, %v855_v61  ;;  %v624_v31 = vpop.f32.mrb[22].mxu0  ;;  %v2894_v34 = vpop.f32.mrb[22].mxu1  ;;  %v1372_v15 = vmax.f32 %v2843_v21, %v2873_v4 }
 0x127   :  { %v1053_v30 = vsel %vm836_vm3, %v980_v20, 0.0  ;;  %v1291_v35 = vsel %vm1237_vm4, %v1180_v62, %v1181_v22  ;;  %v858_v39 = vsel %vm836_vm3, %v624_v31, 0.0  ;;  %v981_v37 = vmul.f32 %v624_v31, %v624_v31  ;;  %v626_v50 = vpop.f32.mrb[23].mxu0  ;;  %v818_v51 = vpop.f32.mrb[23].mxu1 }
 0x128   :  { %v1054_v52 = vadd.f32 %v1053_v30, %v1052_v0  ;;  %v1311_v53 = vmax.f32 %v616_v40, %v1291_v35  ;;  %v859_v54 = vadd.f32 %v858_v39, %v857_v28  ;;  %v1182_v55 = vrot.slane %v624_v31, 1 }
 0x129   :  { %v1055_v56 = vsel %vm836_vm3, %v981_v37, 0.0  ;;  %v1417_v62 = vmax.f32 %v2825_v48, %v2878_v8  ;;  %v1418_v20 = vmax.f32 %v2856_v29, %v2889_v9  ;;  %v1230_v30 = vrot.slane %v2894_v34, 1 }
 0x12a   :  { %v1056_v61 = vadd.f32 %v1055_v56, %v1054_v52  ;;  %v1290_v21 = vsel %vm1237_vm4, %v1181_v22, %v1182_v55  ;;  %v1373_v63 = vmax.f32 %v1309_v59, %v1311_v53  ;;  %v1243_v59 = vsel %vm1237_vm4, %v1228_v32, %v3524_v33 }
 0x12b   :  { %v2905_v41 = vmax.f32 %v621_v10, %v1290_v21  ;;  %v1244_v10 = vsel %vm1237_vm4, %v1227_v42, %v1228_v32 }
 0x12c   :  { %v629_v1 = vpop.f32.mrb[24].mxu0  ;;  %v2912_v0 = vpop.f32.mrb[24].mxu1  ;;  %v2914_v40 = vpack.c.bf16 %v1373_v63, %v1372_v15 }
 0x12d   :  { %v860_v48 = vsel %vm836_vm3, %v629_v1, 0.0  ;;  %v982_v13 = vmul.f32 %v629_v1, %v629_v1  ;;  %v1183_v22 = vrot.slane %v629_v1, 1  ;;  %v631_v23 = vpop.f32.mrb[25].mxu0  ;;  %v823_v14 = vpop.f32.mrb[25].mxu1  ;;  %v1374_v39 = vmax.f32 %v2873_v4, %v2905_v41 }
 0x12e   :  { %v861_v28 = vadd.f32 %v860_v48, %v859_v54  ;;  %v632_v15 = vpop.f32.mrb[26].mxu0  ;;  %v2926_v35 = vpop.f32.mrb[26].mxu1 }
 0x12f   :  { %3529 = vst [vmem:[#allocation2_spill] sm:$0xff] %v2926_v35  ;;  %v1057_v37 = vsel %vm836_vm3, %v982_v13, 0.0  ;;  %v1289_v42 = vsel %vm1237_vm4, %v1182_v55, %v1183_v22  ;;  %v862_v32 = vsel %vm836_vm3, %v632_v15, 0.0  ;;  %v983_v50 = vmul.f32 %v632_v15, %v632_v15  ;;  %v634_v51 = vpop.f32.mrb[27].mxu0  ;;  %v826_v52 = vpop.f32.mrb[27].mxu1 }
 0x130   :  { %v1058_v56 = vadd.f32 %v1057_v37, %v1056_v61  ;;  %v1313_v54 = vmax.f32 %v624_v31, %v1289_v42  ;;  %v863_v21 = vadd.f32 %v862_v32, %v861_v28  ;;  %v1184_v63 = vrot.slane %v632_v15, 1 }
 0x131   :  { %v1059_v48 = vsel %vm836_vm3, %v983_v50, 0.0  ;;  %v3523_v13 = vrot.slane %v2912_v0, 1  ;;  %v2943_v55 = vpack.c.bf16 %v1417_v62, %v1416_v12  ;;  %v1419_v31 = vmax.f32 %v2878_v8, %v2910_v2 }
 0x132   :  { %v1060_v23 = vadd.f32 %v1059_v48, %v1058_v56  ;;  %v1288_v4 = vsel %vm1237_vm4, %v1183_v22, %v1184_v63  ;;  %v1375_v14 = vmax.f32 %v1311_v53, %v1313_v54  ;;  %v2952_v22 = vmax.f32 %v2849_v26, %v1244_v10 }
 0x133   :  { %v2938_v46 = vmax.f32 %v629_v1, %v1288_v4  ;;  %v2955_v53 = vmax.f32 %v2862_v44, %v1243_v59  ;;  %v1241_v43 = vsel %vm1237_vm4, %v1230_v30, %v3523_v13  ;;  %v2973_v33 = vpack.c.bf16 %v1419_v31, %v1418_v20 }
 0x134   :  { %v637_v61 = vpop.f32.mrb[28].mxu0  ;;  %v2947_v28 = vpop.f32.mrb[28].mxu1  ;;  %v2949_v37 = vpack.c.bf16 %v1375_v14, %v1374_v39 }
 0x135   :  { %v864_v29 = vsel %vm836_vm3, %v637_v61, 0.0  ;;  %v984_v12 = vmul.f32 %v637_v61, %v637_v61  ;;  %v1185_v8 = vrot.slane %v637_v61, 1  ;;  %v639_v62 = vpop.f32.mrb[29].mxu0  ;;  %v831_v1 = vpop.f32.mrb[29].mxu1  ;;  %v1376_v10 = vmax.f32 %v2905_v41, %v2938_v46 }
 0x136   :  { %v865_v42 = vadd.f32 %v864_v29, %v863_v21  ;;  %v640_v39 = vpop.f32.mrb[30].mxu0  ;;  %v2962_v32 = vpop.f32.mrb[30].mxu1  ;;  %v1232_v21 = vrot.slane %v2926_v35, 1 }
 0x137   :  { %3530 = vst [vmem:[#allocation3_spill] sm:$0xff] %v2962_v32  ;;  %v1061_v59 = vsel %vm836_vm3, %v984_v12, 0.0  ;;  %v1287_v50 = vsel %vm1237_vm4, %v1184_v63, %v1185_v8  ;;  %v866_v51 = vsel %vm836_vm3, %v640_v39, 0.0  ;;  %v985_v52 = vmul.f32 %v640_v39, %v640_v39  ;;  %v642_v56 = vpop.f32.mrb[31].mxu0  ;;  %v834_v48 = vpop.f32.mrb[31].mxu1 }
 0x138   :  { %v1062_v4 = vadd.f32 %v1061_v59, %v1060_v23  ;;  %v1315_v14 = vmax.f32 %v632_v15, %v1287_v50  ;;  %v867_v62 = vadd.f32 %v866_v51, %v865_v42  ;;  %v1186_v1 = vrot.slane %v640_v39, 1 }
 0x139   :  { %v1063_v29 = vsel %vm836_vm3, %v985_v52, 0.0  ;;  %v1234_v41 = vrot.slane %v2962_v32, 1  ;;  %v1233_v63 = vrot.slane %v2947_v28, 1  ;;  %v1420_v15 = vmax.f32 %v2889_v9, %v2952_v22 }
 0x13a   :  { %v1064_v13 = vadd.f32 %v1063_v29, %v1062_v4  ;;  %v1377_v12 = vmax.f32 %v1313_v54, %v1315_v14  ;;  %v1286_v56 = vsel %vm1237_vm4, %v1185_v8, %v1186_v1  ;;  %v1421_v23 = vmax.f32 %v2910_v2, %v2955_v53 }
 0x13b   :  { %v2982_v42 = vmax.f32 %v637_v61, %v1286_v56  ;;  %v1301_v54 = vsel %vm1237_vm4, %v1234_v41, %v1171_v25  ;;  %v3531_v59 = vrot.slane %v2880_v11, 1 }
 0x13c   :  { %v645_v20 = vpop.f32.mrb[32].mxu0  ;;  %v2988_v31 = vpack.c.bf16 %v1377_v12, %v1376_v10  ;;  %v2995_v9 = vmax.f32 %v2962_v32, %v1301_v54  ;;  %v3000_v10 = vpack.c.bf16 %v1421_v23, %v1420_v15  ;;  %v1239_v23 = vsel %vm1237_vm4, %v1232_v21, %v1233_v63 }
 0x13d   :  { %v1242_v8 = vsel %vm1237_vm4, %v3531_v59, %v1230_v30  ;;  %v868_v2 = vsel %vm836_vm3, %v645_v20, 0.0  ;;  %v986_v61 = vmul.f32 %v645_v20, %v645_v20  ;;  %v1187_v50 = vrot.slane %v645_v20, 1  ;;  %v647_v51 = vpop.f32.mrb[33].mxu0 }
 0x13e   :  { %v869_v17 = vadd.f32 %v868_v2, %v867_v62  ;;  %v648_v52 = vpop.f32.mrb[34].mxu0  ;;  %v1378_v25 = vmax.f32 %v2938_v46, %v2982_v42  ;;  %v1360_v48 = vmax.f32 %v2880_v11, %v1242_v8  ;;  %v1361_v46 = vmax.f32 %v2894_v34, %v1241_v43 }
 0x13f   :  { %v1065_v4 = vsel %vm836_vm3, %v986_v61, 0.0  ;;  %v1285_v30 = vsel %vm1237_vm4, %v1186_v1, %v1187_v50  ;;  %v870_v29 = vsel %vm836_vm3, %v648_v52, 0.0  ;;  %v987_v12 = vmul.f32 %v648_v52, %v648_v52  ;;  %v650_v56 = vpop.f32.mrb[35].mxu0 }
 0x140   :  { %v1066_v54 = vadd.f32 %v1065_v4, %v1064_v13  ;;  %v1317_v59 = vmax.f32 %v640_v39, %v1285_v30  ;;  %v871_v62 = vadd.f32 %v870_v29, %v869_v17  ;;  %v1188_v2 = vrot.slane %v648_v52, 1 }
 0x141   :  { %v1067_v51 = vsel %vm836_vm3, %v987_v12, 0.0  ;;  %v1422_v15 = vmax.f32 %v2952_v22, %v1360_v48  ;;  %v3532_v56 = vrot.slane %v2912_v0, 1  ;;  %v1423_v17 = vmax.f32 %v2955_v53, %v1361_v46 }
 0x142   :  { %v1068_v8 = vadd.f32 %v1067_v51, %v1066_v54  ;;  %v1284_v1 = vsel %vm1237_vm4, %v1187_v50, %v1188_v2  ;;  %v1379_v61 = vmax.f32 %v1315_v14, %v1317_v59  ;;  %v1363_v22 = vmax.f32 %v2926_v35, %v1239_v23 }
 0x143   :  { %v1240_v13 = vsel %vm1237_vm4, %v3532_v56, %v1232_v21  ;;  %v3018_v39 = vmax.f32 %v645_v20, %v1284_v1  ;;  %v1238_v50 = vsel %vm1237_vm4, %v1233_v63, %v1234_v41  ;;  %v1429_v14 = vmax.f32 %v2995_v9, %v2771_v57 }
 0x144   :  { %v1362_v43 = vmax.f32 %v2912_v0, %v1240_v13  ;;  %v653_v4 = vpop.f32.mrb[36].mxu0  ;;  %v3023_v30 = vpack.c.bf16 %v1379_v61, %v1378_v25  ;;  %v3032_v23 = vpack.c.bf16 %v1423_v17, %v1422_v15  ;;  %v1425_v1 = vmax.f32 %v1361_v46, %v1363_v22 }
 0x145   :  { %v872_v29 = vsel %vm836_vm3, %v653_v4, 0.0  ;;  %v988_v21 = vmul.f32 %v653_v4, %v653_v4  ;;  %v1189_v20 = vrot.slane %v653_v4, 1  ;;  %v655_v12 = vpop.f32.mrb[37].mxu0  ;;  %v1380_v53 = vmax.f32 %v2982_v42, %v3018_v39 }
 0x146   :  { %v873_v54 = vadd.f32 %v872_v29, %v871_v62  ;;  %v656_v51 = vpop.f32.mrb[38].mxu0  ;;  %v1424_v25 = vmax.f32 %v1360_v48, %v1362_v43  ;;  %v1364_v46 = vmax.f32 %v2947_v28, %v1238_v50  ;;  %v1427_v29 = vmax.f32 %v1363_v22, %v2995_v9 }
 0x147   :  { %v1069_v61 = vsel %vm836_vm3, %v988_v21, 0.0  ;;  %v874_v41 = vsel %vm836_vm3, %v656_v51, 0.0  ;;  %v989_v63 = vmul.f32 %v656_v51, %v656_v51  ;;  %v1190_v57 = vrot.slane %v656_v51, 1  ;;  %v658_v56 = vpop.f32.mrb[39].mxu0 }
 0x148   :  { %v1070_v13 = vadd.f32 %v1069_v61, %v1068_v8  ;;  %v875_v32 = vadd.f32 %v874_v41, %v873_v54  ;;  %v1283_v12 = vsel %vm1237_vm4, %v1188_v2, %v1189_v20  ;;  %v3038_v35 = vpack.c.bf16 %v1425_v1, %v1424_v25 }
 0x149   :  { %v1071_v42 = vsel %vm836_vm3, %v989_v63, 0.0  ;;  %v1282_v48 = vsel %vm1237_vm4, %v1189_v20, %v1190_v57  ;;  %v1319_v62 = vmax.f32 %v648_v52, %v1283_v12  ;;  %v1426_v8 = vmax.f32 %v1362_v43, %v1364_v46 }
 0x14a   :  { %v1072_v15 = vadd.f32 %v1071_v42, %v1070_v13  ;;  %v1320_v17 = vmax.f32 %v653_v4, %v1282_v48  ;;  %v1428_v54 = vmax.f32 %v1364_v46, %v2757_v36 }
 0x14b   :  { %v1381_v21 = vmax.f32 %v1317_v59, %v1319_v62  ;;  %v3050_v56 = vpack.c.bf16 %v1427_v29, %v1426_v8 }
 0x14c   :  { %v661_v61 = vpop.f32.mrb[40].mxu0  ;;  %v1382_v2 = vmax.f32 %v3018_v39, %v1320_v17  ;;  %v3052_v4 = vpack.c.bf16 %v1429_v14, %v1428_v54 }
 0x14d   :  { %v876_v25 = vsel %vm836_vm3, %v661_v61, 0.0  ;;  %v990_v1 = vmul.f32 %v661_v61, %v661_v61  ;;  %v1191_v41 = vrot.slane %v661_v61, 1  ;;  %v663_v63 = vpop.f32.mrb[41].mxu0  ;;  %v3048_v20 = vpack.c.bf16 %v1381_v21, %v1380_v53 }
 0x14e   :  { %v877_v52 = vadd.f32 %v876_v25, %v875_v32  ;;  %v664_v50 = vpop.f32.mrb[42].mxu0 }
 0x14f   :  { %v1073_v9 = vsel %vm836_vm3, %v990_v1, 0.0  ;;  %v878_v36 = vsel %vm836_vm3, %v664_v50, 0.0  ;;  %v991_v59 = vmul.f32 %v664_v50, %v664_v50  ;;  %v1192_v43 = vrot.slane %v664_v50, 1  ;;  %v666_v39 = vpop.f32.mrb[43].mxu0 }
 0x150   :  { %v1074_v22 = vadd.f32 %v1073_v9, %v1072_v15  ;;  %v879_v13 = vadd.f32 %v878_v36, %v877_v52  ;;  %v1281_v12 = vsel %vm1237_vm4, %v1190_v57, %v1191_v41 }
 0x151   :  { %v1075_v53 = vsel %vm836_vm3, %v991_v59, 0.0  ;;  %v1321_v32 = vmax.f32 %v656_v51, %v1281_v12  ;;  %v1280_v42 = vsel %vm1237_vm4, %v1191_v41, %v1192_v43 }
 0x152   :  { %v1076_v14 = vadd.f32 %v1075_v53, %v1074_v22  ;;  %v1322_v48 = vmax.f32 %v661_v61, %v1280_v42 }
 0x153   :  { %v1383_v46 = vmax.f32 %v1319_v62, %v1321_v32 }
 0x154   :  { %v669_v29 = vpop.f32.mrb[44].mxu0  ;;  %v1384_v21 = vmax.f32 %v1320_v17, %v1322_v48 }
 0x155   :  { %v880_v8 = vsel %vm836_vm3, %v669_v29, 0.0  ;;  %v992_v54 = vmul.f32 %v669_v29, %v669_v29  ;;  %v1193_v25 = vrot.slane %v669_v29, 1  ;;  %v671_v15 = vpop.f32.mrb[45].mxu0  ;;  %v1470_v1 = vpack.c.bf16 %v1383_v46, %v1382_v2 }
 0x156   :  { %v881_v63 = vadd.f32 %v880_v8, %v879_v13  ;;  %v672_v52 = vpop.f32.mrb[46].mxu0 }
 0x157   :  { %v1077_v57 = vsel %vm836_vm3, %v992_v54, 0.0  ;;  %v882_v51 = vsel %vm836_vm3, %v672_v52, 0.0  ;;  %v993_v9 = vmul.f32 %v672_v52, %v672_v52  ;;  %v1194_v36 = vrot.slane %v672_v52, 1  ;;  %2153 = vmatprep.subr.bf16.mxu1 %v1470_v1  ;;  %v674_v41 = vpop.f32.mrb[47].mxu0 }
 0x158   :  { %v1078_v61 = vadd.f32 %v1077_v57, %v1076_v14  ;;  %v883_v62 = vadd.f32 %v882_v51, %v881_v63  ;;  %2154 = vmatpush3.bf16.msra.mxu1 %v2822_v47  ;;  %v1279_v17 = vsel %vm1237_vm4, %v1192_v43, %v1193_v25 }
 0x159   :  { %v1079_v59 = vsel %vm836_vm3, %v993_v9, 0.0  ;;  %v1323_v2 = vmax.f32 %v664_v50, %v1279_v17  ;;  %v1278_v39 = vsel %vm1237_vm4, %v1193_v25, %v1194_v36 }
 0x15a   :  { %v1080_v22 = vadd.f32 %v1079_v59, %v1078_v61  ;;  %v1324_v13 = vmax.f32 %v669_v29, %v1278_v39 }
 0x15b   :  { %v1385_v12 = vmax.f32 %v1321_v32, %v1323_v2 }
 0x15c   :  { %v677_v53 = vpop.f32.mrb[48].mxu0  ;;  %v1386_v42 = vmax.f32 %v1322_v48, %v1324_v13 }
 0x15d   :  { %v884_v46 = vsel %vm836_vm3, %v677_v53, 0.0  ;;  %v994_v14 = vmul.f32 %v677_v53, %v677_v53  ;;  %v1195_v8 = vrot.slane %v677_v53, 1  ;;  %v679_v54 = vpop.f32.mrb[49].mxu0  ;;  %v1471_v47 = vpack.c.bf16 %v1385_v12, %v1384_v21 }
 0x15e   :  { %v885_v15 = vadd.f32 %v884_v46, %v883_v62  ;;  %v680_v1 = vpop.f32.mrb[50].mxu0 }
 0x15f   :  { %v1081_v43 = vsel %vm836_vm3, %v994_v14, 0.0  ;;  %v886_v50 = vsel %vm836_vm3, %v680_v1, 0.0  ;;  %v995_v63 = vmul.f32 %v680_v1, %v680_v1  ;;  %v1196_v57 = vrot.slane %v680_v1, 1  ;;  %2155 = vmatprep.subr.bf16.mxu1 %v1471_v47  ;;  %v682_v25 = vpop.f32.mrb[51].mxu0 }
 0x160   :  { %v1082_v29 = vadd.f32 %v1081_v43, %v1080_v22  ;;  %v887_v32 = vadd.f32 %v886_v50, %v885_v15  ;;  %2156 = vmatpush3.bf16.msra.mxu1 %v2851_v27  ;;  %v1277_v48 = vsel %vm1237_vm4, %v1194_v36, %v1195_v8 }
 0x161   :  { %v1083_v51 = vsel %vm836_vm3, %v995_v63, 0.0  ;;  %v1325_v21 = vmax.f32 %v672_v52, %v1277_v48  ;;  %v1276_v9 = vsel %vm1237_vm4, %v1195_v8, %v1196_v57 }
 0x162   :  { %v1084_v41 = vadd.f32 %v1083_v51, %v1082_v29  ;;  %v1326_v61 = vmax.f32 %v677_v53, %v1276_v9 }
 0x163   :  { %v1387_v62 = vmax.f32 %v1323_v2, %v1325_v21 }
 0x164   :  { %v685_v17 = vpop.f32.mrb[52].mxu0  ;;  %v1388_v59 = vmax.f32 %v1324_v13, %v1326_v61 }
 0x165   :  { %v888_v39 = vsel %vm836_vm3, %v685_v17, 0.0  ;;  %v996_v22 = vmul.f32 %v685_v17, %v685_v17  ;;  %v1197_v12 = vrot.slane %v685_v17, 1  ;;  %v687_v46 = vpop.f32.mrb[53].mxu0  ;;  %v1472_v27 = vpack.c.bf16 %v1387_v62, %v1386_v42 }
 0x166   :  { %v889_v14 = vadd.f32 %v888_v39, %v887_v32  ;;  %v688_v54 = vpop.f32.mrb[54].mxu0 }
 0x167   :  { %v1085_v36 = vsel %vm836_vm3, %v996_v22, 0.0  ;;  %v890_v52 = vsel %vm836_vm3, %v688_v54, 0.0  ;;  %v997_v47 = vmul.f32 %v688_v54, %v688_v54  ;;  %v1198_v15 = vrot.slane %v688_v54, 1  ;;  %2157 = vmatprep.subr.bf16.mxu1 %v1472_v27  ;;  %v690_v8 = vpop.f32.mrb[55].mxu0 }
 0x168   :  { %v1086_v53 = vadd.f32 %v1085_v36, %v1084_v41  ;;  %v891_v2 = vadd.f32 %v890_v52, %v889_v14  ;;  %2158 = vmatpush3.bf16.msra.mxu1 %v2882_v58  ;;  %v1275_v13 = vsel %vm1237_vm4, %v1196_v57, %v1197_v12 }
 0x169   :  { %v1087_v43 = vsel %vm836_vm3, %v997_v47, 0.0  ;;  %v1327_v42 = vmax.f32 %v680_v1, %v1275_v13  ;;  %v1274_v50 = vsel %vm1237_vm4, %v1197_v12, %v1198_v15 }
 0x16a   :  { %v1088_v63 = vadd.f32 %v1087_v43, %v1086_v53  ;;  %v1328_v25 = vmax.f32 %v685_v17, %v1274_v50 }
 0x16b   :  { %v1389_v29 = vmax.f32 %v1325_v21, %v1327_v42 }
 0x16c   :  { %v693_v32 = vpop.f32.mrb[56].mxu0  ;;  %v1390_v48 = vmax.f32 %v1326_v61, %v1328_v25 }
 0x16d   :  { %v892_v51 = vsel %vm836_vm3, %v693_v32, 0.0  ;;  %v998_v9 = vmul.f32 %v693_v32, %v693_v32  ;;  %v1199_v41 = vrot.slane %v693_v32, 1  ;;  %v695_v62 = vpop.f32.mrb[57].mxu0  ;;  %v1473_v58 = vpack.c.bf16 %v1389_v29, %v1388_v59 }
 0x16e   :  { %v893_v39 = vadd.f32 %v892_v51, %v891_v2  ;;  %v696_v22 = vpop.f32.mrb[58].mxu0 }
 0x16f   :  { %v1089_v57 = vsel %vm836_vm3, %v998_v9, 0.0  ;;  %v894_v1 = vsel %vm836_vm3, %v696_v22, 0.0  ;;  %v999_v46 = vmul.f32 %v696_v22, %v696_v22  ;;  %v1200_v27 = vrot.slane %v696_v22, 1  ;;  %2159 = vmatprep.subr.bf16.mxu1 %v1473_v58  ;;  %v698_v12 = vpop.f32.mrb[59].mxu0 }
 0x170   :  { %v1090_v17 = vadd.f32 %v1089_v57, %v1088_v63  ;;  %v895_v21 = vadd.f32 %v894_v1, %v893_v39  ;;  %2160 = vmatpush3.bf16.msra.mxu1 %v2914_v40  ;;  %v1273_v61 = vsel %vm1237_vm4, %v1198_v15, %v1199_v41 }
 0x171   :  { %v1091_v14 = vsel %vm836_vm3, %v999_v46, 0.0  ;;  %v1329_v59 = vmax.f32 %v688_v54, %v1273_v61  ;;  %v1272_v36 = vsel %vm1237_vm4, %v1199_v41, %v1200_v27 }
 0x172   :  { %v1092_v52 = vadd.f32 %v1091_v14, %v1090_v17  ;;  %v1330_v47 = vmax.f32 %v693_v32, %v1272_v36 }
 0x173   :  { %v1391_v8 = vmax.f32 %v1327_v42, %v1329_v59 }
 0x174   :  { %v701_v53 = vpop.f32.mrb[60].mxu0  ;;  %v1392_v2 = vmax.f32 %v1328_v25, %v1330_v47 }
 0x175   :  { %v896_v13 = vsel %vm836_vm3, %v701_v53, 0.0  ;;  %v1000_v43 = vmul.f32 %v701_v53, %v701_v53  ;;  %v1201_v50 = vrot.slane %v701_v53, 1  ;;  %v703_v63 = vpop.f32.mrb[61].mxu0  ;;  %v1474_v40 = vpack.c.bf16 %v1391_v8, %v1390_v48 }
 0x176   :  { %v897_v29 = vadd.f32 %v896_v13, %v895_v21  ;;  %v704_v51 = vpop.f32.mrb[62].mxu0 }
 0x177   :  { %v1093_v15 = vsel %vm836_vm3, %v1000_v43, 0.0  ;;  %v898_v54 = vsel %vm836_vm3, %v704_v51, 0.0  ;;  %v1001_v9 = vmul.f32 %v704_v51, %v704_v51  ;;  %v1202_v62 = vrot.slane %v704_v51, 1  ;;  %2161 = vmatprep.subr.bf16.mxu1 %v1474_v40  ;;  %v706_v41 = vpop.f32.mrb[63].mxu0 }
 0x178   :  { %v1094_v32 = vadd.f32 %v1093_v15, %v1092_v52  ;;  %v899_v42 = vadd.f32 %v898_v54, %v897_v29  ;;  %2162 = vmatpush3.bf16.msra.mxu1 %v2949_v37  ;;  %v1271_v25 = vsel %vm1237_vm4, %v1200_v27, %v1201_v50 }
 0x179   :  { %v1095_v58 = vsel %vm836_vm3, %v1001_v9, 0.0  ;;  %v1331_v48 = vmax.f32 %v696_v22, %v1271_v25  ;;  %v1270_v39 = vsel %vm1237_vm4, %v1201_v50, %v1202_v62 }
 0x17a   :  { %v1096_v57 = vadd.f32 %v1095_v58, %v1094_v32  ;;  %v1332_v1 = vmax.f32 %v701_v53, %v1270_v39 }
 0x17b   :  { %v1393_v46 = vmax.f32 %v1329_v59, %v1331_v48 }
 0x17c   :  { %v709_v12 = vpop.f32.mrb[64].mxu0  ;;  %v1394_v17 = vmax.f32 %v1330_v47, %v1332_v1 }
 0x17d   :  { %v900_v21 = vsel %vm836_vm3, %v709_v12, 0.0  ;;  %v1002_v61 = vmul.f32 %v709_v12, %v709_v12  ;;  %v1203_v14 = vrot.slane %v709_v12, 1  ;;  %v711_v36 = vpop.f32.mrb[65].mxu0  ;;  %v1475_v37 = vpack.c.bf16 %v1393_v46, %v1392_v2 }
 0x17e   :  { %v901_v52 = vadd.f32 %v900_v21, %v899_v42  ;;  %v712_v8 = vpop.f32.mrb[66].mxu0 }
 0x17f   :  { %v1097_v27 = vsel %vm836_vm3, %v1002_v61, 0.0  ;;  %v902_v22 = vsel %vm836_vm3, %v712_v8, 0.0  ;;  %v1003_v13 = vmul.f32 %v712_v8, %v712_v8  ;;  %v1204_v43 = vrot.slane %v712_v8, 1  ;;  %2163 = vmatprep.subr.bf16.mxu1 %v1475_v37  ;;  %v714_v50 = vpop.f32.mrb[67].mxu0 }
 0x180   :  { %v1098_v53 = vadd.f32 %v1097_v27, %v1096_v57  ;;  %v903_v59 = vadd.f32 %v902_v22, %v901_v52  ;;  %2164 = vmatpush3.bf16.msra.mxu1 %v2988_v31  ;;  %v1269_v47 = vsel %vm1237_vm4, %v1202_v62, %v1203_v14 }
 0x181   :  { %v1099_v63 = vsel %vm836_vm3, %v1003_v13, 0.0  ;;  %v1333_v2 = vmax.f32 %v704_v51, %v1269_v47  ;;  %v1268_v40 = vsel %vm1237_vm4, %v1203_v14, %v1204_v43 }
 0x182   :  { %v1100_v29 = vadd.f32 %v1099_v63, %v1098_v53  ;;  %v1334_v15 = vmax.f32 %v709_v12, %v1268_v40 }
 0x183   :  { %v1395_v54 = vmax.f32 %v1331_v48, %v1333_v2 }
 0x184   :  { %v717_v9 = vpop.f32.mrb[68].mxu0  ;;  %v1396_v41 = vmax.f32 %v1332_v1, %v1334_v15 }
 0x185   :  { %v904_v32 = vsel %vm836_vm3, %v717_v9, 0.0  ;;  %v1004_v42 = vmul.f32 %v717_v9, %v717_v9  ;;  %v1205_v25 = vrot.slane %v717_v9, 1  ;;  %v719_v58 = vpop.f32.mrb[69].mxu0  ;;  %v1476_v31 = vpack.c.bf16 %v1395_v54, %v1394_v17 }
 0x186   :  { %v905_v39 = vadd.f32 %v904_v32, %v903_v59  ;;  %v720_v57 = vpop.f32.mrb[70].mxu0 }
 0x187   :  { %v1101_v62 = vsel %vm836_vm3, %v1004_v42, 0.0  ;;  %v906_v51 = vsel %vm836_vm3, %v720_v57, 0.0  ;;  %v1005_v46 = vmul.f32 %v720_v57, %v720_v57  ;;  %v1206_v21 = vrot.slane %v720_v57, 1  ;;  %2165 = vmatprep.subr.bf16.mxu1 %v1476_v31  ;;  %v722_v61 = vpop.f32.mrb[71].mxu0 }
 0x188   :  { %v1102_v12 = vadd.f32 %v1101_v62, %v1100_v29  ;;  %v907_v48 = vadd.f32 %v906_v51, %v905_v39  ;;  %2166 = vmatpush3.bf16.msra.mxu1 %v3023_v30  ;;  %v1267_v1 = vsel %vm1237_vm4, %v1204_v43, %v1205_v25 }
 0x189   :  { %v1103_v14 = vsel %vm836_vm3, %v1005_v46, 0.0  ;;  %v1266_v17 = vsel %vm1237_vm4, %v1205_v25, %v1206_v21  ;;  %v1335_v36 = vmax.f32 %v712_v8, %v1267_v1  ;;  %v2412_v25 = vld [vmem:[%s3520_s2 + $0x24] ss:$16 sps:$4 sm:$0xff]  }
 0x18a   :  { %v1104_v37 = vadd.f32 %v1103_v14, %v1102_v12  ;;  %v1336_v52 = vmax.f32 %v717_v9, %v1266_v17 }
 0x18b   :  { %v1397_v27 = vmax.f32 %v1333_v2, %v1335_v36 }
 0x18c   :  { %v725_v22 = vpop.f32.mrb[72].mxu0  ;;  %v1398_v13 = vmax.f32 %v1334_v15, %v1336_v52  ;;  %v2409_v15 = vld [vmem:[%s3520_s2] ss:$16 sps:$4 sm:$0xff]  }
 0x18d   :  { %v908_v50 = vsel %vm836_vm3, %v725_v22, 0.0  ;;  %v1006_v53 = vmul.f32 %v725_v22, %v725_v22  ;;  %v1207_v59 = vrot.slane %v725_v22, 1  ;;  %v727_v47 = vpop.f32.mrb[73].mxu0  ;;  %v1477_v30 = vpack.c.bf16 %v1397_v27, %v1396_v41 }
 0x18e   :  { %v909_v63 = vadd.f32 %v908_v50, %v907_v48  ;;  %v728_v40 = vpop.f32.mrb[74].mxu0 }
 0x18f   :  { %v1105_v43 = vsel %vm836_vm3, %v1006_v53, 0.0  ;;  %v1265_v29 = vsel %vm1237_vm4, %v1206_v21, %v1207_v59  ;;  %v910_v8 = vsel %vm836_vm3, %v728_v40, 0.0  ;;  %v1007_v54 = vmul.f32 %v728_v40, %v728_v40  ;;  %2167 = vmatprep.subr.bf16.mxu1 %v1477_v30  ;;  %v730_v2 = vpop.f32.mrb[75].mxu0 }
 0x190   :  { %v1106_v9 = vadd.f32 %v1105_v43, %v1104_v37  ;;  %v1337_v32 = vmax.f32 %v720_v57, %v1265_v29  ;;  %v911_v42 = vadd.f32 %v910_v8, %v909_v63  ;;  %v1208_v41 = vrot.slane %v728_v40, 1  ;;  %2168 = vmatpush3.bf16.msra.mxu1 %v3048_v20 }
 0x191   :  { %v1107_v58 = vsel %vm836_vm3, %v1007_v54, 0.0  ;;  %2217 = vmatprep.subr.bf16.mxu1 %v2875_v6 }
 0x192   :  { %v1108_v31 = vadd.f32 %v1107_v58, %v1106_v9  ;;  %v1264_v39 = vsel %vm1237_vm4, %v1207_v59, %v1208_v41  ;;  %v1399_v62 = vmax.f32 %v1335_v36, %v1337_v32  ;;  %v2415_v59 = vld [vmem:[%s3520_s2 + $0x44] ss:$16 sps:$4 sm:$0xff]  }
 0x193   :  { %v1338_v51 = vmax.f32 %v725_v22, %v1264_v39  ;;  %1687 = vmatmul.mubr.bf16.vlgmr.msra.gmra.mrb[32].mxu1 %v2409_v15  ;;  %v2414_v22 = vld [vmem:[%s3520_s2 + $0x20] ss:$16 sps:$4 sm:$0xff]  }
 0x194   :  { %v733_v57 = vpop.f32.mrb[76].mxu0  ;;  %v1478_v46 = vpack.c.bf16 %v1399_v62, %v1398_v13  ;;  %1694 = vmatprep.mubr.bf16.mxu1 %v2412_v25  ;;  %v2417_v62 = vld [vmem:[%s3520_s2 + $0x40] ss:$16 sps:$4 sm:$0xff]  }
 0x195   :  { %v912_v20 = vsel %vm836_vm3, %v733_v57, 0.0  ;;  %v1008_v21 = vmul.f32 %v733_v57, %v733_v57  ;;  %v1209_v61 = vrot.slane %v733_v57, 1  ;;  %v735_v12 = vpop.f32.mrb[77].mxu0  ;;  %v1400_v48 = vmax.f32 %v1336_v52, %v1338_v51 }
 0x196   :  { %v913_v1 = vadd.f32 %v912_v20, %v911_v42  ;;  %v736_v14 = vpop.f32.mrb[78].mxu0  ;;  %2218 = vmatpush3.bf16.msra.mxu1 %v1478_v46 }
 0x197   :  { %v1109_v6 = vsel %vm836_vm3, %v1008_v21, 0.0  ;;  %v1263_v17 = vsel %vm1237_vm4, %v1208_v41, %v1209_v61  ;;  %v914_v36 = vsel %vm836_vm3, %v736_v14, 0.0  ;;  %v1009_v37 = vmul.f32 %v736_v14, %v736_v14  ;;  %v738_v27 = vpop.f32.mrb[79].mxu0  ;;  %2219 = vmatprep.subr.bf16.mxu1 %v2943_v55  ;;  %v2418_v21 = vld [vmem:[%s3520_s2 + $0x64] ss:$16 sps:$4 sm:$0xff]  }
 0x198   :  { %v1110_v13 = vadd.f32 %v1109_v6, %v1108_v31  ;;  %v1339_v52 = vmax.f32 %v728_v40, %v1263_v17  ;;  %v915_v50 = vadd.f32 %v914_v36, %v913_v1  ;;  %v1210_v53 = vrot.slane %v736_v14, 1 }
 0x199   :  { %v1111_v47 = vsel %vm836_vm3, %v1009_v37, 0.0 }
 0x19a   :  { %v1112_v30 = vadd.f32 %v1111_v47, %v1110_v13  ;;  %v1262_v63 = vsel %vm1237_vm4, %v1209_v61, %v1210_v53  ;;  %v1401_v43 = vmax.f32 %v1337_v32, %v1339_v52 }
 0x19b   :  { %v1340_v55 = vmax.f32 %v733_v57, %v1262_v63  ;;  %1695 = vmatmul.mubr.bf16.gmra.mrb[36].mxu1 %v2414_v22  ;;  %v2420_v63 = vld [vmem:[%s3520_s2 + $0x60] ss:$16 sps:$4 sm:$0xff]  }
 0x19c   :  { %v741_v29 = vpop.f32.mrb[80].mxu0  ;;  %v1479_v8 = vpack.c.bf16 %v1401_v43, %v1400_v48  ;;  %1702 = vmatprep.mubr.bf16.mxu1 %v2415_v59 }
 0x19d   :  { %v916_v40 = vsel %vm836_vm3, %v741_v29, 0.0  ;;  %v1010_v54 = vmul.f32 %v741_v29, %v741_v29  ;;  %v1211_v2 = vrot.slane %v741_v29, 1  ;;  %v743_v15 = vpop.f32.mrb[81].mxu0  ;;  %v1402_v9 = vmax.f32 %v1338_v51, %v1340_v55 }
 0x19e   :  { %v917_v42 = vadd.f32 %v916_v40, %v915_v50  ;;  %v744_v41 = vpop.f32.mrb[82].mxu0  ;;  %2220 = vmatpush3.bf16.msra.mxu1 %v1479_v8  ;;  %v2421_v40 = vld [vmem:[%s3520_s2 + $0x84] ss:$16 sps:$4 sm:$0xff]  }
 0x19f   :  { %v1113_v25 = vsel %vm836_vm3, %v1010_v54, 0.0  ;;  %v1261_v58 = vsel %vm1237_vm4, %v1210_v53, %v1211_v2  ;;  %v918_v32 = vsel %vm836_vm3, %v744_v41, 0.0  ;;  %v1011_v31 = vmul.f32 %v744_v41, %v744_v41  ;;  %v746_v39 = vpop.f32.mrb[83].mxu0  ;;  %2221 = vmatprep.subr.bf16.mxu1 %v2973_v33 }
 0x1a0   :  { %v1114_v57 = vadd.f32 %v1113_v25, %v1112_v30  ;;  %v1341_v51 = vmax.f32 %v736_v14, %v1261_v58  ;;  %v919_v46 = vadd.f32 %v918_v32, %v917_v42  ;;  %v1212_v20 = vrot.slane %v744_v41, 1 }
 0x1a1   :  { %v1115_v61 = vsel %vm836_vm3, %v1011_v31, 0.0 }
 0x1a2   :  { %v1116_v12 = vadd.f32 %v1115_v61, %v1114_v57  ;;  %v1260_v48 = vsel %vm1237_vm4, %v1211_v2, %v1212_v20  ;;  %v1403_v1 = vmax.f32 %v1339_v52, %v1341_v51 }
 0x1a3   :  { %v3170_v33 = vmax.f32 %v741_v29, %v1260_v48  ;;  %1703 = vmatmul.mubr.bf16.gmra.mrb[40].mxu1 %v2417_v62 }
 0x1a4   :  { %v749_v6 = vpop.f32.mrb[84].mxu0  ;;  %v1480_v17 = vpack.c.bf16 %v1403_v1, %v1402_v9  ;;  %1710 = vmatprep.mubr.bf16.mxu1 %v2418_v21 }
 0x1a5   :  { %v920_v14 = vsel %vm836_vm3, %v749_v6, 0.0  ;;  %v1012_v36 = vmul.f32 %v749_v6, %v749_v6  ;;  %v1213_v37 = vrot.slane %v749_v6, 1  ;;  %v751_v27 = vpop.f32.mrb[85].mxu0  ;;  %v1404_v22 = vmax.f32 %v1340_v55, %v3170_v33 }
 0x1a6   :  { %v921_v13 = vadd.f32 %v920_v14, %v919_v46  ;;  %v752_v50 = vpop.f32.mrb[86].mxu0  ;;  %2222 = vmatpush3.bf16.msra.mxu1 %v1480_v17  ;;  %v2424_v17 = vld [vmem:[%s3520_s2 + $0xa4] ss:$16 sps:$4 sm:$0xff]  }
 0x1a7   :  { %v1117_v53 = vsel %vm836_vm3, %v1012_v36, 0.0  ;;  %v1259_v52 = vsel %vm1237_vm4, %v1212_v20, %v1213_v37  ;;  %v922_v59 = vsel %vm836_vm3, %v752_v50, 0.0  ;;  %v1013_v47 = vmul.f32 %v752_v50, %v752_v50  ;;  %v754_v30 = vpop.f32.mrb[87].mxu0  ;;  %2223 = vmatprep.subr.bf16.mxu1 %v3000_v10 }
 0x1a8   :  { %v1118_v43 = vadd.f32 %v1117_v53, %v1116_v12  ;;  %v1343_v55 = vmax.f32 %v744_v41, %v1259_v52  ;;  %v923_v29 = vadd.f32 %v922_v59, %v921_v13  ;;  %v1214_v8 = vrot.slane %v752_v50, 1  ;;  %v2423_v12 = vld [vmem:[%s3520_s2 + $0x80] ss:$16 sps:$4 sm:$0xff]  }
 0x1a9   :  { %v1119_v54 = vsel %vm836_vm3, %v1013_v47, 0.0  ;;  %v1019_v13 = vmul.f32 %v2746_v24, %v2746_v24 }
 0x1aa   :  { %v1120_v2 = vadd.f32 %v1119_v54, %v1118_v43  ;;  %v1258_v15 = vsel %vm1237_vm4, %v1213_v37, %v1214_v8  ;;  %v1405_v9 = vmax.f32 %v1341_v51, %v1343_v55  ;;  %v932_v43 = vsel %vm836_vm3, %v2739_v18, 0.0 }
 0x1ab   :  { %v3188_v10 = vmax.f32 %v749_v6, %v1258_v15  ;;  %1711 = vmatmul.mubr.bf16.gmra.mrb[44].mxu1 %v2420_v63 }
 0x1ac   :  { %v757_v42 = vpop.f32.mrb[88].mxu0  ;;  %v1481_v25 = vpack.c.bf16 %v1405_v9, %v1404_v22  ;;  %1718 = vmatprep.mubr.bf16.mxu1 %v2421_v40  ;;  %v1018_v22 = vmul.f32 %v2739_v18, %v2739_v18  ;;  %v2426_v9 = vld [vmem:[%s3520_s2 + $0xa0] ss:$16 sps:$4 sm:$0xff]  }
 0x1ad   :  { %v924_v41 = vsel %vm836_vm3, %v757_v42, 0.0  ;;  %v1014_v58 = vmul.f32 %v757_v42, %v757_v42  ;;  %v1215_v32 = vrot.slane %v757_v42, 1  ;;  %v759_v31 = vpop.f32.mrb[89].mxu0  ;;  %v1406_v39 = vmax.f32 %v3170_v33, %v3188_v10 }
 0x1ae   :  { %v925_v62 = vadd.f32 %v924_v41, %v923_v29  ;;  %v760_v57 = vpop.f32.mrb[90].mxu0  ;;  %2224 = vmatpush3.bf16.msra.mxu1 %v1481_v25  ;;  %v934_v31 = vsel %vm836_vm3, %v2746_v24, 0.0 }
 0x1af   :  { %v1121_v46 = vsel %vm836_vm3, %v1014_v58, 0.0  ;;  %v1257_v51 = vsel %vm1237_vm4, %v1214_v8, %v1215_v32  ;;  %v926_v20 = vsel %vm836_vm3, %v760_v57, 0.0  ;;  %v1015_v21 = vmul.f32 %v760_v57, %v760_v57  ;;  %v762_v61 = vpop.f32.mrb[91].mxu0  ;;  %2225 = vmatprep.subr.bf16.mxu1 %v3032_v23  ;;  %v2427_v58 = vld [vmem:[%s3520_s2 + $0xc4] ss:$16 sps:$4 sm:$0xff]  }
 0x1b0   :  { %v1122_v48 = vadd.f32 %v1121_v46, %v1120_v2  ;;  %v1345_v1 = vmax.f32 %v752_v50, %v1257_v51  ;;  %v927_v33 = vadd.f32 %v926_v20, %v925_v62  ;;  %v1216_v6 = vrot.slane %v760_v57, 1 }
 0x1b1   :  { %v1123_v14 = vsel %vm836_vm3, %v1015_v21, 0.0  ;;  %v3533_v51 = vrot.slane %v2739_v18, 1  ;;  %v1020_v21 = vmul.f32 %v2759_v38, %v2759_v38 }
 0x1b2   :  { %v1124_v36 = vadd.f32 %v1123_v14, %v1122_v48  ;;  %v1256_v37 = vsel %vm1237_vm4, %v1215_v32, %v1216_v6  ;;  %v1407_v27 = vmax.f32 %v1343_v55, %v1345_v1  ;;  %v1129_v32 = vsel %vm836_vm3, %v1018_v22, 0.0 }
 0x1b3   :  { %v1346_v23 = vmax.f32 %v757_v42, %v1256_v37  ;;  %1719 = vmatmul.mubr.bf16.gmra.mrb[48].mxu1 %v2423_v12  ;;  %v936_v48 = vsel %vm836_vm3, %v2759_v38, 0.0  ;;  %v938_v38 = vsel %vm836_vm3, %v2765_v49, 0.0 }
 0x1b4   :  { %v765_v50 = vpop.f32.mrb[92].mxu0  ;;  %v1482_v53 = vpack.c.bf16 %v1407_v27, %v1406_v39  ;;  %1726 = vmatprep.mubr.bf16.mxu1 %v2424_v17  ;;  %v1131_v39 = vsel %vm836_vm3, %v1019_v13, 0.0  ;;  %v1022_v13 = vmul.f32 %v2788_v5, %v2788_v5 }
 0x1b5   :  { %v928_v52 = vsel %vm836_vm3, %v765_v50, 0.0  ;;  %v1016_v59 = vmul.f32 %v765_v50, %v765_v50  ;;  %v1217_v47 = vrot.slane %v765_v50, 1  ;;  %v767_v30 = vpop.f32.mrb[93].mxu0  ;;  %v1408_v63 = vmax.f32 %v3188_v10, %v1346_v23 }
 0x1b6   :  { %v929_v55 = vadd.f32 %v928_v52, %v927_v33  ;;  %v768_v29 = vpop.f32.mrb[94].mxu0  ;;  %2226 = vmatpush3.bf16.msra.mxu1 %v1482_v53  ;;  %v1021_v33 = vmul.f32 %v2765_v49, %v2765_v49 }
 0x1b7   :  { %v1125_v8 = vsel %vm836_vm3, %v1016_v59, 0.0  ;;  %v1255_v40 = vsel %vm1237_vm4, %v1216_v6, %v1217_v47  ;;  %v930_v54 = vsel %vm836_vm3, %v768_v29, 0.0  ;;  %v1017_v2 = vmul.f32 %v768_v29, %v768_v29  ;;  %v770_v15 = vpop.f32.mrb[95].mxu0  ;;  %2227 = vmatprep.subr.bf16.mxu1 %v3038_v35 }
 0x1b8   :  { %v1126_v10 = vadd.f32 %v1125_v8, %v1124_v36  ;;  %v931_v42 = vadd.f32 %v930_v54, %v929_v55  ;;  %v1218_v25 = vrot.slane %v768_v29, 1  ;;  %v1347_v41 = vmax.f32 %v760_v57, %v1255_v40 }
 0x1b9   :  { %v1127_v35 = vsel %vm836_vm3, %v1017_v2, 0.0  ;;  %v1135_v49 = vsel %vm836_vm3, %v1021_v33, 0.0  ;;  %v940_v59 = vsel %vm836_vm3, %v2788_v5, 0.0  ;;  %v1024_v55 = vmul.f32 %v2820_v45, %v2820_v45 }
 0x1ba   :  { %v933_v62 = vadd.f32 %v932_v43, %v931_v42  ;;  %v1128_v46 = vadd.f32 %v1127_v35, %v1126_v10  ;;  %v1253_v57 = vsel %vm1237_vm4, %v1218_v25, %v3533_v51  ;;  %v1254_v20 = vsel %vm1237_vm4, %v1217_v47, %v1218_v25  ;;  %v2432_v42 = vld [vmem:[%s3520_s2 + $0xe0] ss:$16 sps:$4 sm:$0xff]  }
 0x1bb   :  { %v1348_v61 = vmax.f32 %v765_v50, %v1254_v20  ;;  %v1349_v12 = vmax.f32 %v768_v29, %v1253_v57  ;;  %1727 = vmatmul.mubr.bf16.gmra.mrb[52].mxu1 %v2426_v9  ;;  %v1409_v24 = vmax.f32 %v1345_v1, %v1347_v41  ;;  %v1133_v1 = vsel %vm836_vm3, %v1020_v21, 0.0  ;;  %v2429_v50 = vld [vmem:[%s3520_s2 + $0xc0] ss:$16 sps:$4 sm:$0xff]  }
 0x1bc   :  { %v935_v18 = vadd.f32 %v934_v31, %v933_v62  ;;  %v1130_v6 = vadd.f32 %v1129_v32, %v1128_v46  ;;  %1734 = vmatprep.mubr.bf16.mxu1 %v2427_v58  ;;  %v1023_v47 = vmul.f32 %v2797_v19, %v2797_v19  ;;  %v1137_v43 = vsel %vm836_vm3, %v1022_v13, 0.0 }
 0x1bd   :  { %v1411_v17 = vmax.f32 %v1347_v41, %v1349_v12  ;;  %v1413_v16 = vmax.f32 %v1349_v12, %v2786_v3  ;;  %v1483_v14 = vpack.c.bf16 %v1409_v24, %v1408_v63  ;;  %v1410_v36 = vmax.f32 %v1346_v23, %v1348_v61 }
 0x1be   :  { %v937_v37 = vadd.f32 %v936_v48, %v935_v18  ;;  %v1132_v27 = vadd.f32 %v1131_v39, %v1130_v6  ;;  %v1412_v22 = vmax.f32 %v1348_v61, %v2793_v7  ;;  %v2430_v7 = vld [vmem:[%s3520_s2 + $0xe4] ss:$16 sps:$4 sm:$0xff]   ;;  %v1139_v5 = vsel %vm836_vm3, %v1023_v47, 0.0  ;;  %v2433_v48 = vld [vmem:[%s3520_s2 + $0x8] ss:$16 sps:$4 sm:$0xff]  }
 0x1bf   :  { %2228 = vmatpush3.bf16.msra.mxu1 %v1483_v14  ;;  %v1484_v3 = vpack.c.bf16 %v1411_v17, %v1410_v36  ;;  %v944_v40 = vsel %vm836_vm3, %v2820_v45, 0.0  ;;  %v1025_v54 = vmul.f32 %v2831_v60, %v2831_v60  ;;  %v1141_v15 = vsel %vm836_vm3, %v1024_v55, 0.0  ;;  %v2444_v55 = vld [vmem:[%s3520_s2 + $0x68] ss:$16 sps:$4 sm:$0xff]  }
 0x1c0   :  { %v939_v53 = vadd.f32 %v938_v38, %v937_v37  ;;  %v1134_v23 = vadd.f32 %v1133_v1, %v1132_v27  ;;  %2229 = vmatprep.subr.bf16.mxu1 %v3050_v56  ;;  %v1485_v52 = vpack.c.bf16 %v1413_v16, %v1412_v22  ;;  %v942_v56 = vsel %vm836_vm3, %v2797_v19, 0.0  ;;  %v3534_v16 = vld [vmem:[#allocation2_spill] sm:$0xff] }
 0x1c1   :  { %v946_v9 = vsel %vm836_vm3, %v2831_v60, 0.0  ;;  %v1026_v10 = vmul.f32 %v2849_v26, %v2849_v26  ;;  %v1143_v41 = vsel %vm836_vm3, %v1025_v54, 0.0  ;;  %v948_v58 = vsel %vm836_vm3, %v2849_v26, 0.0  ;;  %v2451_v54 = vld [vmem:[%s3520_s2 + $0xcc] ss:$16 sps:$4 sm:$0xff]  }
 0x1c2   :  { %v941_v30 = vadd.f32 %v940_v59, %v939_v53  ;;  %v1136_v63 = vadd.f32 %v1135_v49, %v1134_v23  ;;  %v1027_v60 = vmul.f32 %v2862_v44, %v2862_v44  ;;  %v950_v35 = vsel %vm836_vm3, %v2862_v44, 0.0  ;;  %v2438_v49 = vld [vmem:[%s3520_s2 + $0x28] ss:$16 sps:$4 sm:$0xff]  }
 0x1c3   :  { %1735 = vmatmul.mubr.bf16.gmra.mrb[56].mxu1 %v2429_v50  ;;  %v1145_v39 = vsel %vm836_vm3, %v1026_v10, 0.0  ;;  %v1028_v62 = vmul.f32 %v2880_v11, %v2880_v11  ;;  %v952_v26 = vsel %vm836_vm3, %v2880_v11, 0.0  ;;  %v1029_v20 = vmul.f32 %v2894_v34, %v2894_v34  ;;  %v2436_v11 = vld [vmem:[%s3520_s2 + $0x2c] ss:$16 sps:$4 sm:$0xff]  }
 0x1c4   :  { %v943_v29 = vadd.f32 %v942_v56, %v941_v30  ;;  %v1138_v8 = vadd.f32 %v1137_v43, %v1136_v63  ;;  %2230 = vmatpush3.bf16.msra.mxu1 %v1484_v3  ;;  %1742 = vmatprep.mubr.bf16.mxu1 %v2430_v7  ;;  %v1147_v57 = vsel %vm836_vm3, %v1027_v60, 0.0  ;;  %v954_v44 = vsel %vm836_vm3, %v2894_v34, 0.0  ;;  %v3535_v50 = vld [vmem:[#allocation3_spill] sm:$0xff] }
 0x1c5   :  { %2231 = vmatprep.subr.bf16.mxu1 %v3052_v4  ;;  %v2435_v4 = vld [vmem:[%s3520_s2 + $0xc] ss:$16 sps:$4 sm:$0xff]   ;;  %v1149_v12 = vsel %vm836_vm3, %v1028_v62, 0.0  ;;  %v1030_v24 = vmul.f32 %v2912_v0, %v2912_v0  ;;  %v1151_v6 = vsel %vm836_vm3, %v1029_v20, 0.0  ;;  %v956_v17 = vsel %vm836_vm3, %v2912_v0, 0.0 }
 0x1c6   :  { %v945_v2 = vadd.f32 %v944_v40, %v943_v29  ;;  %v1140_v19 = vadd.f32 %v1139_v5, %v1138_v8  ;;  %v1031_v34 = vmul.f32 %v3534_v16, %v3534_v16  ;;  %v958_v27 = vsel %vm836_vm3, %v3534_v16, 0.0  ;;  %v2441_v43 = vld [vmem:[%s3520_s2 + $0x48] ss:$16 sps:$4 sm:$0xff]   ;;  %v2442_v56 = vld [vmem:[%s3520_s2 + $0x6c] ss:$16 sps:$4 sm:$0xff]  }
 0x1c7   :  { %v1153_v37 = vsel %vm836_vm3, %v1030_v24, 0.0  ;;  %v1032_v22 = vmul.f32 %v2947_v28, %v2947_v28  ;;  %v960_v0 = vsel %vm836_vm3, %v2947_v28, 0.0  ;;  %v1033_v3 = vmul.f32 %v3535_v50, %v3535_v50  ;;  %v2439_v28 = vld [vmem:[%s3520_s2 + $0x4c] ss:$16 sps:$4 sm:$0xff]   ;;  %v2447_v8 = vld [vmem:[%s3520_s2 + $0x88] ss:$16 sps:$4 sm:$0xff]  }
 0x1c8   :  { %v947_v45 = vadd.f32 %v946_v9, %v945_v2  ;;  %v1142_v25 = vadd.f32 %v1141_v15, %v1140_v19  ;;  %2232 = vmatpush3.bf16.msra.mxu1 %v1485_v52  ;;  %v1155_v13 = vsel %vm836_vm3, %v1031_v34, 0.0  ;;  %v962_v7 = vsel %vm836_vm3, %v3535_v50, 0.0  ;;  %v2445_v29 = vld [vmem:[%s3520_s2 + $0x8c] ss:$16 sps:$4 sm:$0xff]   ;;  %v2450_v40 = vld [vmem:[%s3520_s2 + $0xa8] ss:$16 sps:$4 sm:$0xff]  }
 0x1c9   :  { %v1157_v52 = vsel %vm836_vm3, %v1032_v22, 0.0  ;;  %v1159_v30 = vsel %vm836_vm3, %v1033_v3, 0.0  ;;  %v2448_v5 = vld [vmem:[%s3520_s2 + $0xac] ss:$16 sps:$4 sm:$0xff]   ;;  %v2453_v2 = vld [vmem:[%s3520_s2 + $0xc8] ss:$16 sps:$4 sm:$0xff]  }
 0x1ca   :  { %v949_v32 = vadd.f32 %v948_v58, %v947_v45  ;;  %v1144_v31 = vadd.f32 %v1143_v41, %v1142_v25  ;;  %v2454_v19 = vld [vmem:[%s3520_s2 + $0xec] ss:$16 sps:$4 sm:$0xff]   ;;  %v2456_v15 = vld [vmem:[%s3520_s2 + $0xe8] ss:$16 sps:$4 sm:$0xff]  }
 0x1cb   :  { %1743 = vmatmul.mubr.bf16.gmra.mrb[60].mxu1 %v2432_v42 }
 0x1cc   :  { %v951_v46 = vadd.f32 %v950_v35, %v949_v32  ;;  %v1146_v51 = vadd.f32 %v1145_v39, %v1144_v31  ;;  %1783 = vmatprep.mubr.bf16.mxu1 %v2435_v4 }
 0x1ce   :  { %v953_v21 = vadd.f32 %v952_v26, %v951_v46  ;;  %v1148_v61 = vadd.f32 %v1147_v57, %v1146_v51 }
 0x1d0   :  { %v955_v33 = vadd.f32 %v954_v44, %v953_v21  ;;  %v1150_v18 = vadd.f32 %v1149_v12, %v1148_v61 }
 0x1d2   :  { %v957_v14 = vadd.f32 %v956_v17, %v955_v33  ;;  %v1152_v36 = vadd.f32 %v1151_v6, %v1150_v18 }
 0x1d3   :  { %1784 = vmatmul.mubr.bf16.vlgmr.msra.gmra.mrb[64].mxu1 %v2433_v48 }
 0x1d4   :  { %v959_v1 = vadd.f32 %v958_v27, %v957_v14  ;;  %v1154_v38 = vadd.f32 %v1153_v37, %v1152_v36  ;;  %1791 = vmatprep.mubr.bf16.mxu1 %v2436_v11 }
 0x1d6   :  { %v961_v53 = vadd.f32 %v960_v0, %v959_v1  ;;  %v1156_v23 = vadd.f32 %v1155_v13, %v1154_v38 }
 0x1d8   :  { %v963_v59 = vadd.f32 %v962_v7, %v961_v53  ;;  %v1158_v47 = vadd.f32 %v1157_v52, %v1156_v23 }
 0x1da   :  { %v1160_v63 = vadd.f32 %v1159_v30, %v1158_v47  ;;  %v964_v20 = vrot.slane %v963_v59, 4 }
 0x1db   :  { %1792 = vmatmul.mubr.bf16.gmra.mrb[68].mxu1 %v2438_v49 }
 0x1dc   :  { %1799 = vmatprep.mubr.bf16.mxu1 %v2439_v28  ;;  %v965_v61 = vadd.f32 %v964_v20, %v963_v59  ;;  %v1161_v12 = vrot.slane %v1160_v63, 4 }
 0x1de   :  { %v966_v11 = vrot.slane %v965_v61, 2  ;;  %v1162_v6 = vadd.f32 %v1161_v12, %v1160_v63 }
 0x1e0   :  { %v967_v16 = vadd.f32 %v966_v11, %v965_v61  ;;  %v1163_v34 = vrot.slane %v1162_v6, 2 }
 0x1e2   :  { %v968_v1 = vrot.slane %v967_v16, 1  ;;  %v1164_v38 = vadd.f32 %v1163_v34, %v1162_v6 }
 0x1e3   :  { %1800 = vmatmul.mubr.bf16.gmra.mrb[72].mxu1 %v2441_v43 }
 0x1e4   :  { %1807 = vmatprep.mubr.bf16.mxu1 %v2442_v56  ;;  %v969_v0 = vadd.f32 %v968_v1, %v967_v16  ;;  %v1165_v50 = vrot.slane %v1164_v38, 1 }
 0x1e6   :  { %v1166_v49 = vadd.f32 %v1165_v50, %v1164_v38  ;;  %v3392_v59 = vmul.f32 0.001953125, %v969_v0 }
 0x1e8   :  { %v1168_v28 = vmul.f32 0.001953125, %v1166_v49  ;;  %v1169_v30 = vmul.f32 %v3392_v59, %v3392_v59 }
 0x1eb   :  { %1808 = vmatmul.mubr.bf16.gmra.mrb[76].mxu1 %v2444_v55 }
 0x1ec   :  { %1815 = vmatprep.mubr.bf16.mxu1 %v2445_v29 }
 0x1f3   :  { %1816 = vmatmul.mubr.bf16.gmra.mrb[80].mxu1 %v2447_v8  ;;  %v1170_v8 = vsub.f32 %v1168_v28, %v1169_v30 }
 0x1f4   :  { %1823 = vmatprep.mubr.bf16.mxu1 %v2448_v5 }
 0x1fb   :  { %1824 = vmatmul.mubr.bf16.gmra.mrb[84].mxu1 %v2450_v40  ;;  %v1864_v40 = vadd.f32 1e-05, %v1170_v8 }
 0x1fc   :  { %1831 = vmatprep.mubr.bf16.mxu1 %v2451_v54 }
 0x1fd   :  { %2457 = vrsqrt.f32 %v1864_v40 }
 0x203   :  { %1832 = vmatmul.mubr.bf16.gmra.mrb[88].mxu1 %v2453_v2 }
 0x204   :  { %1839 = vmatprep.mubr.bf16.mxu1 %v2454_v19 }
 0x20b   :  { %1840 = vmatmul.mubr.bf16.gmra.mrb[92].mxu1 %v2456_v15 }
 0x266   :  { %v2169_v9 = vpop.f32.mrb[32].mxu1 }
 0x267   :  { %v2170_v10 = vpop.f32.mrb[33].mxu1 }
 0x268   :  { %v3368_v42 = vadd.f32 %v2170_v10, %v2169_v9  ;;  %v2172_v45 = vpop.f32.mrb[34].mxu1 }
 0x269   :  { %v2173_v25 = vpop.f32.mrb[35].mxu1 }
 0x26a   :  { %v3370_v4 = vadd.f32 %v2173_v25, %v2172_v45 }
 0x26e   :  { %v2175_v41 = vpop.f32.mrb[36].mxu1 }
 0x26f   :  { %v2176_v58 = vpop.f32.mrb[37].mxu1 }
 0x270   :  { %v3372_v60 = vadd.f32 %v2176_v58, %v2175_v41  ;;  %v2178_v32 = vpop.f32.mrb[38].mxu1 }
 0x271   :  { %v2179_v31 = vpop.f32.mrb[39].mxu1 }
 0x272   :  { %v3374_v39 = vadd.f32 %v2179_v31, %v2178_v32 }
 0x276   :  { %v2181_v35 = vpop.f32.mrb[40].mxu1 }
 0x277   :  { %v2182_v62 = vpop.f32.mrb[41].mxu1 }
 0x278   :  { %v3376_v46 = vadd.f32 %v2182_v62, %v2181_v35  ;;  %v2184_v51 = vpop.f32.mrb[42].mxu1 }
 0x279   :  { %v2185_v57 = vpop.f32.mrb[43].mxu1 }
 0x27a   :  { %v3378_v26 = vadd.f32 %v2185_v57, %v2184_v51  ;;  %v3407_v51 = vpop.eup %2457 }
 0x27e   :  { %v2187_v21 = vpop.f32.mrb[44].mxu1 }
 0x27f   :  { %v2188_v44 = vpop.f32.mrb[45].mxu1 }
 0x280   :  { %v3380_v24 = vadd.f32 %v2188_v44, %v2187_v21  ;;  %v2190_v48 = vpop.f32.mrb[46].mxu1 }
 0x281   :  { %v2191_v33 = vpop.f32.mrb[47].mxu1 }
 0x282   :  { %v3382_v18 = vadd.f32 %v2191_v33, %v2190_v48 }
 0x286   :  { %v2193_v17 = vpop.f32.mrb[48].mxu1 }
 0x287   :  { %v2194_v14 = vpop.f32.mrb[49].mxu1 }
 0x288   :  { %v3384_v36 = vadd.f32 %v2194_v14, %v2193_v17  ;;  %v2196_v37 = vpop.f32.mrb[50].mxu1 }
 0x289   :  { %v2197_v27 = vpop.f32.mrb[51].mxu1 }
 0x28a   :  { %v3386_v22 = vadd.f32 %v2197_v27, %v2196_v37 }
 0x28e   :  { %v2199_v13 = vpop.f32.mrb[52].mxu1 }
 0x28f   :  { %v2200_v3 = vpop.f32.mrb[53].mxu1 }
 0x290   :  { %v3388_v53 = vadd.f32 %v2200_v3, %v2199_v13  ;;  %v2202_v23 = vpop.f32.mrb[54].mxu1 }
 0x291   :  { %v2203_v52 = vpop.f32.mrb[55].mxu1 }
 0x292   :  { %v3390_v7 = vadd.f32 %v2203_v52, %v2202_v23 }
 0x296   :  { %v2205_v47 = vpop.f32.mrb[56].mxu1 }
 0x297   :  { %v2206_v63 = vpop.f32.mrb[57].mxu1 }
 0x298   :  { %v3396_v43 = vadd.f32 %v2206_v63, %v2205_v47  ;;  %v2208_v56 = vpop.f32.mrb[58].mxu1 }
 0x299   :  { %v2209_v55 = vpop.f32.mrb[59].mxu1 }
 0x29a   :  { %v3398_v29 = vadd.f32 %v2209_v55, %v2208_v56 }
 0x29e   :  { %v2211_v5 = vpop.f32.mrb[60].mxu1 }
 0x29f   :  { %v2212_v54 = vpop.f32.mrb[61].mxu1 }
 0x2a0   :  { %v3400_v2 = vadd.f32 %v2212_v54, %v2211_v5  ;;  %v2214_v19 = vpop.f32.mrb[62].mxu1 }
 0x2a1   :  { %v2215_v15 = vpop.f32.mrb[63].mxu1 }
 0x2a2   :  { %v3402_v9 = vadd.f32 %v2215_v15, %v2214_v19 }
 0x2a6   :  { %v2233_v10 = vpop.f32.mrb[64].mxu1 }
 0x2a7   :  { %v2234_v45 = vpop.f32.mrb[65].mxu1 }
 0x2a8   :  { %v2235_v25 = vadd.f32 %v2234_v45, %v2233_v10  ;;  %v2236_v41 = vpop.f32.mrb[66].mxu1 }
 0x2a9   :  { %v2237_v58 = vpop.f32.mrb[67].mxu1 }
 0x2aa   :  { %v1786_v32 = vadd.f32 %v2235_v25, %v3368_v42  ;;  %v2238_v31 = vadd.f32 %v2237_v58, %v2236_v41 }
 0x2ac   :  { %v1848_v35 = vsub.f32 %v1786_v32, %v3392_v59  ;;  %v1789_v62 = vadd.f32 %v2238_v31, %v3370_v4 }
 0x2ae   :  { %v1866_v57 = vmul.f32 %v3407_v51, %v1848_v35  ;;  %v1849_v20 = vsub.f32 %v1789_v62, %v3392_v59  ;;  %v2239_v21 = vpop.f32.mrb[68].mxu1 }
 0x2af   :  { %v2240_v61 = vpop.f32.mrb[69].mxu1 }
 0x2b0   :  { %v1882_v12 = vmax.f32 %v1866_v57, 0.0  ;;  %v1867_v44 = vmul.f32 %v3407_v51, %v1849_v20  ;;  %v2241_v48 = vadd.f32 %v2240_v61, %v2239_v21  ;;  %v2242_v33 = vpop.f32.mrb[70].mxu1 }
 0x2b1   :  { %v2243_v42 = vpop.f32.mrb[71].mxu1 }
 0x2b2   :  { %v2137_v11 = vpack.c.bf16 %v1882_v12, %v1882_v12  ;;  %v1883_v6 = vmax.f32 %v1867_v44, 0.0  ;;  %v1794_v17 = vadd.f32 %v2241_v48, %v3372_v60  ;;  %v2244_v4 = vadd.f32 %v2243_v42, %v2242_v33 }
 0x2b4   :  { %1963 = vst.msk [vmem:[%s3521_s3] sm:$0xf] %vm1962_vm5, %v2137_v11  ;;  %v2138_v16 = vpack.c.bf16 %v1883_v6, %v1883_v6  ;;  %v1850_v34 = vsub.f32 %v1794_v17, %v3392_v59  ;;  %v1797_v14 = vadd.f32 %v2244_v4, %v3374_v39 }
 0x2b6   :  { %1964 = vst.msk [vmem:[%s3521_s3 + $0x4] sm:$0xf] %vm1962_vm5, %v2138_v16  ;;  %v1868_v37 = vmul.f32 %v3407_v51, %v1850_v34  ;;  %v1851_v60 = vsub.f32 %v1797_v14, %v3392_v59  ;;  %v2245_v27 = vpop.f32.mrb[72].mxu1 }
 0x2b7   :  { %v2246_v1 = vpop.f32.mrb[73].mxu1 }
 0x2b8   :  { %v1884_v38 = vmax.f32 %v1868_v37, 0.0  ;;  %v1869_v13 = vmul.f32 %v3407_v51, %v1851_v60  ;;  %v2247_v0 = vadd.f32 %v2246_v1, %v2245_v27  ;;  %v2248_v50 = vpop.f32.mrb[74].mxu1 }
 0x2b9   :  { %v2249_v3 = vpop.f32.mrb[75].mxu1 }
 0x2ba   :  { %v2139_v23 = vpack.c.bf16 %v1884_v38, %v1884_v38  ;;  %v1885_v52 = vmax.f32 %v1869_v13, 0.0  ;;  %v1802_v39 = vadd.f32 %v2247_v0, %v3376_v46  ;;  %v2250_v49 = vadd.f32 %v2249_v3, %v2248_v50 }
 0x2bc   :  { %1965 = vst.msk [vmem:[%s3521_s3 + $0x8] sm:$0xf] %vm1962_vm5, %v2139_v23  ;;  %v2140_v47 = vpack.c.bf16 %v1885_v52, %v1885_v52  ;;  %v1852_v28 = vsub.f32 %v1802_v39, %v3392_v59  ;;  %v1805_v30 = vadd.f32 %v2250_v49, %v3378_v26 }
 0x2be   :  { %1966 = vst.msk [vmem:[%s3521_s3 + $0xc] sm:$0xf] %vm1962_vm5, %v2140_v47  ;;  %v1870_v63 = vmul.f32 %v3407_v51, %v1852_v28  ;;  %v1853_v46 = vsub.f32 %v1805_v30, %v3392_v59  ;;  %v2251_v56 = vpop.f32.mrb[76].mxu1 }
 0x2bf   :  { %v2252_v55 = vpop.f32.mrb[77].mxu1 }
 0x2c0   :  { %v1886_v8 = vmax.f32 %v1870_v63, 0.0  ;;  %v1871_v5 = vmul.f32 %v3407_v51, %v1853_v46  ;;  %v2253_v40 = vadd.f32 %v2252_v55, %v2251_v56  ;;  %v2254_v54 = vpop.f32.mrb[78].mxu1 }
 0x2c1   :  { %v2255_v19 = vpop.f32.mrb[79].mxu1 }
 0x2c2   :  { %v2141_v15 = vpack.c.bf16 %v1886_v8, %v1886_v8  ;;  %v1887_v10 = vmax.f32 %v1871_v5, 0.0  ;;  %v1810_v26 = vadd.f32 %v2253_v40, %v3380_v24  ;;  %v2256_v45 = vadd.f32 %v2255_v19, %v2254_v54 }
 0x2c4   :  { %1967 = vst.msk [vmem:[%s3521_s3 + $0x10] sm:$0xf] %vm1962_vm5, %v2141_v15  ;;  %v2142_v25 = vpack.c.bf16 %v1887_v10, %v1887_v10  ;;  %v1854_v41 = vsub.f32 %v1810_v26, %v3392_v59  ;;  %v1813_v58 = vadd.f32 %v2256_v45, %v3382_v18 }
 0x2c6   :  { %1968 = vst.msk [vmem:[%s3521_s3 + $0x14] sm:$0xf] %vm1962_vm5, %v2142_v25  ;;  %v1872_v32 = vmul.f32 %v3407_v51, %v1854_v41  ;;  %v1855_v24 = vsub.f32 %v1813_v58, %v3392_v59  ;;  %v2257_v31 = vpop.f32.mrb[80].mxu1 }
 0x2c7   :  { %v2258_v35 = vpop.f32.mrb[81].mxu1 }
 0x2c8   :  { %v1888_v62 = vmax.f32 %v1872_v32, 0.0  ;;  %v1873_v57 = vmul.f32 %v3407_v51, %v1855_v24  ;;  %v2259_v20 = vadd.f32 %v2258_v35, %v2257_v31  ;;  %v2260_v21 = vpop.f32.mrb[82].mxu1 }
 0x2c9   :  { %v2261_v61 = vpop.f32.mrb[83].mxu1 }
 0x2ca   :  { %v2143_v12 = vpack.c.bf16 %v1888_v62, %v1888_v62  ;;  %v1889_v44 = vmax.f32 %v1873_v57, 0.0  ;;  %v1818_v18 = vadd.f32 %v2259_v20, %v3384_v36  ;;  %v2262_v48 = vadd.f32 %v2261_v61, %v2260_v21 }
 0x2cc   :  { %1969 = vst.msk [vmem:[%s3521_s3 + $0x18] sm:$0xf] %vm1962_vm5, %v2143_v12  ;;  %v2144_v33 = vpack.c.bf16 %v1889_v44, %v1889_v44  ;;  %v1856_v42 = vsub.f32 %v1818_v18, %v3392_v59  ;;  %v1821_v11 = vadd.f32 %v2262_v48, %v3386_v22 }
 0x2ce   :  { %1970 = vst.msk [vmem:[%s3521_s3 + $0x1c] sm:$0xf] %vm1962_vm5, %v2144_v33  ;;  %v1874_v6 = vmul.f32 %v3407_v51, %v1856_v42  ;;  %v1857_v36 = vsub.f32 %v1821_v11, %v3392_v59  ;;  %v2263_v17 = vpop.f32.mrb[84].mxu1 }
 0x2cf   :  { %v2264_v4 = vpop.f32.mrb[85].mxu1 }
 0x2d0   :  { %v1890_v16 = vmax.f32 %v1874_v6, 0.0  ;;  %v1875_v34 = vmul.f32 %v3407_v51, %v1857_v36  ;;  %v2265_v14 = vadd.f32 %v2264_v4, %v2263_v17  ;;  %v2266_v37 = vpop.f32.mrb[86].mxu1 }
 0x2d1   :  { %v2267_v60 = vpop.f32.mrb[87].mxu1 }
 0x2d2   :  { %v2145_v27 = vpack.c.bf16 %v1890_v16, %v1890_v16  ;;  %v1891_v1 = vmax.f32 %v1875_v34, 0.0  ;;  %v1826_v22 = vadd.f32 %v2265_v14, %v3388_v53  ;;  %v2268_v38 = vadd.f32 %v2267_v60, %v2266_v37 }
 0x2d4   :  { %1971 = vst.msk [vmem:[%s3521_s3 + $0x20] sm:$0xf] %vm1962_vm5, %v2145_v27  ;;  %v2146_v13 = vpack.c.bf16 %v1891_v1, %v1891_v1  ;;  %v1858_v0 = vsub.f32 %v1826_v22, %v3392_v59  ;;  %v1829_v50 = vadd.f32 %v2268_v38, %v3390_v7 }
 0x2d6   :  { %1972 = vst.msk [vmem:[%s3521_s3 + $0x24] sm:$0xf] %vm1962_vm5, %v2146_v13  ;;  %v1876_v3 = vmul.f32 %v3407_v51, %v1858_v0  ;;  %v1859_v53 = vsub.f32 %v1829_v50, %v3392_v59  ;;  %v2269_v23 = vpop.f32.mrb[88].mxu1 }
 0x2d7   :  { %v2270_v52 = vpop.f32.mrb[89].mxu1 }
 0x2d8   :  { %v1892_v39 = vmax.f32 %v1876_v3, 0.0  ;;  %v1877_v49 = vmul.f32 %v3407_v51, %v1859_v53  ;;  %v2271_v47 = vadd.f32 %v2270_v52, %v2269_v23  ;;  %v2272_v28 = vpop.f32.mrb[90].mxu1 }
 0x2d9   :  { %v2273_v30 = vpop.f32.mrb[91].mxu1 }
 0x2da   :  { %v2147_v63 = vpack.c.bf16 %v1892_v39, %v1892_v39  ;;  %v1893_v46 = vmax.f32 %v1877_v49, 0.0  ;;  %v1834_v7 = vadd.f32 %v2271_v47, %v3396_v43  ;;  %v2274_v56 = vadd.f32 %v2273_v30, %v2272_v28 }
 0x2dc   :  { %1973 = vst.msk [vmem:[%s3521_s3 + $0x28] sm:$0xf] %vm1962_vm5, %v2147_v63  ;;  %v2148_v55 = vpack.c.bf16 %v1893_v46, %v1893_v46  ;;  %v1860_v8 = vsub.f32 %v1834_v7, %v3392_v59  ;;  %v1837_v5 = vadd.f32 %v2274_v56, %v3398_v29 }
 0x2de   :  { %1974 = vst.msk [vmem:[%s3521_s3 + $0x2c] sm:$0xf] %vm1962_vm5, %v2148_v55  ;;  %v1878_v40 = vmul.f32 %v3407_v51, %v1860_v8  ;;  %v1861_v43 = vsub.f32 %v1837_v5, %v3392_v59  ;;  %v2275_v54 = vpop.f32.mrb[92].mxu1 }
 0x2df   :  { %v2276_v19 = vpop.f32.mrb[93].mxu1 }
 0x2e0   :  { %v1894_v15 = vmax.f32 %v1878_v40, 0.0  ;;  %v1879_v10 = vmul.f32 %v3407_v51, %v1861_v43  ;;  %v2277_v26 = vadd.f32 %v2276_v19, %v2275_v54  ;;  %v2278_v45 = vpop.f32.mrb[94].mxu1 }
 0x2e1   :  { %v2279_v25 = vpop.f32.mrb[95].mxu1 }
 0x2e2   :  { %v2149_v41 = vpack.c.bf16 %v1894_v15, %v1894_v15  ;;  %v1895_v58 = vmax.f32 %v1879_v10, 0.0  ;;  %v1842_v29 = vadd.f32 %v2277_v26, %v3400_v2  ;;  %v2280_v32 = vadd.f32 %v2279_v25, %v2278_v45 }
 0x2e4   :  { %1975 = vst.msk [vmem:[%s3521_s3 + $0x30] sm:$0xf] %vm1962_vm5, %v2149_v41  ;;  %v2150_v24 = vpack.c.bf16 %v1895_v58, %v1895_v58  ;;  %v1862_v31 = vsub.f32 %v1842_v29, %v3392_v59  ;;  %v1845_v35 = vadd.f32 %v2280_v32, %v3402_v9 }
 0x2e6   :  { %1976 = vst.msk [vmem:[%s3521_s3 + $0x34] sm:$0xf] %vm1962_vm5, %v2150_v24  ;;  %v1880_v62 = vmul.f32 %v3407_v51, %v1862_v31  ;;  %v1863_v2 = vsub.f32 %v1845_v35, %v3392_v59 }
 0x2e8   :  { %v1896_v57 = vmax.f32 %v1880_v62, 0.0  ;;  %v1881_v20 = vmul.f32 %v3407_v51, %v1863_v2 }
 0x2ea   :  { %v2151_v21 = vpack.c.bf16 %v1896_v57, %v1896_v57  ;;  %v1897_v61 = vmax.f32 %v1881_v20, 0.0 }
 0x2ec   :  { %1977 = vst.msk [vmem:[%s3521_s3 + $0x38] sm:$0xf] %vm1962_vm5, %v2151_v21  ;;  %v2152_v9 = vpack.c.bf16 %v1897_v61, %v1897_v61 }
 0x2ee   :  { %1978 = vst.msk [vmem:[%s3521_s3 + $0x3c] sm:$0xf] %vm1962_vm5, %v2152_v9 }

// kernel: cnn_forward.4
= control target key start
LH: loop header
LB: loop body
LE: loop exit
PB: predicated region body
PF: predicated region fallthrough
CT: control target
= control target key end

     0   :  { %vm759_vm0 = vcmask 261120   ;;  %vm1172_vm1 = vcmask 523264   ;;  %vm1437_vm3 = vcmask 519168   ;;  %s2529_s1 = inlined_call_operand.vmem [shape: bf16[800,64], index: 1, kind: input, shape index: {}]   ;;  %s2530_s0 = inlined_call_operand.vmem [shape: bf16[128,800], index: 0, kind: input, shape index: {}]   ;;  %s2531_s2 = inlined_call_operand.vmem [shape: bf16[32,128], index: 2, kind: input, shape index: {}]   ;;  %s2532_s3 = inlined_call_operand.vmem [shape: bf16[32,64], index: 3, kind: output, shape index: {}]  }
   0x1   :  { %v1838_v0 = vld [vmem:[%s2529_s1 + $0x40] sm:$0xff]   ;;  %v1842_v4 = vld [vmem:[%s2529_s1 + $0x48] sm:$0xff]   ;;  %v1846_v8 = vld [vmem:[%s2529_s1 + $0x50] sm:$0xff]  }
   0x2   :  { %v1839_v1 = vld [vmem:[%s2529_s1 + $0xc0] sm:$0xff]   ;;  %1570 = vmatprep.subr.bf16.mxu0 %v1838_v0  ;;  %v1843_v5 = vld [vmem:[%s2529_s1 + $0xc8] sm:$0xff]   ;;  %v1847_v9 = vld [vmem:[%s2529_s1 + $0xd0] sm:$0xff]  }
   0x3   :  { %v1840_v2 = vld [vmem:[%s2529_s1] sm:$0xff]   ;;  %1634 = vmatprep.subr.bf16.mxu1 %v1839_v1  ;;  %v1844_v6 = vld [vmem:[%s2529_s1 + $0x8] sm:$0xff]   ;;  %v1848_v10 = vld [vmem:[%s2529_s1 + $0x10] sm:$0xff]  }
   0x4   :  { %v1841_v3 = vld [vmem:[%s2529_s1 + $0x80] sm:$0xff]   ;;  %1571 = vmatpush3.bf16.msra.mxu0 %v1840_v2  ;;  %v1845_v7 = vld [vmem:[%s2529_s1 + $0x88] sm:$0xff]   ;;  %v1849_v11 = vld [vmem:[%s2529_s1 + $0x90] sm:$0xff]  }
   0x5   :  { %1635 = vmatpush3.bf16.msra.mxu1 %v1841_v3  ;;  %1572 = vmatprep.subr.bf16.mxu0 %v1842_v4  ;;  %v1850_v12 = vld [vmem:[%s2529_s1 + $0x58] sm:$0xff]   ;;  %v1854_v16 = vld [vmem:[%s2529_s1 + $0x60] sm:$0xff]   ;;  %v1858_v20 = vld [vmem:[%s2529_s1 + $0x68] sm:$0xff]  }
   0x6   :  { %1636 = vmatprep.subr.bf16.mxu1 %v1843_v5  ;;  %v1851_v13 = vld [vmem:[%s2529_s1 + $0xd8] sm:$0xff]   ;;  %v1855_v17 = vld [vmem:[%s2529_s1 + $0xe0] sm:$0xff]   ;;  %v1859_v21 = vld [vmem:[%s2529_s1 + $0xe8] sm:$0xff]  }
   0x7   :  { %v1852_v14 = vld [vmem:[%s2529_s1 + $0x18] sm:$0xff]   ;;  %v1856_v18 = vld [vmem:[%s2529_s1 + $0x20] sm:$0xff]   ;;  %v1860_v22 = vld [vmem:[%s2529_s1 + $0x28] sm:$0xff]  }
   0x8   :  { %1573 = vmatpush3.bf16.msra.mxu0 %v1844_v6  ;;  %v1853_v15 = vld [vmem:[%s2529_s1 + $0x98] sm:$0xff]   ;;  %v1857_v19 = vld [vmem:[%s2529_s1 + $0xa0] sm:$0xff]   ;;  %v1861_v23 = vld [vmem:[%s2529_s1 + $0xa8] sm:$0xff]  }
   0x9   :  { %1637 = vmatpush3.bf16.msra.mxu1 %v1845_v7  ;;  %1574 = vmatprep.subr.bf16.mxu0 %v1846_v8  ;;  %v1862_v24 = vld [vmem:[%s2529_s1 + $0x70] sm:$0xff]   ;;  %v1866_v28 = vld [vmem:[%s2529_s1 + $0x78] sm:$0xff]   ;;  %v1872_v33 = vld [vmem:[%s2530_s0 + $0x4] ss:$28 sps:$4 sm:$0xff]  }
   0xa   :  { %1638 = vmatprep.subr.bf16.mxu1 %v1847_v9  ;;  %v1863_v25 = vld [vmem:[%s2529_s1 + $0xf0] sm:$0xff]   ;;  %v1867_v29 = vld [vmem:[%s2529_s1 + $0xf8] sm:$0xff]   ;;  %v1873_v34 = vld [vmem:[%s2530_s0 + $0x8] ss:$28 sps:$4 sm:$0xff]   ;;  %816 = vmatprep.mubr.bf16.mxu0 %v1872_v33 }
   0xb   :  { %v1864_v26 = vld [vmem:[%s2529_s1 + $0x30] sm:$0xff]   ;;  %v1868_v30 = vld [vmem:[%s2529_s1 + $0x38] sm:$0xff]   ;;  %v1875_v35 = vld [vmem:[%s2530_s0 + $0xc] ss:$28 sps:$4 sm:$0xff]  }
   0xc   :  { %1575 = vmatpush3.bf16.msra.mxu0 %v1848_v10  ;;  %v1865_v27 = vld [vmem:[%s2529_s1 + $0xb0] sm:$0xff]   ;;  %v1869_v31 = vld [vmem:[%s2529_s1 + $0xb8] sm:$0xff]   ;;  %v1876_v36 = vld [vmem:[%s2529_s1 + $0x140] sm:$0xff]   ;;  %913 = vmatprep.mubr.bf16.mxu1 %v1875_v35 }
   0xd   :  { %1639 = vmatpush3.bf16.msra.mxu1 %v1849_v11  ;;  %1576 = vmatprep.subr.bf16.mxu0 %v1850_v12  ;;  %v1870_v32 = vld [vmem:[%s2530_s0] ss:$28 sps:$4 sm:$0xff]   ;;  %v1882_v40 = vld [vmem:[%s2530_s0 + $0x38] ss:$28 sps:$4 sm:$0xff]   ;;  %v1884_v42 = vld [vmem:[%s2529_s1 + $0x148] sm:$0xff]  }
   0xe   :  { %1640 = vmatprep.subr.bf16.mxu1 %v1851_v13  ;;  %v1877_v37 = vld [vmem:[%s2529_s1 + $0x100] sm:$0xff]   ;;  %v1878_v38 = vld [vmem:[%s2530_s0 + $0x3c] ss:$28 sps:$4 sm:$0xff]   ;;  %v1885_v43 = vld [vmem:[%s2529_s1 + $0x108] sm:$0xff]  }
   0xf   :  { %v1880_v39 = vld [vmem:[%s2530_s0 + $0x44] ss:$28 sps:$4 sm:$0xff]   ;;  %v1886_v44 = vld [vmem:[%s2530_s0 + $0x74] ss:$28 sps:$4 sm:$0xff]   ;;  %v1888_v45 = vld [vmem:[%s2530_s0 + $0x7c] ss:$28 sps:$4 sm:$0xff]  }
  0x10   :  { %1577 = vmatpush3.bf16.msra.mxu0 %v1852_v14  ;;  %v1883_v41 = vld [vmem:[%s2530_s0 + $0x40] ss:$28 sps:$4 sm:$0xff]   ;;  %v1892_v46 = vld [vmem:[%s2529_s1 + $0x150] sm:$0xff]   ;;  %v1894_v50 = vld [vmem:[%s2530_s0 + $0xac] ss:$28 sps:$4 sm:$0xff]  }
  0x11   :  { %1641 = vmatpush3.bf16.msra.mxu1 %v1853_v15  ;;  %1578 = vmatprep.subr.bf16.mxu0 %v1854_v16  ;;  %v1893_v47 = vld [vmem:[%s2529_s1 + $0x110] sm:$0xff]   ;;  %v1900_v52 = vld [vmem:[%s2529_s1 + $0x158] sm:$0xff]   ;;  %v1908_v54 = vld [vmem:[%s2529_s1 + $0x160] sm:$0xff]  }
  0x12   :  { %1642 = vmatprep.subr.bf16.mxu1 %v1855_v17  ;;  %v1890_v48 = vld [vmem:[%s2530_s0 + $0x70] ss:$28 sps:$4 sm:$0xff]   ;;  %v1891_v49 = vld [vmem:[%s2530_s0 + $0x78] ss:$28 sps:$4 sm:$0xff]   ;;  %v1909_v55 = vld [vmem:[%s2529_s1 + $0x120] sm:$0xff]  }
  0x13   :  { %v1896_v51 = vld [vmem:[%s2530_s0 + $0xb4] ss:$28 sps:$4 sm:$0xff]   ;;  %v1901_v53 = vld [vmem:[%s2529_s1 + $0x118] sm:$0xff]   ;;  %v1898_v56 = vld [vmem:[%s2530_s0 + $0xa8] ss:$28 sps:$4 sm:$0xff]  }
  0x14   :  { %1579 = vmatpush3.bf16.msra.mxu0 %v1856_v18  ;;  %v1899_v57 = vld [vmem:[%s2530_s0 + $0xb0] ss:$28 sps:$4 sm:$0xff]   ;;  %v1902_v58 = vld [vmem:[%s2530_s0 + $0xe4] ss:$28 sps:$4 sm:$0xff]   ;;  %v1910_v2 = vld [vmem:[%s2530_s0 + $0x11c] ss:$28 sps:$4 sm:$0xff]  }
  0x15   :  { %1643 = vmatpush3.bf16.msra.mxu1 %v1857_v19  ;;  %1580 = vmatprep.subr.bf16.mxu0 %v1858_v20  ;;  %v1904_v59 = vld [vmem:[%s2530_s0 + $0xec] ss:$28 sps:$4 sm:$0xff]   ;;  %v1906_v62 = vld [vmem:[%s2530_s0 + $0xe0] ss:$28 sps:$4 sm:$0xff]   ;;  %v1924_v0 = vld [vmem:[%s2529_s1 + $0x170] sm:$0xff]  }
  0x16   :  { %1644 = vmatprep.subr.bf16.mxu1 %v1859_v21  ;;  %v1916_v60 = vld [vmem:[%s2529_s1 + $0x168] sm:$0xff]   ;;  %v1925_v1 = vld [vmem:[%s2529_s1 + $0x130] sm:$0xff]   ;;  %v1912_v3 = vld [vmem:[%s2530_s0 + $0x124] ss:$28 sps:$4 sm:$0xff]  }
  0x17   :  { %v1917_v61 = vld [vmem:[%s2529_s1 + $0x128] sm:$0xff]   ;;  %v1932_v4 = vld [vmem:[%s2529_s1 + $0x178] sm:$0xff]   ;;  %v1940_v8 = vld [vmem:[%s2529_s1 + $0x180] sm:$0xff]  }
  0x18   :  { %1581 = vmatpush3.bf16.msra.mxu0 %v1860_v22  ;;  %v1907_v63 = vld [vmem:[%s2530_s0 + $0xe8] ss:$28 sps:$4 sm:$0xff]   ;;  %v1933_v5 = vld [vmem:[%s2529_s1 + $0x138] sm:$0xff]   ;;  %v1918_v9 = vld [vmem:[%s2530_s0 + $0x154] ss:$28 sps:$4 sm:$0xff]  }
  0x19   :  { %1645 = vmatpush3.bf16.msra.mxu1 %v1861_v23  ;;  %1582 = vmatprep.subr.bf16.mxu0 %v1862_v24  ;;  %v1914_v6 = vld [vmem:[%s2530_s0 + $0x118] ss:$28 sps:$4 sm:$0xff]   ;;  %v1915_v7 = vld [vmem:[%s2530_s0 + $0x120] ss:$28 sps:$4 sm:$0xff]   ;;  %v1922_v11 = vld [vmem:[%s2530_s0 + $0x150] ss:$28 sps:$4 sm:$0xff]  }
  0x1a   :  { %1646 = vmatprep.subr.bf16.mxu1 %v1863_v25  ;;  %v1920_v10 = vld [vmem:[%s2530_s0 + $0x15c] ss:$28 sps:$4 sm:$0xff]   ;;  %v1926_v13 = vld [vmem:[%s2530_s0 + $0x18c] ss:$28 sps:$4 sm:$0xff]   ;;  %v1928_v14 = vld [vmem:[%s2530_s0 + $0x194] ss:$28 sps:$4 sm:$0xff]  }
  0x1b   :  { %v1923_v12 = vld [vmem:[%s2530_s0 + $0x158] ss:$28 sps:$4 sm:$0xff]   ;;  %v1930_v15 = vld [vmem:[%s2530_s0 + $0x188] ss:$28 sps:$4 sm:$0xff]   ;;  %v1931_v16 = vld [vmem:[%s2530_s0 + $0x190] ss:$28 sps:$4 sm:$0xff]  }
  0x1c   :  { %1583 = vmatpush3.bf16.msra.mxu0 %v1864_v26  ;;  %v1936_v17 = vld [vmem:[%s2530_s0 + $0x14] ss:$28 sps:$4 sm:$0xff]   ;;  %v1939_v18 = vld [vmem:[%s2530_s0 + $0x19c] ss:$28 sps:$4 sm:$0xff]   ;;  %v1942_v21 = vld [vmem:[%s2530_s0 + $0x4c] ss:$28 sps:$4 sm:$0xff]  }
  0x1d   :  { %1647 = vmatpush3.bf16.msra.mxu1 %v1865_v27  ;;  %1584 = vmatprep.subr.bf16.mxu0 %v1866_v28  ;;  %v1934_v19 = vld [vmem:[%s2530_s0 + $0x10] ss:$28 sps:$4 sm:$0xff]   ;;  %v1937_v20 = vld [vmem:[%s2530_s0 + $0x198] ss:$28 sps:$4 sm:$0xff]   ;;  %v1945_v24 = vld [vmem:[%s2530_s0 + $0x48] ss:$28 sps:$4 sm:$0xff]  }
  0x1e   :  { %1648 = vmatprep.subr.bf16.mxu1 %v1867_v29  ;;  %v1944_v22 = vld [vmem:[%s2530_s0 + $0x18] ss:$28 sps:$4 sm:$0xff]   ;;  %v1941_v23 = vld [vmem:[%s2529_s1 + $0x188] sm:$0xff]   ;;  %v1947_v26 = vld [vmem:[%s2530_s0 + $0x84] ss:$28 sps:$4 sm:$0xff]  }
  0x1f   :  { %v1946_v25 = vld [vmem:[%s2530_s0 + $0x50] ss:$28 sps:$4 sm:$0xff]   ;;  %v1949_v27 = vld [vmem:[%s2530_s0 + $0x88] ss:$28 sps:$4 sm:$0xff]   ;;  %v1950_v28 = vld [vmem:[%s2530_s0 + $0x80] ss:$28 sps:$4 sm:$0xff]  }
  0x20   :  { %1585 = vmatpush3.bf16.msra.mxu0 %v1868_v30  ;;  %v1951_v29 = vld [vmem:[%s2530_s0 + $0xc0] ss:$28 sps:$4 sm:$0xff]   ;;  %v1956_v33 = vld [vmem:[%s2530_s0 + $0x130] ss:$28 sps:$4 sm:$0xff]   ;;  %v1959_v35 = vld [vmem:[%s2530_s0 + $0x168] ss:$28 sps:$4 sm:$0xff]  }
  0x21   :  { %1649 = vmatpush3.bf16.msra.mxu1 %v1869_v31  ;;  %1698 = vmatprep.subr.bf16.mxu0 %v1876_v36  ;;  %v1952_v30 = vld [vmem:[%s2530_s0 + $0xbc] ss:$28 sps:$4 sm:$0xff]  }
  0x22   :  { %1822 = vmatprep.subr.bf16.mxu1 %v1876_v36  ;;  %v1954_v31 = vld [vmem:[%s2530_s0 + $0xf8] ss:$28 sps:$4 sm:$0xff]   ;;  %v1960_v36 = vld [vmem:[%s2530_s0 + $0xf0] ss:$28 sps:$4 sm:$0xff]  }
  0x23   :  { %817 = vmatmul.mubr.bf16.vlgmr.msra.gmra.mrb[0].mxu0 %v1870_v32  ;;  %v1955_v32 = vld [vmem:[%s2530_s0 + $0xb8] ss:$28 sps:$4 sm:$0xff]  }
  0x24   :  { %914 = vmatmul.mubr.bf16.vlgmr.msra.gmra.mrb[0].mxu1 %v1873_v34  ;;  %1699 = vmatpush3.bf16.msra.mxu0 %v1877_v37  ;;  %v1957_v34 = vld [vmem:[%s2530_s0 + $0xf4] ss:$28 sps:$4 sm:$0xff]  }
  0x25   :  { %824 = vmatprep.mubr.bf16.mxu0 %v1878_v38  ;;  %1830 = vmatpush3.bf16.msra.mxu1 %v1877_v37  ;;  %v1961_v37 = vld [vmem:[%s2530_s0 + $0x1a0] ss:$28 sps:$4 sm:$0xff]   ;;  %v1962_v38 = vld [vmem:[%s2530_s0 + $0x12c] ss:$28 sps:$4 sm:$0xff]  }
  0x26   :  { %921 = vmatprep.mubr.bf16.mxu1 %v1880_v39  ;;  %1700 = vmatprep.subr.bf16.mxu0 %v1884_v42  ;;  %v1964_v39 = vld [vmem:[%s2530_s0 + $0x128] ss:$28 sps:$4 sm:$0xff]  }
  0x27   :  { %1823 = vmatprep.subr.bf16.mxu1 %v1884_v42 }
  0x28   :  { %1701 = vmatpush3.bf16.msra.mxu0 %v1885_v43 }
  0x29   :  { %1831 = vmatpush3.bf16.msra.mxu1 %v1885_v43  ;;  %1702 = vmatprep.subr.bf16.mxu0 %v1892_v46 }
  0x2a   :  { %1824 = vmatprep.subr.bf16.mxu1 %v1892_v46 }
  0x2b   :  { %825 = vmatmul.mubr.bf16.gmra.mrb[4].mxu0 %v1882_v40  ;;  %v1965_v40 = vld [vmem:[%s2530_s0 + $0x164] ss:$28 sps:$4 sm:$0xff]  }
  0x2c   :  { %922 = vmatmul.mubr.bf16.gmra.mrb[4].mxu1 %v1883_v41  ;;  %832 = vmatprep.mubr.bf16.mxu0 %v1886_v44  ;;  %v1967_v41 = vld [vmem:[%s2530_s0 + $0x160] ss:$28 sps:$4 sm:$0xff]  }
  0x2d   :  { %929 = vmatprep.mubr.bf16.mxu1 %v1888_v45  ;;  %1703 = vmatpush3.bf16.msra.mxu0 %v1893_v47 }
  0x2e   :  { %1832 = vmatpush3.bf16.msra.mxu1 %v1893_v47  ;;  %1704 = vmatprep.subr.bf16.mxu0 %v1900_v52 }
  0x2f   :  { %1825 = vmatprep.subr.bf16.mxu1 %v1900_v52 }
  0x31   :  { %1705 = vmatpush3.bf16.msra.mxu0 %v1901_v53 }
  0x32   :  { %1833 = vmatpush3.bf16.msra.mxu1 %v1901_v53  ;;  %1706 = vmatprep.subr.bf16.mxu0 %v1908_v54 }
  0x33   :  { %833 = vmatmul.mubr.bf16.gmra.mrb[8].mxu0 %v1890_v48  ;;  %1826 = vmatprep.subr.bf16.mxu1 %v1908_v54 }
  0x34   :  { %930 = vmatmul.mubr.bf16.gmra.mrb[8].mxu1 %v1891_v49  ;;  %840 = vmatprep.mubr.bf16.mxu0 %v1894_v50 }
  0x35   :  { %937 = vmatprep.mubr.bf16.mxu1 %v1896_v51  ;;  %1707 = vmatpush3.bf16.msra.mxu0 %v1909_v55 }
  0x36   :  { %1834 = vmatpush3.bf16.msra.mxu1 %v1909_v55  ;;  %1708 = vmatprep.subr.bf16.mxu0 %v1916_v60 }
  0x37   :  { %1827 = vmatprep.subr.bf16.mxu1 %v1916_v60 }
  0x39   :  { %1709 = vmatpush3.bf16.msra.mxu0 %v1917_v61 }
  0x3a   :  { %1835 = vmatpush3.bf16.msra.mxu1 %v1917_v61  ;;  %1710 = vmatprep.subr.bf16.mxu0 %v1924_v0 }
  0x3b   :  { %841 = vmatmul.mubr.bf16.gmra.mrb[12].mxu0 %v1898_v56  ;;  %1828 = vmatprep.subr.bf16.mxu1 %v1924_v0 }
  0x3c   :  { %938 = vmatmul.mubr.bf16.gmra.mrb[12].mxu1 %v1899_v57  ;;  %848 = vmatprep.mubr.bf16.mxu0 %v1902_v58 }
  0x3d   :  { %945 = vmatprep.mubr.bf16.mxu1 %v1904_v59  ;;  %1711 = vmatpush3.bf16.msra.mxu0 %v1925_v1 }
  0x3e   :  { %1836 = vmatpush3.bf16.msra.mxu1 %v1925_v1  ;;  %1712 = vmatprep.subr.bf16.mxu0 %v1932_v4 }
  0x3f   :  { %1829 = vmatprep.subr.bf16.mxu1 %v1932_v4 }
  0x41   :  { %1713 = vmatpush3.bf16.msra.mxu0 %v1933_v5 }
  0x42   :  { %1837 = vmatpush3.bf16.msra.mxu1 %v1933_v5 }
  0x43   :  { %849 = vmatmul.mubr.bf16.gmra.mrb[16].mxu0 %v1906_v62  ;;  %1782 = vmatprep.subr.bf16.mxu1 %v1940_v8 }
  0x44   :  { %946 = vmatmul.mubr.bf16.gmra.mrb[16].mxu1 %v1907_v63  ;;  %856 = vmatprep.mubr.bf16.mxu0 %v1910_v2 }
  0x45   :  { %953 = vmatprep.mubr.bf16.mxu1 %v1912_v3 }
  0x4b   :  { %857 = vmatmul.mubr.bf16.gmra.mrb[20].mxu0 %v1914_v6 }
  0x4c   :  { %954 = vmatmul.mubr.bf16.gmra.mrb[20].mxu1 %v1915_v7  ;;  %864 = vmatprep.mubr.bf16.mxu0 %v1918_v9  ;;  %v1968_v7 = vld [vmem:[%s2531_s2] sm:$0xff]  }
  0x4d   :  { %961 = vmatprep.mubr.bf16.mxu1 %v1920_v10 }
  0x53   :  { %865 = vmatmul.mubr.bf16.gmra.mrb[24].mxu0 %v1922_v11 }
  0x54   :  { %962 = vmatmul.mubr.bf16.gmra.mrb[24].mxu1 %v1923_v12  ;;  %872 = vmatprep.mubr.bf16.mxu0 %v1926_v13 }
  0x55   :  { %969 = vmatprep.mubr.bf16.mxu1 %v1928_v14 }
  0x5b   :  { %873 = vmatmul.mubr.bf16.gmra.mrb[28].mxu0 %v1930_v15 }
  0x5c   :  { %970 = vmatmul.mubr.bf16.gmra.mrb[28].mxu1 %v1931_v16  ;;  %1010 = vmatprep.mubr.bf16.mxu0 %v1936_v17 }
  0x5d   :  { %1066 = vmatprep.mubr.bf16.mxu1 %v1939_v18 }
  0x63   :  { %1011 = vmatmul.mubr.bf16.vlgmr.msra.gmra.mrb[32].mxu0 %v1934_v19 }
  0x64   :  { %1067 = vmatmul.mubr.bf16.vlgmr.msra.gmra.mrb[32].mxu1 %v1937_v20  ;;  %1018 = vmatprep.mubr.bf16.mxu0 %v1942_v21 }
  0x65   :  { %1783 = vmatpush3.bf16.msra.mxu1 %v1940_v8  ;;  %1786 = vmatprep.mubr.msk.bf16.mxu1 %vm759_vm0, %v1944_v22 }
  0x66   :  { %1784 = vmatprep.subr.bf16.mxu1 %v1941_v23 }
  0x69   :  { %1785 = vmatpush3.bf16.msra.mxu1 %v1941_v23 }
  0x6b   :  { %1019 = vmatmul.mubr.bf16.gmra.mrb[36].mxu0 %v1945_v24 }
  0x6c   :  { %1787 = vmatmul.mubr.msk.bf16.vlgmr.msra.gmra.mrb[36].mxu1 %vm759_vm0, %v1946_v25  ;;  %1026 = vmatprep.mubr.bf16.mxu0 %v1947_v26 }
  0x6d   :  { %1790 = vmatprep.mubr.msk.bf16.mxu1 %vm759_vm0, %v1949_v27 }
  0x73   :  { %1027 = vmatmul.mubr.bf16.gmra.mrb[40].mxu0 %v1950_v28 }
  0x74   :  { %1791 = vmatmul.mubr.msk.bf16.gmra.mrb[40].mxu1 %vm759_vm0, %v1951_v29  ;;  %1034 = vmatprep.mubr.bf16.mxu0 %v1952_v30 }
  0x75   :  { %1794 = vmatprep.mubr.msk.bf16.mxu1 %vm759_vm0, %v1954_v31 }
  0x7b   :  { %1035 = vmatmul.mubr.bf16.gmra.mrb[44].mxu0 %v1955_v32 }
  0x7c   :  { %1795 = vmatmul.mubr.msk.bf16.gmra.mrb[44].mxu1 %vm759_vm0, %v1956_v33  ;;  %1042 = vmatprep.mubr.bf16.mxu0 %v1957_v34 }
  0x7d   :  { %1798 = vmatprep.mubr.msk.bf16.mxu1 %vm759_vm0, %v1959_v35 }
  0x83   :  { %1043 = vmatmul.mubr.bf16.gmra.mrb[48].mxu0 %v1960_v36 }
  0x84   :  { %1799 = vmatmul.mubr.msk.bf16.gmra.mrb[48].mxu1 %vm759_vm0, %v1961_v37  ;;  %1050 = vmatprep.mubr.bf16.mxu0 %v1962_v38 }
  0x85   :  { %1818 = vmatprep.mubr.bf16.mxu1 %v1968_v7 }
  0x8b   :  { %1051 = vmatmul.mubr.bf16.gmra.mrb[52].mxu0 %v1964_v39 }
  0x8c   :  { %1058 = vmatprep.mubr.bf16.mxu0 %v1965_v40 }
  0x93   :  { %1059 = vmatmul.mubr.bf16.gmra.mrb[56].mxu0 %v1967_v41 }
  0xf6   :  { %v1586_v42 = vpop.f32.mrb[0].mxu0 }
  0xf7   :  { %v1650_v43 = vpop.f32.mrb[0].mxu1  ;;  %v1587_v44 = vpop.f32.mrb[1].mxu0 }
  0xf8   :  { %v1588_v45 = vadd.f32 %v1587_v44, %v1586_v42  ;;  %v1651_v46 = vpop.f32.mrb[1].mxu1  ;;  %v1589_v47 = vpop.f32.mrb[2].mxu0 }
  0xf9   :  { %v1652_v48 = vadd.f32 %v1651_v46, %v1650_v43  ;;  %v1653_v49 = vpop.f32.mrb[2].mxu1  ;;  %v1590_v50 = vpop.f32.mrb[3].mxu0 }
  0xfa   :  { %v1591_v51 = vadd.f32 %v1590_v50, %v1589_v47  ;;  %v1654_v52 = vpop.f32.mrb[3].mxu1 }
  0xfb   :  { %v2318_v53 = vadd.f32 %v1652_v48, %v1588_v45  ;;  %v1655_v54 = vadd.f32 %v1654_v52, %v1653_v49 }
  0xfd   :  { %v2320_v55 = vadd.f32 %v1655_v54, %v1591_v51 }
  0xfe   :  { %v1592_v56 = vpop.f32.mrb[4].mxu0 }
  0xff   :  { %v1656_v57 = vpop.f32.mrb[4].mxu1  ;;  %v1593_v58 = vpop.f32.mrb[5].mxu0 }
 0x100   :  { %v1594_v59 = vadd.f32 %v1593_v58, %v1592_v56  ;;  %v1657_v60 = vpop.f32.mrb[5].mxu1  ;;  %v1595_v61 = vpop.f32.mrb[6].mxu0 }
 0x101   :  { %v1658_v62 = vadd.f32 %v1657_v60, %v1656_v57  ;;  %v1659_v63 = vpop.f32.mrb[6].mxu1  ;;  %v1596_v0 = vpop.f32.mrb[7].mxu0 }
 0x102   :  { %v1597_v1 = vadd.f32 %v1596_v0, %v1595_v61  ;;  %v1660_v2 = vpop.f32.mrb[7].mxu1 }
 0x103   :  { %v2322_v3 = vadd.f32 %v1658_v62, %v1594_v59  ;;  %v1661_v4 = vadd.f32 %v1660_v2, %v1659_v63 }
 0x105   :  { %v2324_v5 = vadd.f32 %v1661_v4, %v1597_v1 }
 0x106   :  { %v1598_v6 = vpop.f32.mrb[8].mxu0 }
 0x107   :  { %v1662_v8 = vpop.f32.mrb[8].mxu1  ;;  %v1599_v9 = vpop.f32.mrb[9].mxu0 }
 0x108   :  { %v1600_v10 = vadd.f32 %v1599_v9, %v1598_v6  ;;  %v1663_v11 = vpop.f32.mrb[9].mxu1  ;;  %v1601_v12 = vpop.f32.mrb[10].mxu0 }
 0x109   :  { %v1664_v13 = vadd.f32 %v1663_v11, %v1662_v8  ;;  %v1665_v14 = vpop.f32.mrb[10].mxu1  ;;  %v1602_v15 = vpop.f32.mrb[11].mxu0 }
 0x10a   :  { %v1603_v16 = vadd.f32 %v1602_v15, %v1601_v12  ;;  %v1666_v17 = vpop.f32.mrb[11].mxu1 }
 0x10b   :  { %v2329_v18 = vadd.f32 %v1664_v13, %v1600_v10  ;;  %v1667_v19 = vadd.f32 %v1666_v17, %v1665_v14 }
 0x10d   :  { %v2331_v20 = vadd.f32 %v1667_v19, %v1603_v16 }
 0x10e   :  { %v1604_v21 = vpop.f32.mrb[12].mxu0 }
 0x10f   :  { %v1668_v22 = vpop.f32.mrb[12].mxu1  ;;  %v1605_v23 = vpop.f32.mrb[13].mxu0 }
 0x110   :  { %v1606_v24 = vadd.f32 %v1605_v23, %v1604_v21  ;;  %v1669_v25 = vpop.f32.mrb[13].mxu1  ;;  %v1607_v26 = vpop.f32.mrb[14].mxu0 }
 0x111   :  { %v1670_v27 = vadd.f32 %v1669_v25, %v1668_v22  ;;  %v1671_v28 = vpop.f32.mrb[14].mxu1  ;;  %v1608_v29 = vpop.f32.mrb[15].mxu0 }
 0x112   :  { %v1609_v30 = vadd.f32 %v1608_v29, %v1607_v26  ;;  %v1672_v31 = vpop.f32.mrb[15].mxu1 }
 0x113   :  { %v2333_v32 = vadd.f32 %v1670_v27, %v1606_v24  ;;  %v1673_v33 = vadd.f32 %v1672_v31, %v1671_v28 }
 0x115   :  { %v2335_v34 = vadd.f32 %v1673_v33, %v1609_v30 }
 0x116   :  { %v1610_v35 = vpop.f32.mrb[16].mxu0 }
 0x117   :  { %v1674_v36 = vpop.f32.mrb[16].mxu1  ;;  %v1611_v37 = vpop.f32.mrb[17].mxu0 }
 0x118   :  { %v1612_v38 = vadd.f32 %v1611_v37, %v1610_v35  ;;  %v1675_v39 = vpop.f32.mrb[17].mxu1  ;;  %v1613_v40 = vpop.f32.mrb[18].mxu0 }
 0x119   :  { %v1676_v41 = vadd.f32 %v1675_v39, %v1674_v36  ;;  %v1677_v42 = vpop.f32.mrb[18].mxu1  ;;  %v1614_v43 = vpop.f32.mrb[19].mxu0 }
 0x11a   :  { %v1615_v44 = vadd.f32 %v1614_v43, %v1613_v40  ;;  %v1678_v45 = vpop.f32.mrb[19].mxu1 }
 0x11b   :  { %v2337_v46 = vadd.f32 %v1676_v41, %v1612_v38  ;;  %v1679_v47 = vadd.f32 %v1678_v45, %v1677_v42 }
 0x11d   :  { %v2339_v48 = vadd.f32 %v1679_v47, %v1615_v44 }
 0x11e   :  { %v1616_v49 = vpop.f32.mrb[20].mxu0 }
 0x11f   :  { %v1680_v50 = vpop.f32.mrb[20].mxu1  ;;  %v1617_v51 = vpop.f32.mrb[21].mxu0 }
 0x120   :  { %v1618_v52 = vadd.f32 %v1617_v51, %v1616_v49  ;;  %v1681_v54 = vpop.f32.mrb[21].mxu1  ;;  %v1619_v56 = vpop.f32.mrb[22].mxu0 }
 0x121   :  { %v1682_v57 = vadd.f32 %v1681_v54, %v1680_v50  ;;  %v1683_v58 = vpop.f32.mrb[22].mxu1  ;;  %v1620_v59 = vpop.f32.mrb[23].mxu0 }
 0x122   :  { %v1621_v60 = vadd.f32 %v1620_v59, %v1619_v56  ;;  %v1684_v61 = vpop.f32.mrb[23].mxu1 }
 0x123   :  { %v2341_v62 = vadd.f32 %v1682_v57, %v1618_v52  ;;  %v1685_v63 = vadd.f32 %v1684_v61, %v1683_v58  ;;  %v1283_v52 = vlaneseq }
 0x125   :  { %v2343_v0 = vadd.f32 %v1685_v63, %v1621_v60  ;;  %v2355_v63 = vshrl.u32 %v1283_v52, 7 }
 0x126   :  { %v1622_v1 = vpop.f32.mrb[24].mxu0 }
 0x127   :  { %v1686_v2 = vpop.f32.mrb[24].mxu1  ;;  %v1623_v4 = vpop.f32.mrb[25].mxu0  ;;  %vm1285_vm2 = vcmp.lt.s32.totalorder %v2355_v63, 7 }
 0x128   :  { %v1624_v6 = vadd.f32 %v1623_v4, %v1622_v1  ;;  %v1687_v7 = vpop.f32.mrb[25].mxu1  ;;  %v1625_v8 = vpop.f32.mrb[26].mxu0 }
 0x129   :  { %v1688_v9 = vadd.f32 %v1687_v7, %v1686_v2  ;;  %v1689_v10 = vpop.f32.mrb[26].mxu1  ;;  %v1626_v11 = vpop.f32.mrb[27].mxu0 }
 0x12a   :  { %v1627_v12 = vadd.f32 %v1626_v11, %v1625_v8  ;;  %v1690_v13 = vpop.f32.mrb[27].mxu1 }
 0x12b   :  { %v2345_v14 = vadd.f32 %v1688_v9, %v1624_v6  ;;  %v1691_v15 = vadd.f32 %v1690_v13, %v1689_v10 }
 0x12d   :  { %v2347_v16 = vadd.f32 %v1691_v15, %v1627_v12 }
 0x12e   :  { %v1628_v17 = vpop.f32.mrb[28].mxu0 }
 0x12f   :  { %v1692_v19 = vpop.f32.mrb[28].mxu1  ;;  %v1629_v21 = vpop.f32.mrb[29].mxu0 }
 0x130   :  { %v1630_v22 = vadd.f32 %v1629_v21, %v1628_v17  ;;  %v1693_v23 = vpop.f32.mrb[29].mxu1  ;;  %v1631_v24 = vpop.f32.mrb[30].mxu0 }
 0x131   :  { %v1694_v25 = vadd.f32 %v1693_v23, %v1692_v19  ;;  %v1695_v26 = vpop.f32.mrb[30].mxu1  ;;  %v1632_v27 = vpop.f32.mrb[31].mxu0 }
 0x132   :  { %v1633_v28 = vadd.f32 %v1632_v27, %v1631_v24  ;;  %v1696_v29 = vpop.f32.mrb[31].mxu1 }
 0x133   :  { %v972_v30 = vadd.f32 %v1694_v25, %v1630_v22  ;;  %v1697_v31 = vadd.f32 %v1696_v29, %v1695_v26 }
 0x135   :  { %v975_v33 = vadd.f32 %v1697_v31, %v1633_v28 }
 0x136   :  { %v1714_v35 = vpop.f32.mrb[32].mxu0 }
 0x137   :  { %v1756_v36 = vpop.f32.mrb[32].mxu1  ;;  %v1715_v37 = vpop.f32.mrb[33].mxu0 }
 0x138   :  { %v1716_v38 = vadd.f32 %v1715_v37, %v1714_v35  ;;  %v1757_v39 = vpop.f32.mrb[33].mxu1  ;;  %v1717_v40 = vpop.f32.mrb[34].mxu0 }
 0x139   :  { %v1758_v41 = vadd.f32 %v1757_v39, %v1756_v36  ;;  %v1759_v42 = vpop.f32.mrb[34].mxu1  ;;  %v1718_v43 = vpop.f32.mrb[35].mxu0 }
 0x13a   :  { %v1719_v44 = vadd.f32 %v1718_v43, %v1717_v40  ;;  %v1760_v45 = vpop.f32.mrb[35].mxu1  ;;  %v1013_v47 = vadd.f32 %v1716_v38, %v2318_v53 }
 0x13b   :  { %v1761_v49 = vadd.f32 %v1760_v45, %v1759_v42  ;;  %v2350_v50 = vadd.f32 %v1758_v41, %v972_v30 }
 0x13c   :  { %v1016_v51 = vadd.f32 %v1719_v44, %v2320_v55 }
 0x13d   :  { %v2353_v54 = vadd.f32 %v1761_v49, %v975_v33 }
 0x13e   :  { %v1720_v56 = vpop.f32.mrb[36].mxu0 }
 0x13f   :  { %v1788_v57 = vpop.f32.mrb[36].mxu1  ;;  %v1721_v58 = vpop.f32.mrb[37].mxu0 }
 0x140   :  { %v1722_v59 = vadd.f32 %v1721_v58, %v1720_v56  ;;  %v1109_v60 = vpop.f32.mrb[37].mxu1  ;;  %v1723_v61 = vpop.f32.mrb[38].mxu0 }
 0x141   :  { %v2357_v1 = vadd.f32 %v1109_v60, %v1013_v47  ;;  %v1789_v53 = vpop.f32.mrb[38].mxu1  ;;  %v1724_v2 = vpop.f32.mrb[39].mxu0 }
 0x142   :  { %v1021_v4 = vadd.f32 %v1722_v59, %v2322_v3  ;;  %v1725_v6 = vadd.f32 %v1724_v2, %v1723_v61  ;;  %v1112_v55 = vpop.f32.mrb[39].mxu1 }
 0x143   :  { %v1210_v7 = vmul.f32 %v2357_v1, %v2357_v1  ;;  %v1113_v8 = vadd.f32 %v1112_v55, %v1016_v51  ;;  %v1173_v10 = vsel %vm1172_vm1, %v2357_v1, 0.0  ;;  %v1267_v12 = vrot.slane %v2357_v1, 1 }
 0x144   :  { %v1118_v9 = vadd.f32 %v1788_v57, %v1021_v4  ;;  %v1024_v11 = vadd.f32 %v1725_v6, %v2324_v5 }
 0x145   :  { %v1174_v13 = vsel %vm1172_vm1, %v1113_v8, 0.0  ;;  %v1211_v15 = vmul.f32 %v1113_v8, %v1113_v8  ;;  %v1268_v3 = vrot.slane %v1113_v8, 1  ;;  %v1226_v24 = vsel %vm1172_vm1, %v1210_v7, 0.0 }
 0x146   :  { %v1212_v17 = vmul.f32 %v1118_v9, %v1118_v9  ;;  %v1269_v19 = vrot.slane %v1118_v9, 1  ;;  %v2368_v21 = vadd.f32 %v1789_v53, %v1024_v11  ;;  %v1175_v22 = vadd.f32 %v1174_v13, %v1173_v10  ;;  %v1726_v23 = vpop.f32.mrb[40].mxu0 }
 0x147   :  { %v1176_v25 = vsel %vm1172_vm1, %v1118_v9, 0.0  ;;  %v1227_v5 = vsel %vm1172_vm1, %v1211_v15, 0.0  ;;  %v1727_v26 = vpop.f32.mrb[41].mxu0  ;;  %v1792_v27 = vpop.f32.mrb[40].mxu1  ;;  %v1300_v28 = vsel %vm1285_vm2, %v1267_v12, %v1268_v3 }
 0x148   :  { %v1213_v29 = vmul.f32 %v2368_v21, %v2368_v21  ;;  %v1270_v30 = vrot.slane %v2368_v21, 1  ;;  %v1177_v31 = vadd.f32 %v1176_v25, %v1175_v22  ;;  %v1228_v33 = vadd.f32 %v1227_v5, %v1226_v24  ;;  %v1729_v35 = vpop.f32.mrb[42].mxu0  ;;  %v1125_v36 = vpop.f32.mrb[41].mxu1 }
 0x149   :  { %v1229_v37 = vsel %vm1172_vm1, %v1212_v17, 0.0  ;;  %v1728_v38 = vadd.f32 %v1727_v26, %v1726_v23  ;;  %v1730_v39 = vpop.f32.mrb[43].mxu0  ;;  %v1178_v40 = vsel %vm1172_vm1, %v2368_v21, 0.0  ;;  %v1793_v41 = vpop.f32.mrb[42].mxu1  ;;  %v1299_v42 = vsel %vm1285_vm2, %v1268_v3, %v1269_v19 }
 0x14a   :  { %v1230_v43 = vadd.f32 %v1229_v37, %v1228_v33  ;;  %v1731_v44 = vadd.f32 %v1730_v39, %v1729_v35  ;;  %v1179_v45 = vadd.f32 %v1178_v40, %v1177_v31  ;;  %v1231_v47 = vsel %vm1172_vm1, %v1213_v29, 0.0  ;;  %v1128_v49 = vpop.f32.mrb[43].mxu1 }
 0x14b   :  { %v1029_v51 = vadd.f32 %v1728_v38, %v2329_v18  ;;  %v1298_v52 = vsel %vm1285_vm2, %v1269_v19, %v1270_v30  ;;  %v2390_v56 = vmax.f32 %v2357_v1, %v1300_v28  ;;  %v1303_v57 = vmax.f32 %v1113_v8, %v1299_v42 }
 0x14c   :  { %v1232_v58 = vadd.f32 %v1231_v47, %v1230_v43  ;;  %v1032_v59 = vadd.f32 %v1731_v44, %v2331_v20  ;;  %v1304_v60 = vmax.f32 %v1118_v9, %v1298_v52 }
 0x14d   :  { %v1126_v61 = vadd.f32 %v1125_v36, %v1029_v51  ;;  %v1318_v53 = vmax.f32 %v2390_v56, %v1303_v57 }
 0x14e   :  { %v2394_v2 = vadd.f32 %v1128_v49, %v1032_v59  ;;  %v1732_v4 = vpop.f32.mrb[44].mxu0  ;;  %v1319_v6 = vmax.f32 %v1303_v57, %v1304_v60 }
 0x14f   :  { %v1180_v18 = vsel %vm1172_vm1, %v1126_v61, 0.0  ;;  %v1214_v55 = vmul.f32 %v1126_v61, %v1126_v61  ;;  %v1271_v7 = vrot.slane %v1126_v61, 1  ;;  %v1733_v10 = vpop.f32.mrb[45].mxu0  ;;  %v2397_v11 = vpop.f32.mrb[44].mxu1 }
 0x150   :  { %v1181_v13 = vadd.f32 %v1180_v18, %v1179_v45  ;;  %v1182_v8 = vsel %vm1172_vm1, %v2394_v2, 0.0  ;;  %v1215_v20 = vmul.f32 %v2394_v2, %v2394_v2  ;;  %v1272_v9 = vrot.slane %v2394_v2, 1  ;;  %v1735_v15 = vpop.f32.mrb[46].mxu0  ;;  %v1141_v3 = vpop.f32.mrb[45].mxu1 }
 0x151   :  { %v1233_v17 = vsel %vm1172_vm1, %v1214_v55, 0.0  ;;  %v1734_v19 = vadd.f32 %v1733_v10, %v1732_v4  ;;  %v1736_v22 = vpop.f32.mrb[47].mxu0  ;;  %v1338_v23 = vpack.c.bf16 %v1319_v6, %v1318_v53  ;;  %v2405_v24 = vpop.f32.mrb[46].mxu1  ;;  %v1297_v25 = vsel %vm1285_vm2, %v1270_v30, %v1271_v7 }
 0x152   :  { %v1234_v5 = vadd.f32 %v1233_v17, %v1232_v58  ;;  %v1183_v26 = vadd.f32 %v1182_v8, %v1181_v13  ;;  %v1235_v28 = vsel %vm1172_vm1, %v1215_v20, 0.0  ;;  %v1737_v29 = vadd.f32 %v1736_v22, %v1735_v15  ;;  %v1144_v31 = vpop.f32.mrb[47].mxu1 }
 0x153   :  { %v1037_v33 = vadd.f32 %v1734_v19, %v2333_v32  ;;  %1802 = vmatprep.subr.bf16.mxu1 %v1338_v23  ;;  %v1296_v35 = vsel %vm1285_vm2, %v1271_v7, %v1272_v9  ;;  %v1305_v36 = vmax.f32 %v2368_v21, %v1297_v25 }
 0x154   :  { %v1236_v37 = vadd.f32 %v1235_v28, %v1234_v5  ;;  %v1040_v38 = vadd.f32 %v1737_v29, %v2335_v34  ;;  %1803 = vmatpush3.bf16.msra.mxu1 %v1338_v23  ;;  %v2415_v39 = vmax.f32 %v1126_v61, %v1296_v35 }
 0x155   :  { %v1134_v30 = vadd.f32 %v1792_v27, %v1037_v33  ;;  %v1320_v40 = vmax.f32 %v1304_v60, %v1305_v36 }
 0x156   :  { %v2417_v42 = vadd.f32 %v1793_v41, %v1040_v38  ;;  %v1738_v43 = vpop.f32.mrb[48].mxu0  ;;  %v1321_v44 = vmax.f32 %v1305_v36, %v2415_v39 }
 0x157   :  { %v1184_v32 = vsel %vm1172_vm1, %v1134_v30, 0.0  ;;  %v1216_v45 = vmul.f32 %v1134_v30, %v1134_v30  ;;  %v1273_v47 = vrot.slane %v1134_v30, 1  ;;  %v1800_v49 = vpop.f32.mrb[48].mxu1  ;;  %v1739_v51 = vpop.f32.mrb[49].mxu0 }
 0x158   :  { %v1185_v21 = vadd.f32 %v1184_v32, %v1183_v26  ;;  %v1186_v34 = vsel %vm1172_vm1, %v2417_v42, 0.0  ;;  %v1217_v52 = vmul.f32 %v2417_v42, %v2417_v42  ;;  %v1274_v27 = vrot.slane %v2417_v42, 1  ;;  %v2426_v41 = vpop.f32.mrb[49].mxu1  ;;  %v1741_v57 = vpop.f32.mrb[50].mxu0 }
 0x159   :  { %v1237_v58 = vsel %vm1172_vm1, %v1216_v45, 0.0  ;;  %v2430_v59 = vadd.f32 %v1800_v49, %v2350_v50  ;;  %v1740_v60 = vadd.f32 %v1739_v51, %v1738_v43  ;;  %v1801_v61 = vpop.f32.mrb[50].mxu1  ;;  %v1742_v53 = vpop.f32.mrb[51].mxu0  ;;  %v1339_v4 = vpack.c.bf16 %v1321_v44, %v1320_v40 }
 0x15a   :  { %v1238_v6 = vadd.f32 %v1237_v58, %v1236_v37  ;;  %v1187_v18 = vadd.f32 %v1186_v34, %v1185_v21  ;;  %v1239_v55 = vsel %vm1172_vm1, %v1217_v52, 0.0  ;;  %v2434_v7 = vadd.f32 %v1801_v61, %v2353_v54  ;;  %v2436_v10 = vpop.f32.mrb[51].mxu1 }
 0x15b   :  { %v1045_v13 = vadd.f32 %v1740_v60, %v2337_v46  ;;  %1804 = vmatprep.subr.bf16.mxu1 %v1339_v4  ;;  %v1281_v50 = vrot.slane %v2430_v59, 1  ;;  %v1743_v17 = vadd.f32 %v1742_v53, %v1741_v57  ;;  %v1294_v19 = vsel %vm1285_vm2, %v1273_v47, %v1274_v27 }
 0x15c   :  { %v1240_v8 = vadd.f32 %v1239_v55, %v1238_v6  ;;  %v1282_v20 = vrot.slane %v2434_v7, 1  ;;  %1805 = vmatpush3.bf16.msra.mxu1 %v1339_v4  ;;  %v1295_v54 = vsel %vm1285_vm2, %v1272_v9, %v1273_v47  ;;  %v2445_v23 = vmax.f32 %v1134_v30, %v1294_v19 }
 0x15d   :  { %v1142_v15 = vadd.f32 %v1141_v3, %v1045_v13  ;;  %v1048_v3 = vadd.f32 %v1743_v17, %v2339_v48  ;;  %v1307_v36 = vmax.f32 %v2394_v2, %v1295_v54 }
 0x15e   :  { %v1744_v22 = vpop.f32.mrb[52].mxu0  ;;  %v1286_v46 = vsel %vm1285_vm2, %v1281_v50, %v1282_v20  ;;  %v1301_v48 = vsel %vm1285_vm2, %v1282_v20, %v1267_v12 }
 0x15f   :  { %v1188_v25 = vsel %vm1172_vm1, %v1142_v15, 0.0  ;;  %v1218_v5 = vmul.f32 %v1142_v15, %v1142_v15  ;;  %v1275_v26 = vrot.slane %v1142_v15, 1  ;;  %v1745_v28 = vpop.f32.mrb[53].mxu0  ;;  %v2455_v9 = vmax.f32 %v2430_v59, %v1286_v46 }
 0x160   :  { %v1189_v29 = vadd.f32 %v1188_v25, %v1187_v18  ;;  %v1746_v33 = vadd.f32 %v1745_v28, %v1744_v22  ;;  %v1747_v35 = vpop.f32.mrb[54].mxu0  ;;  %v1145_v38 = vadd.f32 %v1144_v31, %v1048_v3  ;;  %v1322_v2 = vmax.f32 %v2415_v39, %v1307_v36 }
 0x161   :  { %v1241_v37 = vsel %vm1172_vm1, %v1218_v5, 0.0  ;;  %v1748_v30 = vpop.f32.mrb[55].mxu0  ;;  %v1293_v40 = vsel %vm1285_vm2, %v1274_v27, %v1275_v26  ;;  %v1323_v31 = vmax.f32 %v1307_v36, %v2445_v23  ;;  %v1317_v39 = vmax.f32 %v2434_v7, %v1301_v48 }
 0x162   :  { %v1242_v43 = vadd.f32 %v1241_v37, %v1240_v8  ;;  %v1053_v44 = vadd.f32 %v1746_v33, %v2341_v62  ;;  %v1749_v32 = vadd.f32 %v1748_v30, %v1747_v35  ;;  %v1190_v45 = vsel %vm1172_vm1, %v1145_v38, 0.0 }
 0x163   :  { %v1219_v47 = vmul.f32 %v1145_v38, %v1145_v38  ;;  %v1276_v49 = vrot.slane %v1145_v38, 1  ;;  %v1191_v51 = vadd.f32 %v1190_v45, %v1189_v29  ;;  %v1309_v34 = vmax.f32 %v2417_v42, %v1293_v40 }
 0x164   :  { %v1150_v21 = vadd.f32 %v2397_v11, %v1053_v44  ;;  %v1056_v1 = vadd.f32 %v1749_v32, %v2343_v0  ;;  %v1340_v52 = vpack.c.bf16 %v1323_v31, %v1322_v2  ;;  %v1332_v8 = vmax.f32 %v2455_v9, %v1317_v39 }
 0x165   :  { %v1243_v12 = vsel %vm1172_vm1, %v1219_v47, 0.0  ;;  %v1292_v62 = vsel %vm1285_vm2, %v1275_v26, %v1276_v49  ;;  %v1324_v4 = vmax.f32 %v2445_v23, %v1309_v34  ;;  %v1333_v3 = vmax.f32 %v1317_v39, %v2390_v56 }
 0x166   :  { %v1244_v27 = vadd.f32 %v1243_v12, %v1242_v43  ;;  %v1192_v57 = vsel %vm1172_vm1, %v1150_v21, 0.0  ;;  %v1220_v58 = vmul.f32 %v1150_v21, %v1150_v21  ;;  %v1277_v60 = vrot.slane %v1150_v21, 1  ;;  %v1750_v61 = vpop.f32.mrb[56].mxu0  ;;  %1806 = vmatprep.subr.bf16.mxu1 %v1340_v52 }
 0x167   :  { %v1193_v53 = vadd.f32 %v1192_v57, %v1191_v51  ;;  %v1153_v11 = vadd.f32 %v2405_v24, %v1056_v1  ;;  %v1751_v0 = vpop.f32.mrb[57].mxu0  ;;  %v1310_v42 = vmax.f32 %v1142_v15, %v1292_v62  ;;  %1807 = vmatpush3.bf16.msra.mxu1 %v1340_v52  ;;  %v1345_v30 = vpack.c.bf16 %v1333_v3, %v1332_v8 }
 0x168   :  { %v1245_v6 = vsel %vm1172_vm1, %v1220_v58, 0.0  ;;  %v1752_v18 = vadd.f32 %v1751_v0, %v1750_v61  ;;  %v1753_v55 = vpop.f32.mrb[58].mxu0  ;;  %v1291_v13 = vsel %vm1285_vm2, %v1276_v49, %v1277_v60  ;;  %v1224_v56 = vmul.f32 %v2430_v59, %v2430_v59 }
 0x169   :  { %v1246_v20 = vadd.f32 %v1245_v6, %v1244_v27  ;;  %v1194_v17 = vsel %vm1172_vm1, %v1153_v11, 0.0  ;;  %v1221_v19 = vmul.f32 %v1153_v11, %v1153_v11  ;;  %v1278_v24 = vrot.slane %v1153_v11, 1  ;;  %v1754_v22 = vpop.f32.mrb[59].mxu0 }
 0x16a   :  { %v1061_v15 = vadd.f32 %v1752_v18, %v2345_v14  ;;  %v1755_v54 = vadd.f32 %v1754_v22, %v1753_v55  ;;  %v1325_v23 = vmax.f32 %v1309_v34, %v1310_v42  ;;  %v1195_v46 = vadd.f32 %v1194_v17, %v1193_v53 }
 0x16b   :  { %v1247_v25 = vsel %vm1172_vm1, %v1221_v19, 0.0  ;;  %v1290_v5 = vsel %vm1285_vm2, %v1277_v60, %v1278_v24  ;;  %v1311_v26 = vmax.f32 %v1145_v38, %v1291_v13  ;;  %v1200_v14 = vsel %vm1172_vm1, %v2430_v59, 0.0 }
 0x16c   :  { %v1158_v28 = vadd.f32 %v2426_v41, %v1061_v15  ;;  %v1341_v29 = vpack.c.bf16 %v1325_v23, %v1324_v4  ;;  %v1064_v33 = vadd.f32 %v1755_v54, %v2347_v16  ;;  %v1248_v35 = vadd.f32 %v1247_v25, %v1246_v20 }
 0x16d   :  { %v1312_v36 = vmax.f32 %v1150_v21, %v1290_v5  ;;  %v1326_v37 = vmax.f32 %v1310_v42, %v1311_v26  ;;  %v1225_v16 = vmul.f32 %v2434_v7, %v2434_v7  ;;  %v1253_v57 = vsel %vm1172_vm1, %v1224_v56, 0.0 }
 0x16e   :  { %v1222_v40 = vmul.f32 %v1158_v28, %v1158_v28  ;;  %v1279_v48 = vrot.slane %v1158_v28, 1  ;;  %1808 = vmatprep.subr.bf16.mxu1 %v1341_v29  ;;  %v1161_v43 = vadd.f32 %v2436_v10, %v1064_v33  ;;  %v1196_v38 = vsel %vm1172_vm1, %v1158_v28, 0.0 }
 0x16f   :  { %v1197_v41 = vadd.f32 %v1196_v38, %v1195_v46  ;;  %1809 = vmatpush3.bf16.msra.mxu1 %v1341_v29  ;;  %v1327_v44 = vmax.f32 %v1311_v26, %v1312_v36  ;;  %v1202_v58 = vsel %vm1172_vm1, %v2434_v7, 0.0  ;;  %v1255_v59 = vsel %vm1172_vm1, %v1225_v16, 0.0 }
 0x170   :  { %v1198_v32 = vsel %vm1172_vm1, %v1161_v43, 0.0  ;;  %v1223_v2 = vmul.f32 %v1161_v43, %v1161_v43  ;;  %v1249_v45 = vsel %vm1172_vm1, %v1222_v40, 0.0  ;;  %v1280_v47 = vrot.slane %v1161_v43, 1 }
 0x171   :  { %v1199_v49 = vadd.f32 %v1198_v32, %v1197_v41  ;;  %v1250_v31 = vadd.f32 %v1249_v45, %v1248_v35  ;;  %v1342_v10 = vpack.c.bf16 %v1327_v44, %v1326_v37  ;;  %v1289_v51 = vsel %vm1285_vm2, %v1278_v24, %v1279_v48 }
 0x172   :  { %v1251_v21 = vsel %vm1172_vm1, %v1223_v2, 0.0  ;;  %v1288_v1 = vsel %vm1285_vm2, %v1279_v48, %v1280_v47  ;;  %v1313_v34 = vmax.f32 %v1153_v11, %v1289_v51  ;;  %v1287_v12 = vsel %vm1285_vm2, %v1280_v47, %v1281_v50 }
 0x173   :  { %v1201_v52 = vadd.f32 %v1200_v14, %v1199_v49  ;;  %v1252_v62 = vadd.f32 %v1251_v21, %v1250_v31  ;;  %1810 = vmatprep.subr.bf16.mxu1 %v1342_v10  ;;  %v1314_v39 = vmax.f32 %v1158_v28, %v1288_v1  ;;  %v1315_v27 = vmax.f32 %v1161_v43, %v1287_v12 }
 0x174   :  { %1811 = vmatpush3.bf16.msra.mxu1 %v1342_v10  ;;  %v1328_v60 = vmax.f32 %v1312_v36, %v1313_v34 }
 0x175   :  { %v1203_v61 = vadd.f32 %v1202_v58, %v1201_v52  ;;  %v1254_v53 = vadd.f32 %v1253_v57, %v1252_v62  ;;  %v1329_v11 = vmax.f32 %v1313_v34, %v1314_v39  ;;  %v1330_v0 = vmax.f32 %v1314_v39, %v1315_v27 }
 0x176   :  { %v1331_v63 = vmax.f32 %v1315_v27, %v2455_v9  ;;  %v1969_v9 = vld [vmem:[%s2531_s2 + $0x8] sm:$0xff]  }
 0x177   :  { %v1204_v50 = vrot.slane %v1203_v61, 4  ;;  %v1256_v42 = vadd.f32 %v1255_v59, %v1254_v53  ;;  %v1343_v4 = vpack.c.bf16 %v1329_v11, %v1328_v60 }
 0x178   :  { %v1344_v6 = vpack.c.bf16 %v1331_v63, %v1330_v0 }
 0x179   :  { %v1205_v18 = vadd.f32 %v1204_v50, %v1203_v61  ;;  %v1257_v55 = vrot.slane %v1256_v42, 4  ;;  %1812 = vmatprep.subr.bf16.mxu1 %v1343_v4 }
 0x17a   :  { %1813 = vmatpush3.bf16.msra.mxu1 %v1343_v4 }
 0x17b   :  { %v1258_v13 = vadd.f32 %v1257_v55, %v1256_v42  ;;  %1814 = vmatprep.subr.bf16.mxu1 %v1344_v6  ;;  %v1206_v7 = vrot.slane %v1205_v18, 2 }
 0x17d   :  { %v1259_v8 = vrot.slane %v1258_v13, 2  ;;  %v1207_v20 = vadd.f32 %v1206_v7, %v1205_v18 }
 0x17e   :  { %1815 = vmatpush3.bf16.msra.mxu1 %v1344_v6 }
 0x17f   :  { %v1260_v17 = vadd.f32 %v1259_v8, %v1258_v13  ;;  %1816 = vmatprep.subr.bf16.mxu1 %v1345_v30  ;;  %v1208_v19 = vrot.slane %v1207_v20, 1 }
 0x181   :  { %v1261_v24 = vrot.slane %v1260_v17, 1  ;;  %v1209_v22 = vadd.f32 %v1208_v19, %v1207_v20 }
 0x182   :  { %1817 = vmatpush3.bf16.msra.mxu1 %v1345_v30 }
 0x183   :  { %v1262_v15 = vadd.f32 %v1261_v24, %v1260_v17  ;;  %v1263_v54 = vmul.f32 0.0078125, %v1209_v22 }
 0x185   :  { %v1264_v23 = vmul.f32 0.0078125, %v1262_v15  ;;  %1819 = vmatmul.mubr.bf16.vlgmr.msra.gmra.mrb[52].mxu1 %v1969_v9  ;;  %v1265_v46 = vmul.f32 %v1263_v54, %v1263_v54 }
 0x187   :  { %v1266_v25 = vsub.f32 %v1264_v23, %v1265_v46 }
 0x189   :  { %v1411_v5 = vadd.f32 1e-05, %v1266_v25 }
 0x18b   :  { %1970 = vrsqrt.f32 %v1411_v5 }
 0x195   :  { %v1971_v29 = vpop.eup %1970 }
 0x258   :  { %v1820_v26 = vpop.f32.mrb[52].mxu1 }
 0x259   :  { %v1409_v3 = vsub.f32 %v1820_v26, %v1263_v54  ;;  %v1392_v28 = vpop.f32.mrb[53].mxu1 }
 0x25a   :  { %v1407_v33 = vsub.f32 %v1392_v28, %v1263_v54  ;;  %v1821_v35 = vpop.f32.mrb[54].mxu1 }
 0x25b   :  { %v1415_v14 = vmul.f32 %v1971_v29, %v1409_v3  ;;  %v1410_v36 = vsub.f32 %v1821_v35, %v1263_v54  ;;  %v1395_v37 = vpop.f32.mrb[55].mxu1 }
 0x25c   :  { %v1413_v40 = vmul.f32 %v1971_v29, %v1407_v33  ;;  %v1408_v48 = vsub.f32 %v1395_v37, %v1263_v54 }
 0x25d   :  { %v1419_v30 = vmax.f32 %v1415_v14, 0.0  ;;  %v1416_v43 = vmul.f32 %v1971_v29, %v1410_v36 }
 0x25e   :  { %v1417_v38 = vmax.f32 %v1413_v40, 0.0  ;;  %v1414_v56 = vmul.f32 %v1971_v29, %v1408_v48 }
 0x25f   :  { %v1568_v16 = vpack.c.bf16 %v1419_v30, %v1419_v30  ;;  %v1420_v41 = vmax.f32 %v1416_v43, 0.0 }
 0x260   :  { %v1566_v44 = vpack.c.bf16 %v1417_v38, %v1417_v38  ;;  %v1418_v32 = vmax.f32 %v1414_v56, 0.0 }
 0x261   :  { %1440 = vst.msk [vmem:[%s2532_s3 + $0x8] sm:$0xf] %vm1437_vm3, %v1568_v16  ;;  %v1569_v2 = vpack.c.bf16 %v1420_v41, %v1420_v41 }
 0x262   :  { %1438 = vst.msk [vmem:[%s2532_s3] sm:$0xf] %vm1437_vm3, %v1566_v44  ;;  %v1567_v45 = vpack.c.bf16 %v1418_v32, %v1418_v32 }
 0x263   :  { %1441 = vst.msk [vmem:[%s2532_s3 + $0xc] sm:$0xf] %vm1437_vm3, %v1569_v2 }
 0x264   :  { %1439 = vst.msk [vmem:[%s2532_s3 + $0x4] sm:$0xf] %vm1437_vm3, %v1567_v45 }

// kernel: cnn_forward.5
= control target key start
LH: loop header
LB: loop body
LE: loop exit
PB: predicated region body
PF: predicated region fallthrough
CT: control target
= control target key end

     0   :  { %vm375_vm0 = vcmask 523264   ;;  %s4432_s0 = inlined_call_operand.vmem [shape: bf16[32,576], index: 0, kind: input, shape index: {}]   ;;  %s4433_s1 = inlined_call_operand.vmem [shape: bf16[576,128], index: 1, kind: input, shape index: {}]   ;;  %s4434_s2 = inlined_call_operand.vmem [shape: bf16[16,128,128], index: 2, kind: input, shape index: {}]   ;;  %s4435_s3 = inlined_call_operand.vmem [shape: f32[1,128], index: 3, kind: input, shape index: {}]   ;;  %s4436_s4 = inlined_call_operand.vmem [shape: bf16[128,64], index: 4, kind: input, shape index: {}]   ;;  %s4437_s5 = inlined_call_operand.vmem [shape: f32[1,64], index: 5, kind: input, shape index: {}]   ;;  %s4438_s6 = inlined_call_operand.hbm [shape: f32[2,64], index: 6, kind: output, shape index: {}]  }
   0x1   :  { %v3428_v0 = vld [vmem:[%s4433_s1 + $0x40] sm:$0xff]   ;;  %v3432_v4 = vld [vmem:[%s4433_s1 + $0x48] sm:$0xff]   ;;  %v3436_v8 = vld [vmem:[%s4433_s1 + $0x50] sm:$0xff]  }
   0x2   :  { %v3429_v1 = vld [vmem:[%s4433_s1 + $0xc0] sm:$0xff]   ;;  %2858 = vmatprep.subr.bf16.mxu0 %v3428_v0  ;;  %v3433_v5 = vld [vmem:[%s4433_s1 + $0xc8] sm:$0xff]   ;;  %v3437_v9 = vld [vmem:[%s4433_s1 + $0xd0] sm:$0xff]  }
   0x3   :  { %v3430_v2 = vld [vmem:[%s4433_s1] sm:$0xff]   ;;  %2886 = vmatprep.subr.bf16.mxu1 %v3429_v1  ;;  %v3434_v6 = vld [vmem:[%s4433_s1 + $0x8] sm:$0xff]   ;;  %v3438_v10 = vld [vmem:[%s4433_s1 + $0x10] sm:$0xff]  }
   0x4   :  { %v3431_v3 = vld [vmem:[%s4433_s1 + $0x80] sm:$0xff]   ;;  %2859 = vmatpush3.bf16.msra.mxu0 %v3430_v2  ;;  %v3435_v7 = vld [vmem:[%s4433_s1 + $0x88] sm:$0xff]   ;;  %v3439_v11 = vld [vmem:[%s4433_s1 + $0x90] sm:$0xff]  }
   0x5   :  { %2887 = vmatpush3.bf16.msra.mxu1 %v3431_v3  ;;  %2860 = vmatprep.subr.bf16.mxu0 %v3432_v4  ;;  %v3440_v12 = vld [vmem:[%s4433_s1 + $0x58] sm:$0xff]   ;;  %v3444_v16 = vld [vmem:[%s4433_s1 + $0x60] sm:$0xff]   ;;  %v3448_v20 = vld [vmem:[%s4433_s1 + $0x68] sm:$0xff]  }
   0x6   :  { %2888 = vmatprep.subr.bf16.mxu1 %v3433_v5  ;;  %v3441_v13 = vld [vmem:[%s4433_s1 + $0xd8] sm:$0xff]   ;;  %v3445_v17 = vld [vmem:[%s4433_s1 + $0xe0] sm:$0xff]   ;;  %v3449_v21 = vld [vmem:[%s4433_s1 + $0xe8] sm:$0xff]  }
   0x7   :  { %v3442_v14 = vld [vmem:[%s4433_s1 + $0x18] sm:$0xff]   ;;  %v3446_v18 = vld [vmem:[%s4433_s1 + $0x20] sm:$0xff]   ;;  %v3450_v22 = vld [vmem:[%s4433_s1 + $0x28] sm:$0xff]  }
   0x8   :  { %2861 = vmatpush3.bf16.msra.mxu0 %v3434_v6  ;;  %v3443_v15 = vld [vmem:[%s4433_s1 + $0x98] sm:$0xff]   ;;  %v3447_v19 = vld [vmem:[%s4433_s1 + $0xa0] sm:$0xff]   ;;  %v3451_v23 = vld [vmem:[%s4433_s1 + $0xa8] sm:$0xff]  }
   0x9   :  { %2889 = vmatpush3.bf16.msra.mxu1 %v3435_v7  ;;  %2862 = vmatprep.subr.bf16.mxu0 %v3436_v8  ;;  %v3452_v24 = vld [vmem:[%s4433_s1 + $0x70] sm:$0xff]   ;;  %v3456_v28 = vld [vmem:[%s4433_s1 + $0x78] sm:$0xff]   ;;  %v3465_v35 = vld [vmem:[%s4432_s0 + $0xc] ss:$20 sps:$4 sm:$0xff]  }
   0xa   :  { %2890 = vmatprep.subr.bf16.mxu1 %v3437_v9  ;;  %v3453_v25 = vld [vmem:[%s4433_s1 + $0xf0] sm:$0xff]   ;;  %v3457_v29 = vld [vmem:[%s4433_s1 + $0xf8] sm:$0xff]   ;;  %v3466_v36 = vld [vmem:[%s4433_s1 + $0x100] sm:$0xff]   ;;  %463 = vmatprep.mubr.bf16.mxu1 %v3465_v35 }
   0xb   :  { %v3454_v26 = vld [vmem:[%s4433_s1 + $0x30] sm:$0xff]   ;;  %v3458_v30 = vld [vmem:[%s4433_s1 + $0x38] sm:$0xff]   ;;  %v3467_v37 = vld [vmem:[%s4433_s1 + $0x108] sm:$0xff]  }
   0xc   :  { %2863 = vmatpush3.bf16.msra.mxu0 %v3438_v10  ;;  %v3455_v27 = vld [vmem:[%s4433_s1 + $0xb0] sm:$0xff]   ;;  %v3459_v31 = vld [vmem:[%s4433_s1 + $0xb8] sm:$0xff]   ;;  %v3468_v38 = vld [vmem:[%s4432_s0 + $0x2c] ss:$20 sps:$4 sm:$0xff]  }
   0xd   :  { %2891 = vmatpush3.bf16.msra.mxu1 %v3439_v11  ;;  %2864 = vmatprep.subr.bf16.mxu0 %v3440_v12  ;;  %v3460_v32 = vld [vmem:[%s4432_s0] ss:$20 sps:$4 sm:$0xff]   ;;  %v3462_v33 = vld [vmem:[%s4432_s0 + $0x4] ss:$20 sps:$4 sm:$0xff]   ;;  %v3463_v34 = vld [vmem:[%s4432_s0 + $0x8] ss:$20 sps:$4 sm:$0xff]  }
   0xe   :  { %2892 = vmatprep.subr.bf16.mxu1 %v3441_v13  ;;  %414 = vmatprep.mubr.bf16.mxu0 %v3462_v33  ;;  %v3470_v39 = vld [vmem:[%s4432_s0 + $0x34] ss:$20 sps:$4 sm:$0xff]   ;;  %v3473_v42 = vld [vmem:[%s4432_s0 + $0x30] ss:$20 sps:$4 sm:$0xff]   ;;  %v3475_v44 = vld [vmem:[%s4433_s1 + $0x118] sm:$0xff]  }
   0xf   :  { %v3472_v40 = vld [vmem:[%s4432_s0 + $0x28] ss:$20 sps:$4 sm:$0xff]   ;;  %v3474_v41 = vld [vmem:[%s4433_s1 + $0x110] sm:$0xff]   ;;  %v3477_v45 = vld [vmem:[%s4432_s0 + $0x38] ss:$20 sps:$4 sm:$0xff]  }
  0x10   :  { %2865 = vmatpush3.bf16.msra.mxu0 %v3442_v14  ;;  %v3476_v43 = vld [vmem:[%s4432_s0 + $0x10] ss:$20 sps:$4 sm:$0xff]  }
  0x11   :  { %2893 = vmatpush3.bf16.msra.mxu1 %v3443_v15  ;;  %2866 = vmatprep.subr.bf16.mxu0 %v3444_v16 }
  0x12   :  { %2894 = vmatprep.subr.bf16.mxu1 %v3445_v17 }
  0x14   :  { %2867 = vmatpush3.bf16.msra.mxu0 %v3446_v18 }
  0x15   :  { %2895 = vmatpush3.bf16.msra.mxu1 %v3447_v19  ;;  %2868 = vmatprep.subr.bf16.mxu0 %v3448_v20 }
  0x16   :  { %2896 = vmatprep.subr.bf16.mxu1 %v3449_v21 }
  0x18   :  { %2869 = vmatpush3.bf16.msra.mxu0 %v3450_v22 }
  0x19   :  { %2897 = vmatpush3.bf16.msra.mxu1 %v3451_v23  ;;  %2870 = vmatprep.subr.bf16.mxu0 %v3452_v24 }
  0x1a   :  { %2898 = vmatprep.subr.bf16.mxu1 %v3453_v25 }
  0x1c   :  { %2871 = vmatpush3.bf16.msra.mxu0 %v3454_v26 }
  0x1d   :  { %2899 = vmatpush3.bf16.msra.mxu1 %v3455_v27  ;;  %2872 = vmatprep.subr.bf16.mxu0 %v3456_v28 }
  0x1e   :  { %2900 = vmatprep.subr.bf16.mxu1 %v3457_v29 }
  0x20   :  { %2873 = vmatpush3.bf16.msra.mxu0 %v3458_v30 }
  0x21   :  { %2901 = vmatpush3.bf16.msra.mxu1 %v3459_v31  ;;  %3073 = vmatprep.subr.bf16.mxu0 %v3466_v36 }
  0x23   :  { %415 = vmatmul.mubr.bf16.vlgmr.msra.gmra.mrb[0].mxu0 %v3460_v32 }
  0x24   :  { %464 = vmatmul.mubr.bf16.vlgmr.msra.gmra.mrb[0].mxu1 %v3463_v34  ;;  %3074 = vmatpush3.bf16.msra.mxu0 %v3466_v36 }
  0x25   :  { %3075 = vmatprep.subr.bf16.mxu0 %v3467_v37  ;;  %422 = vmatprep.mubr.bf16.mxu0 %v3468_v38 }
  0x26   :  { %471 = vmatprep.mubr.bf16.mxu1 %v3470_v39 }
  0x28   :  { %3076 = vmatpush3.bf16.msra.mxu0 %v3467_v37 }
  0x29   :  { %3077 = vmatprep.subr.bf16.mxu0 %v3474_v41 }
  0x2b   :  { %423 = vmatmul.mubr.bf16.gmra.mrb[4].mxu0 %v3472_v40 }
  0x2c   :  { %472 = vmatmul.mubr.bf16.gmra.mrb[4].mxu1 %v3473_v42  ;;  %3081 = vmatprep.mubr.msk.bf16.mxu0 %vm375_vm0, %v3476_v43 }
  0x2d   :  { %3078 = vmatpush3.bf16.msra.mxu0 %v3474_v41 }
  0x2e   :  { %3079 = vmatprep.subr.bf16.mxu0 %v3475_v44 }
  0x31   :  { %3080 = vmatpush3.bf16.msra.mxu0 %v3475_v44 }
  0x34   :  { %3082 = vmatmul.mubr.msk.bf16.vlgmr.msra.gmra.mrb[8].mxu0 %vm375_vm0, %v3477_v45 }
  0x35   :  { %11 = vsyncpa [#allocation3], 0  ;;  %v3478_v46 = vld [vmem:[%s4434_s2] sm:$0xff]   ;;  %v3640_v47 = vmov 0.0   ;;  %v3480_v49 = vld [vmem:[%s4434_s2 + $0x8] sm:$0xff]   ;;  %vm3641_vm1 = vmmov 0  }
  0x36   :  { %3105 = vmatprep.subr.bf16.mxu0 %v3640_v47  ;;  %3085 = vmatprep.subr.bf16.mxu1 %v3640_v47  ;;  %v3479_v48 = vld [vmem:[%s4434_s2 + $0x40] sm:$0xff]   ;;  %v3481_v50 = vld [vmem:[%s4434_s2 + $0x48] sm:$0xff]   ;;  %v3482_v51 = vld [vmem:[%s4434_s2 + $0x10] sm:$0xff]   ;;  %s3642_s29 = smov [#allocation2]   ;;  %vm2416_vm2 = vcmask 517120  }
  0x37   :  { %3106 = vmatpush3.bf16.msra.mxu0 %v3478_v46  ;;  %3086 = vmatpush3.bf16.msra.mxu1 %v3479_v48  ;;  %v3483_v52 = vld [vmem:[%s4434_s2 + $0x50] sm:$0xff]   ;;  %v3484_v53 = vld [vmem:[%s4434_s2 + $0x18] sm:$0xff]   ;;  %v3486_v55 = vld [vmem:[%s4434_s2 + $0x20] sm:$0xff]   ;;  %s2424_s30 = sshll.u32 %s3642_s29, 4  ;;  %s2425_s30 = int_to_ptr.vmem [resolvable:$true] %s2424_s30 }
  0x38   :  { %3107 = vmatprep.subr.bf16.mxu0 %v3640_v47  ;;  %3087 = vmatprep.subr.bf16.mxu1 %v3640_v47  ;;  %v3485_v54 = vld [vmem:[%s4434_s2 + $0x58] sm:$0xff]   ;;  %v3487_v56 = vld [vmem:[%s4434_s2 + $0x60] sm:$0xff]   ;;  %v3488_v57 = vld [vmem:[%s4434_s2 + $0x28] sm:$0xff]   ;;  %p3621_p1 = scmp.lt.s32.totalorder %s2425_s30, %s2425_s30 }
  0x39   :  { %v3489_v58 = vld [vmem:[%s4434_s2 + $0x68] sm:$0xff]   ;;  %v3490_v59 = vld [vmem:[%s4434_s2 + $0x30] sm:$0xff]   ;;  %v3492_v61 = vld [vmem:[%s4434_s2 + $0x38] sm:$0xff]   ;;  %3121 = vmatprep.mubr.msk.bf16.mxu0 %vm3641_vm1, %v3640_v47  ;;  %3101 = vmatprep.mubr.msk.bf16.mxu1 %vm3641_vm1, %v3640_v47 }
  0x3a   :  { %v3491_v60 = vld [vmem:[%s4434_s2 + $0x70] sm:$0xff]   ;;  %v3493_v62 = vld [vmem:[%s4434_s2 + $0x78] sm:$0xff]  }
  0x3b   :  { %3108 = vmatpush3.bf16.msra.mxu0 %v3480_v49  ;;  %3088 = vmatpush3.bf16.msra.mxu1 %v3481_v50 }
  0x3c   :  { %3109 = vmatprep.subr.bf16.mxu0 %v3640_v47  ;;  %3089 = vmatprep.subr.bf16.mxu1 %v3640_v47 }
  0x3f   :  { %3110 = vmatpush3.bf16.msra.mxu0 %v3482_v51  ;;  %3090 = vmatpush3.bf16.msra.mxu1 %v3483_v52 }
  0x40   :  { %3111 = vmatprep.subr.bf16.mxu0 %v3640_v47  ;;  %3091 = vmatprep.subr.bf16.mxu1 %v3640_v47 }
  0x43   :  { %3112 = vmatpush3.bf16.msra.mxu0 %v3484_v53  ;;  %3092 = vmatpush3.bf16.msra.mxu1 %v3485_v54 }
  0x44   :  { %3113 = vmatprep.subr.bf16.mxu0 %v3640_v47  ;;  %3093 = vmatprep.subr.bf16.mxu1 %v3640_v47 }
  0x47   :  { %3114 = vmatpush3.bf16.msra.mxu0 %v3486_v55  ;;  %3094 = vmatpush3.bf16.msra.mxu1 %v3487_v56 }
  0x48   :  { %3115 = vmatprep.subr.bf16.mxu0 %v3640_v47  ;;  %3095 = vmatprep.subr.bf16.mxu1 %v3640_v47 }
  0x4b   :  { %3116 = vmatpush3.bf16.msra.mxu0 %v3488_v57  ;;  %3096 = vmatpush3.bf16.msra.mxu1 %v3489_v58 }
  0x4c   :  { %3117 = vmatprep.subr.bf16.mxu0 %v3640_v47  ;;  %3097 = vmatprep.subr.bf16.mxu1 %v3640_v47 }
  0x4f   :  { %3118 = vmatpush3.bf16.msra.mxu0 %v3490_v59  ;;  %3098 = vmatpush3.bf16.msra.mxu1 %v3491_v60 }
  0x50   :  { %3119 = vmatprep.subr.bf16.mxu0 %v3640_v47  ;;  %3099 = vmatprep.subr.bf16.mxu1 %v3640_v47 }
  0x53   :  { %3120 = vmatpush3.bf16.msra.mxu0 %v3492_v61  ;;  %3100 = vmatpush3.bf16.msra.mxu1 %v3493_v62 }
  0x54   :  { %3145 = vmatprep.subr.bf16.mxu0 %v3640_v47  ;;  %3125 = vmatprep.subr.bf16.mxu1 %v3640_v47 }
  0xf6   :  { %v2874_v63 = vpop.f32.mrb[0].mxu0 }
  0xf7   :  { %v2902_v0 = vpop.f32.mrb[0].mxu1  ;;  %v2875_v1 = vpop.f32.mrb[1].mxu0 }
  0xf8   :  { %v2876_v2 = vadd.f32 %v2875_v1, %v2874_v63  ;;  %v2903_v3 = vpop.f32.mrb[1].mxu1  ;;  %v2877_v4 = vpop.f32.mrb[2].mxu0 }
  0xf9   :  { %v2904_v5 = vadd.f32 %v2903_v3, %v2902_v0  ;;  %v2905_v6 = vpop.f32.mrb[2].mxu1  ;;  %v2878_v7 = vpop.f32.mrb[3].mxu0 }
  0xfa   :  { %v2879_v8 = vadd.f32 %v2878_v7, %v2877_v4  ;;  %v2906_v9 = vpop.f32.mrb[3].mxu1 }
  0xfb   :  { %v2907_v10 = vadd.f32 %v2906_v9, %v2905_v6  ;;  %v466_v11 = vadd.f32 %v2904_v5, %v2876_v2 }
  0xfd   :  { %v469_v12 = vadd.f32 %v2907_v10, %v2879_v8 }
  0xfe   :  { %v2880_v13 = vpop.f32.mrb[4].mxu0 }
  0xff   :  { %v2908_v14 = vpop.f32.mrb[4].mxu1  ;;  %v2881_v15 = vpop.f32.mrb[5].mxu0 }
 0x100   :  { %v2882_v16 = vadd.f32 %v2881_v15, %v2880_v13  ;;  %v2909_v17 = vpop.f32.mrb[5].mxu1  ;;  %v2883_v18 = vpop.f32.mrb[6].mxu0  ;;  %v3495_v15 = vld [vmem:[%s4434_s2 + $0x80] sm:$0xff]  }
 0x101   :  { %v2910_v19 = vadd.f32 %v2909_v17, %v2908_v14  ;;  %v2911_v20 = vpop.f32.mrb[6].mxu1  ;;  %v2884_v21 = vpop.f32.mrb[7].mxu0  ;;  %v3496_v17 = vld [vmem:[%s4434_s2 + $0xc8] sm:$0xff]  }
 0x102   :  { %v2885_v22 = vadd.f32 %v2884_v21, %v2883_v18  ;;  %v2912_v23 = vpop.f32.mrb[7].mxu1  ;;  %v3497_v18 = vld [vmem:[%s4434_s2 + $0x88] sm:$0xff]   ;;  %v3500_v21 = vld [vmem:[%s4434_s2 + $0xd8] sm:$0xff]  }
 0x103   :  { %v2913_v24 = vadd.f32 %v2912_v23, %v2911_v20  ;;  %v474_v25 = vadd.f32 %v2910_v19, %v2882_v16  ;;  %v3498_v19 = vld [vmem:[%s4434_s2 + $0xd0] sm:$0xff]   ;;  %v3502_v23 = vld [vmem:[%s4434_s2 + $0xe0] sm:$0xff]  }
 0x104   :  { %v3499_v20 = vld [vmem:[%s4434_s2 + $0x90] sm:$0xff]  }
 0x105   :  { %v477_v26 = vadd.f32 %v2913_v24, %v2885_v22  ;;  %v3501_v22 = vld [vmem:[%s4434_s2 + $0x98] sm:$0xff]   ;;  %v3503_v24 = vld [vmem:[%s4434_s2 + $0xa0] sm:$0xff]  }
 0x107   :  { %v3083_v27 = vpop.f32.mrb[8].mxu0 }
 0x108   :  { %v523_v28 = vadd.f32 %v3083_v27, %v474_v25  ;;  %v514_v29 = vpop.f32.mrb[9].mxu0  ;;  %v3504_v25 = vld [vmem:[%s4434_s2 + $0xe8] sm:$0xff]   ;;  %v3506_v27 = vld [vmem:[%s4434_s2 + $0xf0] sm:$0xff]  }
 0x109   :  { %v515_v30 = vadd.f32 %v514_v29, %v466_v11  ;;  %v3084_v31 = vpop.f32.mrb[10].mxu0  ;;  %v3508_v29 = vld [vmem:[%s4434_s2 + $0xf8] sm:$0xff]  }
 0x10a   :  { %v526_v32 = vadd.f32 %v3084_v31, %v477_v26  ;;  %v517_v33 = vpop.f32.mrb[11].mxu0  ;;  %v540_v38 = vmul.f32 %v523_v28, %v523_v28  ;;  %v3505_v26 = vld [vmem:[%s4434_s2 + $0xa8] sm:$0xff]   ;;  %v3510_v31 = vld [vmem:[%s4434_s2 + $0x140] sm:$0xff]  }
 0x10b   :  { %v518_v34 = vadd.f32 %v517_v33, %v469_v12  ;;  %v538_v35 = vmul.f32 %v515_v30, %v515_v30  ;;  %v3494_v12 = vld [vmem:[%s4434_s2 + $0xc0] sm:$0xff]  }
 0x10c   :  { %v541_v41 = vmul.f32 %v526_v32, %v526_v32  ;;  %v3511_v33 = vld [vmem:[%s4434_s2 + $0x100] sm:$0xff]  }
 0x10d   :  { %v529_v36 = vadd.f32 %v518_v34, %v515_v30  ;;  %v539_v37 = vmul.f32 %v518_v34, %v518_v34 }
 0x10f   :  { %v530_v39 = vadd.f32 %v529_v36, %v523_v28  ;;  %v542_v40 = vadd.f32 %v539_v37, %v538_v35  ;;  %v3512_v35 = vld [vmem:[%s4434_s2 + $0x148] sm:$0xff]   ;;  %v3514_v37 = vld [vmem:[%s4434_s2 + $0x150] sm:$0xff]  }
 0x110   :  { %v3513_v36 = vld [vmem:[%s4434_s2 + $0x108] sm:$0xff]  }
 0x111   :  { %v531_v42 = vadd.f32 %v530_v39, %v526_v32  ;;  %v543_v43 = vadd.f32 %v542_v40, %v540_v38  ;;  %v3515_v38 = vld [vmem:[%s4434_s2 + $0x110] sm:$0xff]   ;;  %v3516_v39 = vld [vmem:[%s4434_s2 + $0x158] sm:$0xff]  }
 0x112   :  { %v3517_v40 = vld [vmem:[%s4434_s2 + $0x118] sm:$0xff]  }
 0x113   :  { %v532_v44 = vrot.slane %v531_v42, 4  ;;  %v544_v45 = vadd.f32 %v543_v43, %v541_v41  ;;  %v3518_v41 = vld [vmem:[%s4434_s2 + $0x160] sm:$0xff]   ;;  %v3520_v43 = vld [vmem:[%s4434_s2 + $0x168] sm:$0xff]  }
 0x115   :  { %v533_v46 = vadd.f32 %v532_v44, %v531_v42  ;;  %v545_v48 = vrot.slane %v544_v45, 4  ;;  %v3519_v42 = vld [vmem:[%s4434_s2 + $0x120] sm:$0xff]   ;;  %v3521_v44 = vld [vmem:[%s4434_s2 + $0x128] sm:$0xff]  }
 0x117   :  { %v534_v49 = vrot.slane %v533_v46, 2  ;;  %v546_v50 = vadd.f32 %v545_v48, %v544_v45  ;;  %v3522_v45 = vld [vmem:[%s4434_s2 + $0x170] sm:$0xff]   ;;  %v3524_v48 = vld [vmem:[%s4434_s2 + $0x178] sm:$0xff]  }
 0x119   :  { %v535_v51 = vadd.f32 %v534_v49, %v533_v46  ;;  %v547_v52 = vrot.slane %v546_v50, 2  ;;  %v3523_v46 = vld [vmem:[%s4434_s2 + $0x130] sm:$0xff]   ;;  %v3525_v49 = vld [vmem:[%s4434_s2 + $0x138] sm:$0xff]  }
 0x11b   :  { %v536_v53 = vrot.slane %v535_v51, 1  ;;  %v548_v54 = vadd.f32 %v547_v52, %v546_v50  ;;  %v3526_v50 = vld [vmem:[%s4434_s2 + $0x1c0] sm:$0xff]  }
 0x11c   :  { %v3527_v52 = vld [vmem:[%s4434_s2 + $0x180] sm:$0xff]  }
 0x11d   :  { %v537_v55 = vadd.f32 %v536_v53, %v535_v51  ;;  %v549_v56 = vrot.slane %v548_v54, 1 }
 0x11f   :  { %v550_v57 = vadd.f32 %v549_v56, %v548_v54  ;;  %v551_v58 = vmul.f32 0.03125, %v537_v55  ;;  %v3528_v54 = vld [vmem:[%s4434_s2 + $0x1c8] sm:$0xff]   ;;  %v3530_v56 = vld [vmem:[%s4434_s2 + $0x1d0] sm:$0xff]  }
 0x120   :  { %v3529_v55 = vld [vmem:[%s4434_s2 + $0x188] sm:$0xff]  }
 0x121   :  { %v552_v59 = vmul.f32 0.03125, %v550_v57  ;;  %v553_v60 = vmul.f32 %v551_v58, %v551_v58  ;;  %v555_v61 = vsub.f32 %v515_v30, %v551_v58  ;;  %v556_v62 = vsub.f32 %v518_v34, %v551_v58  ;;  %v3509_v30 = vld [vmem:[%s4434_s2 + $0xb8] sm:$0xff]   ;;  %v3531_v57 = vld [vmem:[%s4434_s2 + $0x190] sm:$0xff]  }
 0x122   :  { %v557_v63 = vsub.f32 %v523_v28, %v551_v58  ;;  %v558_v0 = vsub.f32 %v526_v32, %v551_v58  ;;  %v3507_v28 = vld [vmem:[%s4434_s2 + $0xb0] sm:$0xff]   ;;  %v3532_v58 = vld [vmem:[%s4434_s2 + $0x1d8] sm:$0xff]  }
 0x123   :  { %v554_v1 = vsub.f32 %v552_v59, %v553_v60  ;;  %v3533_v59 = vld [vmem:[%s4434_s2 + $0x198] sm:$0xff]   ;;  %v3534_v60 = vld [vmem:[%s4434_s2 + $0x1e0] sm:$0xff]  }
 0x125   :  { %v559_v2 = vadd.f32 1e-05, %v554_v1  ;;  %v3539_v1 = vld [vmem:[%s4434_s2 + $0x1b0] sm:$0xff]  }
 0x127   :  { %3614 = vrsqrt.f32 %v559_v2  ;;  %v3540_v2 = vld [vmem:[%s4434_s2 + $0x1f8] sm:$0xff]  }
 0x131   :  { %v3615_v3 = vpop.eup %3614 }
 0x132   :  { %v561_v4 = vmul.f32 %v3615_v3, %v555_v61  ;;  %v562_v5 = vmul.f32 %v3615_v3, %v556_v62  ;;  %v563_v6 = vmul.f32 %v3615_v3, %v557_v63  ;;  %v564_v7 = vmul.f32 %v3615_v3, %v558_v0  ;;  %v3535_v61 = vld [vmem:[%s4434_s2 + $0x1a0] sm:$0xff]   ;;  %v3536_v62 = vld [vmem:[%s4434_s2 + $0x1e8] sm:$0xff]   ;;  %v3538_v0 = vld [vmem:[%s4434_s2 + $0x1f0] sm:$0xff]  }
 0x133   :  { %v3537_v63 = vld [vmem:[%s4434_s2 + $0x1a8] sm:$0xff]   ;;  %v3541_v3 = vld [vmem:[%s4434_s2 + $0x1b8] sm:$0xff]  }
 0x134   :  { %v565_v8 = vmax.f32 %v561_v4, 0.0  ;;  %v566_v9 = vmax.f32 %v562_v5, 0.0  ;;  %v567_v10 = vmax.f32 %v563_v6, 0.0  ;;  %v568_v11 = vmax.f32 %v564_v7, 0.0  ;;  %v3542_v4 = vld [vmem:[%s4434_s2 + $0x240] sm:$0xff]  }
 0x135   :  { %v3543_v6 = vld [vmem:[%s4434_s2 + $0x200] sm:$0xff]  }
 0x136   :  { %v3889_v13 = vpack.c.bf16 %v566_v9, %v565_v8  ;;  %v3891_v14 = vpack.c.bf16 %v568_v11, %v567_v10  ;;  %v3544_v8 = vld [vmem:[%s4434_s2 + $0x248] sm:$0xff]   ;;  %v3546_v10 = vld [vmem:[%s4434_s2 + $0x250] sm:$0xff]  }
 0x137   :  { %v3545_v9 = vld [vmem:[%s4434_s2 + $0x208] sm:$0xff]   ;;  %v3547_v11 = vld [vmem:[%s4434_s2 + $0x210] sm:$0xff]  }
 0x138   :  { %3122 = vmatmul.mubr.bf16.vlgmr.msra.gmra.mrb[12].mxu0 %v3889_v13  ;;  %v605_v16 = vrot.slane %v3889_v13, 1  ;;  %v908_v32 = vrot.slane %v3889_v13, 3  ;;  %v800_v34 = vrot.slane %v3889_v13, 2  ;;  %v1124_v51 = vrot.slane %v3889_v13, 5 }
 0x139   :  { %3146 = vmatpush3.bf16.msra.mxu0 %v3494_v12  ;;  %3161 = vmatprep.mubr.msk.bf16.mxu0 %vm3641_vm1, %v3640_v47  ;;  %v1016_v53 = vrot.slane %v3889_v13, 4  ;;  %v1340_v5 = vrot.slane %v3889_v13, 7  ;;  %v1232_v7 = vrot.slane %v3889_v13, 6  ;;  %v3548_v12 = vld [vmem:[%s4434_s2 + $0x258] sm:$0xff]  }
 0x13a   :  { %3102 = vmatmul.mubr.bf16.vlgmr.msra.gmra.mrb[8].mxu1 %v605_v16  ;;  %3147 = vmatprep.subr.bf16.mxu0 %v3640_v47  ;;  %v3549_v13 = vld [vmem:[%s4434_s2 + $0x218] sm:$0xff]   ;;  %v3551_v16 = vld [vmem:[%s4434_s2 + $0x220] sm:$0xff]  }
 0x13b   :  { %3126 = vmatpush3.bf16.msra.mxu1 %v3495_v15  ;;  %3141 = vmatprep.mubr.msk.bf16.mxu1 %vm3641_vm1, %v3640_v47  ;;  %v3550_v15 = vld [vmem:[%s4434_s2 + $0x260] sm:$0xff]  }
 0x13c   :  { %3127 = vmatprep.subr.bf16.mxu1 %v3640_v47 }
 0x13d   :  { %3148 = vmatpush3.bf16.msra.mxu0 %v3496_v17  ;;  %v3552_v17 = vld [vmem:[%s4434_s2 + $0x268] sm:$0xff]  }
 0x13e   :  { %3149 = vmatprep.subr.bf16.mxu0 %v3640_v47 }
 0x13f   :  { %3128 = vmatpush3.bf16.msra.mxu1 %v3497_v18  ;;  %v3553_v18 = vld [vmem:[%s4434_s2 + $0x228] sm:$0xff]  }
 0x140   :  { %3129 = vmatprep.subr.bf16.mxu1 %v3640_v47 }
 0x141   :  { %3150 = vmatpush3.bf16.msra.mxu0 %v3498_v19  ;;  %v3554_v19 = vld [vmem:[%s4434_s2 + $0x270] sm:$0xff]  }
 0x142   :  { %3151 = vmatprep.subr.bf16.mxu0 %v3640_v47 }
 0x143   :  { %3130 = vmatpush3.bf16.msra.mxu1 %v3499_v20  ;;  %v3555_v20 = vld [vmem:[%s4434_s2 + $0x230] sm:$0xff]  }
 0x144   :  { %3131 = vmatprep.subr.bf16.mxu1 %v3640_v47 }
 0x145   :  { %3152 = vmatpush3.bf16.msra.mxu0 %v3500_v21  ;;  %v3556_v21 = vld [vmem:[%s4434_s2 + $0x278] sm:$0xff]  }
 0x146   :  { %3153 = vmatprep.subr.bf16.mxu0 %v3640_v47 }
 0x147   :  { %3132 = vmatpush3.bf16.msra.mxu1 %v3501_v22  ;;  %v3557_v22 = vld [vmem:[%s4434_s2 + $0x238] sm:$0xff]  }
 0x148   :  { %3133 = vmatprep.subr.bf16.mxu1 %v3640_v47 }
 0x149   :  { %3154 = vmatpush3.bf16.msra.mxu0 %v3502_v23  ;;  %v3558_v23 = vld [vmem:[%s4434_s2 + $0x2c0] sm:$0xff]  }
 0x14a   :  { %3155 = vmatprep.subr.bf16.mxu0 %v3640_v47 }
 0x14b   :  { %3134 = vmatpush3.bf16.msra.mxu1 %v3503_v24  ;;  %v1555_v24 = vrot.slane %v3891_v14, 1 }
 0x14c   :  { %3135 = vmatprep.subr.bf16.mxu1 %v3640_v47 }
 0x14d   :  { %3156 = vmatpush3.bf16.msra.mxu0 %v3504_v25  ;;  %v3559_v25 = vld [vmem:[%s4434_s2 + $0x280] sm:$0xff]  }
 0x14e   :  { %3157 = vmatprep.subr.bf16.mxu0 %v3640_v47 }
 0x14f   :  { %3136 = vmatpush3.bf16.msra.mxu1 %v3505_v26  ;;  %v3560_v26 = vld [vmem:[%s4434_s2 + $0x2c8] sm:$0xff]  }
 0x150   :  { %3137 = vmatprep.subr.bf16.mxu1 %v3640_v47 }
 0x151   :  { %3158 = vmatpush3.bf16.msra.mxu0 %v3506_v27  ;;  %v3561_v27 = vld [vmem:[%s4434_s2 + $0x288] sm:$0xff]  }
 0x152   :  { %3159 = vmatprep.subr.bf16.mxu0 %v3640_v47 }
 0x153   :  { %3138 = vmatpush3.bf16.msra.mxu1 %v3507_v28  ;;  %v3562_v28 = vld [vmem:[%s4434_s2 + $0x2d0] sm:$0xff]  }
 0x154   :  { %3139 = vmatprep.subr.bf16.mxu1 %v3640_v47 }
 0x155   :  { %3160 = vmatpush3.bf16.msra.mxu0 %v3508_v29  ;;  %v3563_v29 = vld [vmem:[%s4434_s2 + $0x290] sm:$0xff]  }
 0x156   :  { %3185 = vmatprep.subr.bf16.mxu0 %v3640_v47 }
 0x157   :  { %3140 = vmatpush3.bf16.msra.mxu1 %v3509_v30  ;;  %v3564_v30 = vld [vmem:[%s4434_s2 + $0x2d8] sm:$0xff]  }
 0x158   :  { %3162 = vmatmul.mubr.bf16.vlgmr.msra.gmra.mrb[16].mxu0 %v908_v32  ;;  %3165 = vmatprep.subr.bf16.mxu1 %v3640_v47  ;;  %v3566_v32 = vld [vmem:[%s4434_s2 + $0x2e0] sm:$0xff]  }
 0x159   :  { %3186 = vmatpush3.bf16.msra.mxu0 %v3510_v31  ;;  %3201 = vmatprep.mubr.msk.bf16.mxu0 %vm3641_vm1, %v3640_v47  ;;  %v3565_v31 = vld [vmem:[%s4434_s2 + $0x298] sm:$0xff]  }
 0x15a   :  { %3142 = vmatmul.mubr.bf16.vlgmr.msra.gmra.mrb[12].mxu1 %v800_v34  ;;  %3187 = vmatprep.subr.bf16.mxu0 %v3640_v47  ;;  %v3568_v34 = vld [vmem:[%s4434_s2 + $0x2e8] sm:$0xff]  }
 0x15b   :  { %3166 = vmatpush3.bf16.msra.mxu1 %v3511_v33  ;;  %3181 = vmatprep.mubr.msk.bf16.mxu1 %vm3641_vm1, %v3640_v47  ;;  %v3567_v33 = vld [vmem:[%s4434_s2 + $0x2a0] sm:$0xff]  }
 0x15c   :  { %3167 = vmatprep.subr.bf16.mxu1 %v3640_v47 }
 0x15d   :  { %3188 = vmatpush3.bf16.msra.mxu0 %v3512_v35  ;;  %v3569_v35 = vld [vmem:[%s4434_s2 + $0x2a8] sm:$0xff]  }
 0x15e   :  { %3189 = vmatprep.subr.bf16.mxu0 %v3640_v47 }
 0x15f   :  { %3168 = vmatpush3.bf16.msra.mxu1 %v3513_v36  ;;  %v3570_v36 = vld [vmem:[%s4434_s2 + $0x2f0] sm:$0xff]  }
 0x160   :  { %3169 = vmatprep.subr.bf16.mxu1 %v3640_v47 }
 0x161   :  { %3190 = vmatpush3.bf16.msra.mxu0 %v3514_v37  ;;  %v3571_v37 = vld [vmem:[%s4434_s2 + $0x2b0] sm:$0xff]  }
 0x162   :  { %3191 = vmatprep.subr.bf16.mxu0 %v3640_v47 }
 0x163   :  { %3170 = vmatpush3.bf16.msra.mxu1 %v3515_v38  ;;  %v3572_v38 = vld [vmem:[%s4434_s2 + $0x2f8] sm:$0xff]  }
 0x164   :  { %3171 = vmatprep.subr.bf16.mxu1 %v3640_v47 }
 0x165   :  { %3192 = vmatpush3.bf16.msra.mxu0 %v3516_v39  ;;  %v3573_v39 = vld [vmem:[%s4434_s2 + $0x2b8] sm:$0xff]  }
 0x166   :  { %3193 = vmatprep.subr.bf16.mxu0 %v3640_v47 }
 0x167   :  { %3172 = vmatpush3.bf16.msra.mxu1 %v3517_v40  ;;  %v3574_v40 = vld [vmem:[%s4434_s2 + $0x340] sm:$0xff]  }
 0x168   :  { %3173 = vmatprep.subr.bf16.mxu1 %v3640_v47 }
 0x169   :  { %3194 = vmatpush3.bf16.msra.mxu0 %v3518_v41  ;;  %v1771_v41 = vrot.slane %v3891_v14, 3 }
 0x16a   :  { %3195 = vmatprep.subr.bf16.mxu0 %v3640_v47 }
 0x16b   :  { %3174 = vmatpush3.bf16.msra.mxu1 %v3519_v42  ;;  %v3575_v42 = vld [vmem:[%s4434_s2 + $0x300] sm:$0xff]  }
 0x16c   :  { %3175 = vmatprep.subr.bf16.mxu1 %v3640_v47 }
 0x16d   :  { %3196 = vmatpush3.bf16.msra.mxu0 %v3520_v43  ;;  %v1663_v43 = vrot.slane %v3891_v14, 2 }
 0x16e   :  { %3197 = vmatprep.subr.bf16.mxu0 %v3640_v47 }
 0x16f   :  { %3176 = vmatpush3.bf16.msra.mxu1 %v3521_v44  ;;  %v3576_v44 = vld [vmem:[%s4434_s2 + $0x348] sm:$0xff]  }
 0x170   :  { %3177 = vmatprep.subr.bf16.mxu1 %v3640_v47 }
 0x171   :  { %3198 = vmatpush3.bf16.msra.mxu0 %v3522_v45  ;;  %v3577_v45 = vld [vmem:[%s4434_s2 + $0x308] sm:$0xff]  }
 0x172   :  { %3199 = vmatprep.subr.bf16.mxu0 %v3640_v47 }
 0x173   :  { %3178 = vmatpush3.bf16.msra.mxu1 %v3523_v46  ;;  %v3578_v46 = vld [vmem:[%s4434_s2 + $0x350] sm:$0xff]  }
 0x174   :  { %3179 = vmatprep.subr.bf16.mxu1 %v3640_v47 }
 0x175   :  { %3200 = vmatpush3.bf16.msra.mxu0 %v3524_v48  ;;  %v3579_v48 = vld [vmem:[%s4434_s2 + $0x310] sm:$0xff]  }
 0x176   :  { %3225 = vmatprep.subr.bf16.mxu0 %v3640_v47 }
 0x177   :  { %3180 = vmatpush3.bf16.msra.mxu1 %v3525_v49  ;;  %v3580_v49 = vld [vmem:[%s4434_s2 + $0x358] sm:$0xff]  }
 0x178   :  { %3202 = vmatmul.mubr.bf16.vlgmr.msra.gmra.mrb[20].mxu0 %v1124_v51  ;;  %3205 = vmatprep.subr.bf16.mxu1 %v3640_v47  ;;  %v3582_v51 = vld [vmem:[%s4434_s2 + $0x360] sm:$0xff]  }
 0x179   :  { %3226 = vmatpush3.bf16.msra.mxu0 %v3526_v50  ;;  %3241 = vmatprep.mubr.msk.bf16.mxu0 %vm3641_vm1, %v3640_v47  ;;  %v3581_v50 = vld [vmem:[%s4434_s2 + $0x318] sm:$0xff]  }
 0x17a   :  { %3182 = vmatmul.mubr.bf16.vlgmr.msra.gmra.mrb[16].mxu1 %v1016_v53  ;;  %3227 = vmatprep.subr.bf16.mxu0 %v3640_v47  ;;  %v3584_v53 = vld [vmem:[%s4434_s2 + $0x368] sm:$0xff]  }
 0x17b   :  { %3206 = vmatpush3.bf16.msra.mxu1 %v3527_v52  ;;  %3221 = vmatprep.mubr.msk.bf16.mxu1 %vm3641_vm1, %v3640_v47  ;;  %v3583_v52 = vld [vmem:[%s4434_s2 + $0x320] sm:$0xff]  }
 0x17c   :  { %3207 = vmatprep.subr.bf16.mxu1 %v3640_v47 }
 0x17d   :  { %3228 = vmatpush3.bf16.msra.mxu0 %v3528_v54  ;;  %v3585_v54 = vld [vmem:[%s4434_s2 + $0x328] sm:$0xff]  }
 0x17e   :  { %3229 = vmatprep.subr.bf16.mxu0 %v3640_v47 }
 0x17f   :  { %3208 = vmatpush3.bf16.msra.mxu1 %v3529_v55  ;;  %v3586_v55 = vld [vmem:[%s4434_s2 + $0x370] sm:$0xff]  }
 0x180   :  { %3209 = vmatprep.subr.bf16.mxu1 %v3640_v47 }
 0x181   :  { %3230 = vmatpush3.bf16.msra.mxu0 %v3530_v56  ;;  %v3587_v56 = vld [vmem:[%s4434_s2 + $0x330] sm:$0xff]  }
 0x182   :  { %3231 = vmatprep.subr.bf16.mxu0 %v3640_v47 }
 0x183   :  { %3210 = vmatpush3.bf16.msra.mxu1 %v3531_v57  ;;  %v3588_v57 = vld [vmem:[%s4434_s2 + $0x378] sm:$0xff]  }
 0x184   :  { %3211 = vmatprep.subr.bf16.mxu1 %v3640_v47 }
 0x185   :  { %3232 = vmatpush3.bf16.msra.mxu0 %v3532_v58  ;;  %v3589_v58 = vld [vmem:[%s4434_s2 + $0x338] sm:$0xff]  }
 0x186   :  { %3233 = vmatprep.subr.bf16.mxu0 %v3640_v47 }
 0x187   :  { %3212 = vmatpush3.bf16.msra.mxu1 %v3533_v59  ;;  %v3590_v59 = vld [vmem:[%s4434_s2 + $0x3c0] sm:$0xff]  }
 0x188   :  { %3213 = vmatprep.subr.bf16.mxu1 %v3640_v47 }
 0x189   :  { %3234 = vmatpush3.bf16.msra.mxu0 %v3534_v60  ;;  %v1987_v60 = vrot.slane %v3891_v14, 5 }
 0x18a   :  { %3235 = vmatprep.subr.bf16.mxu0 %v3640_v47 }
 0x18b   :  { %3214 = vmatpush3.bf16.msra.mxu1 %v3535_v61  ;;  %v3591_v61 = vld [vmem:[%s4434_s2 + $0x380] sm:$0xff]  }
 0x18c   :  { %3215 = vmatprep.subr.bf16.mxu1 %v3640_v47 }
 0x18d   :  { %3236 = vmatpush3.bf16.msra.mxu0 %v3536_v62  ;;  %v1879_v62 = vrot.slane %v3891_v14, 4 }
 0x18e   :  { %3237 = vmatprep.subr.bf16.mxu0 %v3640_v47 }
 0x18f   :  { %3216 = vmatpush3.bf16.msra.mxu1 %v3537_v63  ;;  %v3592_v63 = vld [vmem:[%s4434_s2 + $0x3c8] sm:$0xff]  }
 0x190   :  { %3217 = vmatprep.subr.bf16.mxu1 %v3640_v47 }
 0x191   :  { %3238 = vmatpush3.bf16.msra.mxu0 %v3538_v0  ;;  %v3593_v0 = vld [vmem:[%s4434_s2 + $0x388] sm:$0xff]  }
 0x192   :  { %3239 = vmatprep.subr.bf16.mxu0 %v3640_v47 }
 0x193   :  { %3218 = vmatpush3.bf16.msra.mxu1 %v3539_v1  ;;  %v3594_v1 = vld [vmem:[%s4434_s2 + $0x3d0] sm:$0xff]  }
 0x194   :  { %3219 = vmatprep.subr.bf16.mxu1 %v3640_v47 }
 0x195   :  { %3240 = vmatpush3.bf16.msra.mxu0 %v3540_v2  ;;  %v3595_v2 = vld [vmem:[%s4434_s2 + $0x390] sm:$0xff]  }
 0x196   :  { %3265 = vmatprep.subr.bf16.mxu0 %v3640_v47 }
 0x197   :  { %3220 = vmatpush3.bf16.msra.mxu1 %v3541_v3  ;;  %v3596_v3 = vld [vmem:[%s4434_s2 + $0x3d8] sm:$0xff]  }
 0x198   :  { %3242 = vmatmul.mubr.bf16.vlgmr.msra.gmra.mrb[24].mxu0 %v1340_v5  ;;  %3245 = vmatprep.subr.bf16.mxu1 %v3640_v47  ;;  %v3598_v5 = vld [vmem:[%s4434_s2 + $0x3e0] sm:$0xff]  }
 0x199   :  { %3266 = vmatpush3.bf16.msra.mxu0 %v3542_v4  ;;  %3281 = vmatprep.mubr.msk.bf16.mxu0 %vm3641_vm1, %v3640_v47  ;;  %v3597_v4 = vld [vmem:[%s4434_s2 + $0x398] sm:$0xff]  }
 0x19a   :  { %3222 = vmatmul.mubr.bf16.vlgmr.msra.gmra.mrb[20].mxu1 %v1232_v7  ;;  %3267 = vmatprep.subr.bf16.mxu0 %v3640_v47  ;;  %v3600_v7 = vld [vmem:[%s4434_s2 + $0x3e8] sm:$0xff]  }
 0x19b   :  { %3246 = vmatpush3.bf16.msra.mxu1 %v3543_v6  ;;  %3261 = vmatprep.mubr.msk.bf16.mxu1 %vm3641_vm1, %v3640_v47  ;;  %v3599_v6 = vld [vmem:[%s4434_s2 + $0x3a0] sm:$0xff]  }
 0x19c   :  { %3247 = vmatprep.subr.bf16.mxu1 %v3640_v47 }
 0x19d   :  { %3268 = vmatpush3.bf16.msra.mxu0 %v3544_v8 }
 0x19e   :  { %3269 = vmatprep.subr.bf16.mxu0 %v3640_v47 }
 0x19f   :  { %3248 = vmatpush3.bf16.msra.mxu1 %v3545_v9  ;;  %v3601_v9 = vld [vmem:[%s4434_s2 + $0x3a8] sm:$0xff]  }
 0x1a0   :  { %3249 = vmatprep.subr.bf16.mxu1 %v3640_v47 }
 0x1a1   :  { %3270 = vmatpush3.bf16.msra.mxu0 %v3546_v10 }
 0x1a2   :  { %3271 = vmatprep.subr.bf16.mxu0 %v3640_v47 }
 0x1a3   :  { %3250 = vmatpush3.bf16.msra.mxu1 %v3547_v11 }
 0x1a4   :  { %3251 = vmatprep.subr.bf16.mxu1 %v3640_v47 }
 0x1a5   :  { %3272 = vmatpush3.bf16.msra.mxu0 %v3548_v12 }
 0x1a6   :  { %3273 = vmatprep.subr.bf16.mxu0 %v3640_v47 }
 0x1a7   :  { %3252 = vmatpush3.bf16.msra.mxu1 %v3549_v13  ;;  %v3602_v13 = vld [vmem:[%s4434_s2 + $0x3f0] sm:$0xff]  }
 0x1a8   :  { %3253 = vmatprep.subr.bf16.mxu1 %v3640_v47 }
 0x1a9   :  { %3274 = vmatpush3.bf16.msra.mxu0 %v3550_v15 }
 0x1aa   :  { %3275 = vmatprep.subr.bf16.mxu0 %v3640_v47 }
 0x1ab   :  { %3254 = vmatpush3.bf16.msra.mxu1 %v3551_v16 }
 0x1ac   :  { %3255 = vmatprep.subr.bf16.mxu1 %v3640_v47 }
 0x1ad   :  { %3276 = vmatpush3.bf16.msra.mxu0 %v3552_v17 }
 0x1ae   :  { %3277 = vmatprep.subr.bf16.mxu0 %v3640_v47 }
 0x1af   :  { %3256 = vmatpush3.bf16.msra.mxu1 %v3553_v18 }
 0x1b0   :  { %3257 = vmatprep.subr.bf16.mxu1 %v3640_v47 }
 0x1b1   :  { %3278 = vmatpush3.bf16.msra.mxu0 %v3554_v19  ;;  %v3603_v19 = vld [vmem:[%s4434_s2 + $0x3b0] sm:$0xff]  }
 0x1b2   :  { %3279 = vmatprep.subr.bf16.mxu0 %v3640_v47 }
 0x1b3   :  { %3258 = vmatpush3.bf16.msra.mxu1 %v3555_v20 }
 0x1b4   :  { %3259 = vmatprep.subr.bf16.mxu1 %v3640_v47 }
 0x1b5   :  { %3280 = vmatpush3.bf16.msra.mxu0 %v3556_v21  ;;  %v3604_v21 = vld [vmem:[%s4434_s2 + $0x3f8] sm:$0xff]  }
 0x1b6   :  { %3305 = vmatprep.subr.bf16.mxu0 %v3640_v47 }
 0x1b7   :  { %3260 = vmatpush3.bf16.msra.mxu1 %v3557_v22  ;;  %v3605_v22 = vld [vmem:[%s4434_s2 + $0x3b8] sm:$0xff]  }
 0x1b8   :  { %3282 = vmatmul.mubr.bf16.vlgmr.msra.gmra.mrb[28].mxu0 %v1555_v24  ;;  %3285 = vmatprep.subr.bf16.mxu1 %v3640_v47  ;;  %v2095_v24 = vrot.slane %v3891_v14, 6 }
 0x1b9   :  { %3306 = vmatpush3.bf16.msra.mxu0 %v3558_v23  ;;  %3321 = vmatprep.mubr.msk.bf16.mxu0 %vm3641_vm1, %v3640_v47  ;;  %v2203_v23 = vrot.slane %v3891_v14, 7 }
 0x1ba   :  { %3262 = vmatmul.mubr.bf16.vlgmr.msra.gmra.mrb[24].mxu1 %v3891_v14  ;;  %3307 = vmatprep.subr.bf16.mxu0 %v3640_v47 }
 0x1bb   :  { %3286 = vmatpush3.bf16.msra.mxu1 %v3559_v25  ;;  %3301 = vmatprep.mubr.msk.bf16.mxu1 %vm3641_vm1, %v3640_v47 }
 0x1bc   :  { %3287 = vmatprep.subr.bf16.mxu1 %v3640_v47 }
 0x1bd   :  { %3308 = vmatpush3.bf16.msra.mxu0 %v3560_v26 }
 0x1be   :  { %3309 = vmatprep.subr.bf16.mxu0 %v3640_v47 }
 0x1bf   :  { %3288 = vmatpush3.bf16.msra.mxu1 %v3561_v27 }
 0x1c0   :  { %3289 = vmatprep.subr.bf16.mxu1 %v3640_v47 }
 0x1c1   :  { %3310 = vmatpush3.bf16.msra.mxu0 %v3562_v28 }
 0x1c2   :  { %3311 = vmatprep.subr.bf16.mxu0 %v3640_v47 }
 0x1c3   :  { %3290 = vmatpush3.bf16.msra.mxu1 %v3563_v29 }
 0x1c4   :  { %3291 = vmatprep.subr.bf16.mxu1 %v3640_v47 }
 0x1c5   :  { %3312 = vmatpush3.bf16.msra.mxu0 %v3564_v30 }
 0x1c6   :  { %3313 = vmatprep.subr.bf16.mxu0 %v3640_v47 }
 0x1c7   :  { %3292 = vmatpush3.bf16.msra.mxu1 %v3565_v31 }
 0x1c8   :  { %3293 = vmatprep.subr.bf16.mxu1 %v3640_v47 }
 0x1c9   :  { %3314 = vmatpush3.bf16.msra.mxu0 %v3566_v32 }
 0x1ca   :  { %3315 = vmatprep.subr.bf16.mxu0 %v3640_v47 }
 0x1cb   :  { %3294 = vmatpush3.bf16.msra.mxu1 %v3567_v33 }
 0x1cc   :  { %3295 = vmatprep.subr.bf16.mxu1 %v3640_v47 }
 0x1cd   :  { %3316 = vmatpush3.bf16.msra.mxu0 %v3568_v34 }
 0x1ce   :  { %3317 = vmatprep.subr.bf16.mxu0 %v3640_v47 }
 0x1cf   :  { %3296 = vmatpush3.bf16.msra.mxu1 %v3569_v35 }
 0x1d0   :  { %3297 = vmatprep.subr.bf16.mxu1 %v3640_v47 }
 0x1d1   :  { %3318 = vmatpush3.bf16.msra.mxu0 %v3570_v36 }
 0x1d2   :  { %3319 = vmatprep.subr.bf16.mxu0 %v3640_v47 }
 0x1d3   :  { %3298 = vmatpush3.bf16.msra.mxu1 %v3571_v37 }
 0x1d4   :  { %3299 = vmatprep.subr.bf16.mxu1 %v3640_v47 }
 0x1d5   :  { %3320 = vmatpush3.bf16.msra.mxu0 %v3572_v38 }
 0x1d6   :  { %3345 = vmatprep.subr.bf16.mxu0 %v3640_v47 }
 0x1d7   :  { %3300 = vmatpush3.bf16.msra.mxu1 %v3573_v39 }
 0x1d8   :  { %3322 = vmatmul.mubr.bf16.vlgmr.msra.gmra.mrb[32].mxu0 %v1771_v41  ;;  %3325 = vmatprep.subr.bf16.mxu1 %v3640_v47 }
 0x1d9   :  { %3346 = vmatpush3.bf16.msra.mxu0 %v3574_v40  ;;  %3361 = vmatprep.mubr.msk.bf16.mxu0 %vm3641_vm1, %v3640_v47 }
 0x1da   :  { %3302 = vmatmul.mubr.bf16.vlgmr.msra.gmra.mrb[28].mxu1 %v1663_v43  ;;  %3347 = vmatprep.subr.bf16.mxu0 %v3640_v47 }
 0x1db   :  { %3326 = vmatpush3.bf16.msra.mxu1 %v3575_v42  ;;  %3341 = vmatprep.mubr.msk.bf16.mxu1 %vm3641_vm1, %v3640_v47 }
 0x1dc   :  { %3327 = vmatprep.subr.bf16.mxu1 %v3640_v47 }
 0x1dd   :  { %3348 = vmatpush3.bf16.msra.mxu0 %v3576_v44  ;;  %v3606_v44 = vld [vmem:[%s4436_s4] sm:$0xff]  }
 0x1de   :  { %3349 = vmatprep.subr.bf16.mxu0 %v3640_v47 }
 0x1df   :  { %3328 = vmatpush3.bf16.msra.mxu1 %v3577_v45  ;;  %v3607_v45 = vld [vmem:[%s4436_s4 + $0x8] sm:$0xff]  }
 0x1e0   :  { %3329 = vmatprep.subr.bf16.mxu1 %v3640_v47 }
 0x1e1   :  { %3350 = vmatpush3.bf16.msra.mxu0 %v3578_v46  ;;  %v3608_v46 = vld [vmem:[%s4436_s4 + $0x10] sm:$0xff]  }
 0x1e2   :  { %3351 = vmatprep.subr.bf16.mxu0 %v3640_v47 }
 0x1e3   :  { %3330 = vmatpush3.bf16.msra.mxu1 %v3579_v48  ;;  %v3609_v48 = vld [vmem:[%s4436_s4 + $0x18] sm:$0xff]  }
 0x1e4   :  { %3331 = vmatprep.subr.bf16.mxu1 %v3640_v47 }
 0x1e5   :  { %3352 = vmatpush3.bf16.msra.mxu0 %v3580_v49  ;;  %v3610_v49 = vld [vmem:[%s4436_s4 + $0x20] sm:$0xff]  }
 0x1e6   :  { %3353 = vmatprep.subr.bf16.mxu0 %v3640_v47 }
 0x1e7   :  { %3332 = vmatpush3.bf16.msra.mxu1 %v3581_v50 }
 0x1e8   :  { %3333 = vmatprep.subr.bf16.mxu1 %v3640_v47 }
 0x1e9   :  { %3354 = vmatpush3.bf16.msra.mxu0 %v3582_v51 }
 0x1ea   :  { %3355 = vmatprep.subr.bf16.mxu0 %v3640_v47 }
 0x1eb   :  { %3334 = vmatpush3.bf16.msra.mxu1 %v3583_v52 }
 0x1ec   :  { %3335 = vmatprep.subr.bf16.mxu1 %v3640_v47 }
 0x1ed   :  { %3356 = vmatpush3.bf16.msra.mxu0 %v3584_v53 }
 0x1ee   :  { %3357 = vmatprep.subr.bf16.mxu0 %v3640_v47 }
 0x1ef   :  { %3336 = vmatpush3.bf16.msra.mxu1 %v3585_v54  ;;  %v3611_v54 = vld [vmem:[%s4436_s4 + $0x28] sm:$0xff]  }
 0x1f0   :  { %3337 = vmatprep.subr.bf16.mxu1 %v3640_v47 }
 0x1f1   :  { %3358 = vmatpush3.bf16.msra.mxu0 %v3586_v55 }
 0x1f2   :  { %3359 = vmatprep.subr.bf16.mxu0 %v3640_v47 }
 0x1f3   :  { %3338 = vmatpush3.bf16.msra.mxu1 %v3587_v56 }
 0x1f4   :  { %3339 = vmatprep.subr.bf16.mxu1 %v3640_v47 }
 0x1f5   :  { %3360 = vmatpush3.bf16.msra.mxu0 %v3588_v57 }
 0x1f6   :  { %3385 = vmatprep.subr.bf16.mxu0 %v3640_v47 }
 0x1f7   :  { %3340 = vmatpush3.bf16.msra.mxu1 %v3589_v58 }
 0x1f8   :  { %3362 = vmatmul.mubr.bf16.vlgmr.msra.gmra.mrb[36].mxu0 %v1987_v60  ;;  %3365 = vmatprep.subr.bf16.mxu1 %v3640_v47 }
 0x1f9   :  { %3386 = vmatpush3.bf16.msra.mxu0 %v3590_v59  ;;  %3401 = vmatprep.mubr.msk.bf16.mxu0 %vm3641_vm1, %v3640_v47 }
 0x1fa   :  { %3342 = vmatmul.mubr.bf16.vlgmr.msra.gmra.mrb[32].mxu1 %v1879_v62  ;;  %3387 = vmatprep.subr.bf16.mxu0 %v3640_v47  ;;  %v3613_v62 = vld [vmem:[%s4436_s4 + $0x38] sm:$0xff]  }
 0x1fb   :  { %3366 = vmatpush3.bf16.msra.mxu1 %v3591_v61  ;;  %3381 = vmatprep.mubr.msk.bf16.mxu1 %vm3641_vm1, %v3640_v47  ;;  %v3612_v61 = vld [vmem:[%s4436_s4 + $0x30] sm:$0xff]  }
 0x1fc   :  { %3367 = vmatprep.subr.bf16.mxu1 %v3640_v47 }
 0x1fd   :  { %3388 = vmatpush3.bf16.msra.mxu0 %v3592_v63 }
 0x1fe   :  { %3389 = vmatprep.subr.bf16.mxu0 %v3640_v47 }
 0x1ff   :  { %3368 = vmatpush3.bf16.msra.mxu1 %v3593_v0 }
 0x200   :  { %3369 = vmatprep.subr.bf16.mxu1 %v3640_v47 }
 0x201   :  { %3390 = vmatpush3.bf16.msra.mxu0 %v3594_v1 }
 0x202   :  { %3391 = vmatprep.subr.bf16.mxu0 %v3640_v47 }
 0x203   :  { %3370 = vmatpush3.bf16.msra.mxu1 %v3595_v2 }
 0x204   :  { %3371 = vmatprep.subr.bf16.mxu1 %v3640_v47 }
 0x205   :  { %3392 = vmatpush3.bf16.msra.mxu0 %v3596_v3 }
 0x206   :  { %3393 = vmatprep.subr.bf16.mxu0 %v3640_v47 }
 0x207   :  { %3372 = vmatpush3.bf16.msra.mxu1 %v3597_v4 }
 0x208   :  { %3373 = vmatprep.subr.bf16.mxu1 %v3640_v47 }
 0x209   :  { %3394 = vmatpush3.bf16.msra.mxu0 %v3598_v5 }
 0x20a   :  { %3395 = vmatprep.subr.bf16.mxu0 %v3640_v47 }
 0x20b   :  { %3374 = vmatpush3.bf16.msra.mxu1 %v3599_v6  ;;  %v777_v8 = vpop.f32.mrb[12].mxu0 }
 0x20c   :  { %v3123_v10 = vpop.f32.mrb[13].mxu0  ;;  %3375 = vmatprep.subr.bf16.mxu1 %v3640_v47 }
 0x20d   :  { %3396 = vmatpush3.bf16.msra.mxu0 %v3600_v7  ;;  %v689_v11 = vpop.f32.mrb[8].mxu1  ;;  %v780_v12 = vpop.f32.mrb[14].mxu0 }
 0x20e   :  { %v778_v15 = vadd.f32 %v777_v8, %v689_v11  ;;  %v3103_v16 = vpop.f32.mrb[9].mxu1  ;;  %v3124_v17 = vpop.f32.mrb[15].mxu0  ;;  %3397 = vmatprep.subr.bf16.mxu0 %v3640_v47 }
 0x20f   :  { %3376 = vmatpush3.bf16.msra.mxu1 %v3601_v9  ;;  %v692_v18 = vpop.f32.mrb[10].mxu1 }
 0x210   :  { %v3104_v20 = vpop.f32.mrb[11].mxu1  ;;  %3377 = vmatprep.subr.bf16.mxu1 %v3640_v47 }
 0x211   :  { %3398 = vmatpush3.bf16.msra.mxu0 %v3602_v13 }
 0x212   :  { %3399 = vmatprep.subr.bf16.mxu0 %v3640_v47 }
 0x213   :  { %3378 = vmatpush3.bf16.msra.mxu1 %v3603_v19 }
 0x214   :  { %3379 = vmatprep.subr.bf16.mxu1 %v3640_v47 }
 0x215   :  { %3400 = vmatpush3.bf16.msra.mxu0 %v3604_v21 }
 0x217   :  { %3380 = vmatpush3.bf16.msra.mxu1 %v3605_v22 }
 0x218   :  { %3402 = vmatmul.mubr.bf16.vlgmr.msra.gmra.mrb[40].mxu0 %v2203_v23  ;;  %3405 = vmatprep.subr.bf16.mxu1 %v3640_v47 }
 0x21a   :  { %3382 = vmatmul.mubr.bf16.vlgmr.msra.gmra.mrb[36].mxu1 %v2095_v24 }
 0x21b   :  { %3421 = vmatprep.mubr.msk.bf16.mxu1 %vm3641_vm1, %v3640_v47  ;;  %3406 = vmatpush3.bf16.msra.mxu1 %v3606_v44 }
 0x21c   :  { %3407 = vmatprep.subr.bf16.mxu1 %v3640_v47 }
 0x21f   :  { %3408 = vmatpush3.bf16.msra.mxu1 %v3607_v45 }
 0x220   :  { %3409 = vmatprep.subr.bf16.mxu1 %v3640_v47 }
 0x223   :  { %3410 = vmatpush3.bf16.msra.mxu1 %v3608_v46 }
 0x224   :  { %3411 = vmatprep.subr.bf16.mxu1 %v3640_v47 }
 0x227   :  { %3412 = vmatpush3.bf16.msra.mxu1 %v3609_v48 }
 0x228   :  { %3413 = vmatprep.subr.bf16.mxu1 %v3640_v47 }
 0x22b   :  { %v992_v25 = vpop.f32.mrb[16].mxu0  ;;  %3414 = vmatpush3.bf16.msra.mxu1 %v3610_v49 }
 0x22c   :  { %v3163_v26 = vpop.f32.mrb[17].mxu0  ;;  %3415 = vmatprep.subr.bf16.mxu1 %v3640_v47 }
 0x22d   :  { %v884_v27 = vpop.f32.mrb[12].mxu1  ;;  %v995_v28 = vpop.f32.mrb[18].mxu0 }
 0x22e   :  { %v890_v29 = vadd.f32 %v884_v27, %v778_v15  ;;  %v3143_v30 = vpop.f32.mrb[13].mxu1  ;;  %v3164_v31 = vpop.f32.mrb[19].mxu0 }
 0x22f   :  { %v887_v32 = vpop.f32.mrb[14].mxu1  ;;  %3416 = vmatpush3.bf16.msra.mxu1 %v3611_v54 }
 0x230   :  { %v3144_v33 = vpop.f32.mrb[15].mxu1  ;;  %v998_v34 = vadd.f32 %v992_v25, %v890_v29  ;;  %3417 = vmatprep.subr.bf16.mxu1 %v3640_v47 }
 0x233   :  { %3418 = vmatpush3.bf16.msra.mxu1 %v3612_v61 }
 0x234   :  { %3419 = vmatprep.subr.bf16.mxu1 %v3640_v47 }
 0x237   :  { %3420 = vmatpush3.bf16.msra.mxu1 %v3613_v62 }
 0x24b   :  { %v1208_v35 = vpop.f32.mrb[20].mxu0 }
 0x24c   :  { %v3203_v36 = vpop.f32.mrb[21].mxu0 }
 0x24d   :  { %v1100_v37 = vpop.f32.mrb[16].mxu1  ;;  %v1211_v14 = vpop.f32.mrb[22].mxu0  ;;  %v2848_v36 = vld [vmem:[%s4435_s3] ss:$0 sm:$0xff]  ;;  %s3616_s3 = scalar_lea.vmem %s2425_s30, 32 }
 0x24e   :  { %v1106_v38 = vadd.f32 %v1100_v37, %v998_v34  ;;  %v3183_v39 = vpop.f32.mrb[17].mxu1  ;;  %v3204_v40 = vpop.f32.mrb[23].mxu0  ;;  %p3617_p0 = scmp.ne.s32.totalorder %s2425_s30, %s3616_s3  ;;  %p3622_p2 = scmp.lt.s32.totalorder %s3616_s3, %s3616_s3 }
 0x24f   :  { %v1103_v41 = vpop.f32.mrb[18].mxu1 }
 0x250   :  { %v3184_v42 = vpop.f32.mrb[19].mxu1  ;;  %v1214_v43 = vadd.f32 %v1208_v35, %v1106_v38  ;;  %p3623_p3 = por %p3622_p2, %p3621_p1 }
 0x251   :  { %v2849_v42 = vld [vmem:[%s4437_s5] ss:$0 sm:$0xff] }
 0x252   :  { %p3624_p4 = pnand %p3623_p3, %p3617_p0 }
 0x26b   :  { %v1424_v50 = vpop.f32.mrb[24].mxu0 }
 0x26c   :  { %v3243_v51 = vpop.f32.mrb[25].mxu0 }
 0x26d   :  { %v1316_v52 = vpop.f32.mrb[20].mxu1  ;;  %v1427_v53 = vpop.f32.mrb[26].mxu0 }
 0x26e   :  { %v1322_v55 = vadd.f32 %v1316_v52, %v1214_v43  ;;  %v3223_v56 = vpop.f32.mrb[21].mxu1  ;;  %v3244_v57 = vpop.f32.mrb[27].mxu0 }
 0x26f   :  { %v1319_v58 = vpop.f32.mrb[22].mxu1 }
 0x270   :  { %v3224_v59 = vpop.f32.mrb[23].mxu1  ;;  %v1430_v60 = vadd.f32 %v1424_v50, %v1322_v55 }
 0x28b   :  { %v1639_v63 = vpop.f32.mrb[28].mxu0 }
 0x28c   :  { %v3283_v0 = vpop.f32.mrb[29].mxu0 }
 0x28d   :  { %v1530_v1 = vpop.f32.mrb[24].mxu1  ;;  %v1642_v2 = vpop.f32.mrb[30].mxu0 }
 0x28e   :  { %v1536_v3 = vadd.f32 %v1530_v1, %v1430_v60  ;;  %v3263_v4 = vpop.f32.mrb[25].mxu1  ;;  %v3284_v5 = vpop.f32.mrb[31].mxu0 }
 0x28f   :  { %v1533_v6 = vpop.f32.mrb[26].mxu1 }
 0x290   :  { %v3264_v7 = vpop.f32.mrb[27].mxu1  ;;  %v1645_v8 = vadd.f32 %v1639_v63, %v1536_v3 }
 0x2ab   :  { %v1855_v9 = vpop.f32.mrb[32].mxu0 }
 0x2ac   :  { %v3323_v10 = vpop.f32.mrb[33].mxu0 }
 0x2ad   :  { %v1747_v11 = vpop.f32.mrb[28].mxu1  ;;  %v1858_v12 = vpop.f32.mrb[34].mxu0 }
 0x2ae   :  { %v1753_v47 = vadd.f32 %v1747_v11, %v1645_v8  ;;  %v3303_v13 = vpop.f32.mrb[29].mxu1  ;;  %v3324_v15 = vpop.f32.mrb[35].mxu0 }
 0x2af   :  { %v1750_v16 = vpop.f32.mrb[30].mxu1 }
 0x2b0   :  { %v3304_v17 = vpop.f32.mrb[31].mxu1  ;;  %v1861_v18 = vadd.f32 %v1855_v9, %v1753_v47 }
 0x2cb   :  { %v2071_v19 = vpop.f32.mrb[36].mxu0 }
 0x2cc   :  { %v3363_v20 = vpop.f32.mrb[37].mxu0 }
 0x2cd   :  { %v1963_v21 = vpop.f32.mrb[32].mxu1  ;;  %v2074_v22 = vpop.f32.mrb[38].mxu0 }
 0x2ce   :  { %v1969_v23 = vadd.f32 %v1963_v21, %v1861_v18  ;;  %v3343_v24 = vpop.f32.mrb[33].mxu1  ;;  %v3364_v25 = vpop.f32.mrb[39].mxu0 }
 0x2cf   :  { %v1966_v26 = vpop.f32.mrb[34].mxu1 }
 0x2d0   :  { %v3344_v27 = vpop.f32.mrb[35].mxu1  ;;  %v2077_v28 = vadd.f32 %v2071_v19, %v1969_v23 }
 0x2eb   :  { %v2287_v29 = vpop.f32.mrb[40].mxu0 }
 0x2ec   :  { %v3403_v30 = vpop.f32.mrb[41].mxu0 }
 0x2ed   :  { %v2179_v31 = vpop.f32.mrb[36].mxu1  ;;  %v2290_v32 = vpop.f32.mrb[42].mxu0 }
 0x2ee   :  { %v2185_v33 = vadd.f32 %v2179_v31, %v2077_v28  ;;  %v3383_v34 = vpop.f32.mrb[37].mxu1  ;;  %v3404_v35 = vpop.f32.mrb[43].mxu0 }
 0x2ef   :  { %v2182_v37 = vpop.f32.mrb[38].mxu1 }
 0x2f0   :  { %v2293_v14 = vadd.f32 %v2287_v29, %v2185_v33  ;;  %v3384_v38 = vpop.f32.mrb[39].mxu1 }
 0x2f2   :  { %v2301_v39 = vadd.f32 %v2848_v36, %v2293_v14 }
 0x2f4   :  { %v2302_v40 = vmax.f32 %v2301_v39, 0.0 }
 0x2f6   :  { %v2303_v41 = vpack.c.bf16 %v2302_v40, %v2302_v40 }
 0x2f8   :  { %3422 = vmatmul.mubr.bf16.vlgmr.msra.gmra.mrb[40].mxu1 %v2303_v41 }
 0x3cb   :  { %v2409_v43 = vpop.f32.mrb[40].mxu1 }
 0x3cc   :  { %v2410_v44 = vadd.f32 %v2849_v42, %v2409_v43  ;;  %v3423_v45 = vpop.f32.mrb[41].mxu1 }
 0x3cd   :  { %v2412_v46 = vpop.f32.mrb[42].mxu1 }
 0x3ce   :  { %v2415_v48 = vmax.f32 %v2410_v44, 0.0  ;;  %v3424_v49 = vpop.f32.mrb[43].mxu1 }
 0x3d0   :  { %2417 = vst.msk [vmem:[#allocation2] sm:$0x3] %vm2416_vm2, %v2415_v48 }
 0x3d1   :  { %3627 = shalt.err (!%p3624_p4)
}
 0x3d2   :  { %s3628_s8 = scalar_lea.hbm %s4438_s6, 32 }
 0x3d3   :  { %p3629_p5 = scmp.ne.s32.totalorder %s4438_s6, %s3628_s8  ;;  %p3632_p6 = scmp.lt.u32.totalorder %s3628_s8, %s4438_s6 }
 0x3d5   :  { %p3634_p7 = pnand %p3632_p6, %p3629_p5 }
 0x3d7   :  { %3637 = shalt.err (!%p3634_p7)
}
 0x3d8   :  { %2427 = dma.vmem_to_hbm [thread:$0]  %s2425_s30, 32, %s4438_s6, [#allocation3]  }
 0x3d9   :  { %3638 = dma.done.wait [#allocation3], 32  }
 0x3da   :  { %3639 = vsyncadd [#allocation3], 4294967264 }
 0x3db   :  { %2431 = vsyncpa [#allocation3], 1 }

</bundles_post_ra>
